<compile_context>
chip_gen: v5e
topology: v5e:2x2
jax: 0.10.0
libtpu: 0.0.40
codegen_flags: <defaults>
</compile_context>

<pallas_src>
import functools

import jax
import jax.numpy as jnp
from jax import lax
from jax.experimental import pallas as pl
from jax.experimental.pallas import tpu as pltpu

EPS = 1e-5
LANE = 128       # TPU lane width; classifier / output padded to this
C_IN_PAD = 8     # pad the 3 input channels to 8 (sublane alignment everywhere)


# --------------------------- host-side constant builders ---------------------------

def _tap_masks(n, h, w):
    """(9, n*h*w) 0/1 masks: tap t=(dy,dx) is valid at destination pixel (y,x) iff the
    source pixel (y+dy, x+dx) lies inside the (h, w) image (zero-padding semantics).
    Also guards against roll wrap-around across the concatenated batch samples."""
    p = jnp.arange(n * h * w)
    r = p % (h * w)
    y = r // w
    x = r % w
    rows = []
    for dy in (-1, 0, 1):
        for dx in (-1, 0, 1):
            valid = (y + dy >= 0) & (y + dy < h) & (x + dx >= 0) & (x + dx < w)
            rows.append(valid)
    return jnp.stack(rows, axis=0).astype(jnp.float32)


def _downsample_matrix(n, h, w):
    """(n*h*w, n*(h//2)*(w//2)) 0/1 selection matrix picking even (y, x) pixels,
    per sample."""
    ho, wo = h // 2, w // 2
    q = jnp.arange(n * ho * wo)
    s = q // (ho * wo)
    r = q % (ho * wo)
    src = s * (h * w) + (r // wo) * (2 * w) + (r % wo) * 2
    p = jnp.arange(n * h * w)
    return (p[:, None] == src[None, :]).astype(jnp.float32)


def _pool_matrix(n, hw):
    """(n*hw, LANE) matrix whose column j (j < n) averages the hw lanes of sample j."""
    p = jnp.arange(n * hw)
    cols = jnp.arange(LANE)
    mat = (p[:, None] // hw == cols[None, :]) & (cols[None, :] < n)
    return mat.astype(jnp.float32) / float(hw)


# --------------------------------- fused kernel ------------------------------------

def _fused_resnet_kernel(*refs, units, resolutions, down_resolutions):
    """Single grid step == full forward pass for the whole (lane-concatenated) batch.

    refs = (x, *tap_masks, *down_sels, pool, *params, out)."""
    nm, ns = len(resolutions), len(down_resolutions)
    x_ref = refs[0]
    mask_refs = refs[1:1 + nm]
    sel_refs = refs[1 + nm:1 + nm + ns]
    pool_ref = refs[1 + nm + ns]
    o_ref = refs[-1]
    it = iter(refs[2 + nm + ns:-1])

    def load():
        return next(it)[...]

    dot = functools.partial(jnp.dot, preferred_element_type=jnp.float32)

    masks = {res: r[...] for res, r in zip(resolutions, mask_refs)}
    sels = {res: r[...] for res, r in zip(down_resolutions, sel_refs)}

    # ---- data BatchNorm (eval mode): per-channel affine on sublanes ----
    dbn_s = load()                        # (C_IN_PAD, 1)
    dbn_b = load()                        # (C_IN_PAD, 1)
    x = x_ref[...] * dbn_s + dbn_b        # (C, L), L = N*H*W on lanes

    def conv3x3_bn(act, h, w, relu):
        """3x3 conv (stride 1, pad 1), BN folded into weights, + bias [+ ReLU].

        im2col via 9 lane-rolls (XLU) + precomputed boundary masks, then one MXU dot:
        (Cout, 9*Cin) @ (9*Cin, L)."""
        wt = load()                       # (Cout, 9*Cin), BN scale folded in
        bias = load()                     # (Cout, 1)
        L = act.shape[1]
        mask = masks[(h, w)]              # (9, L)
        parts = []
        t = 0
        for dy in (-1, 0, 1):
            for dx in (-1, 0, 1):
                d = dy * w + dx
                rolled = act if d == 0 else pltpu.roll(act, (-d) % L, axis=1)
                parts.append(rolled * mask[t:t + 1, :])
                t += 1
        patches = jnp.concatenate(parts, axis=0)      # (9*Cin, L)
        out = dot(wt, patches) + bias
        return jnp.maximum(out, 0.0) if relu else out

    h_cur, w_cur = resolutions[0]

    # ---- init unit (InitUnitSmall: conv3x3 + BN + ReLU, stride 1) ----
    x = conv3x3_bn(x, h_cur, w_cur, relu=True)

    # ---- stages of StandardUnits ----
    for stride, has_proj in units:
        if stride == 2:
            sel = sels[(h_cur, w_cur)]                # (L, L/4) even-pixel selection
        if has_proj:
            pw = load()                               # (Cout, Cin) 1x1 proj, BN folded
            pb = load()                               # (Cout, 1)
            xin = dot(x, sel) if stride == 2 else x
            residual = dot(pw, xin) + pb
        else:
            residual = x
        h = conv3x3_bn(x, h_cur, w_cur, relu=True)    # conv1 (+BN+ReLU)
        if stride == 2:
            h = dot(h, sel)                           # stride-2 = pick even pixels
            h_cur, w_cur = h_cur // 2, w_cur // 2
        h = conv3x3_bn(h, h_cur, w_cur, relu=False)   # conv2 (+BN, no act)
        x = jnp.maximum(h + residual, 0.0)

    # ---- global average pool + classifier (lane-dense 128x128 output) ----
    pooled = dot(x, pool_ref[...])        # (C_last, LANE); column n = mean of sample n
    fcw = load()                          # (LANE, C_last)  classes padded to 128 rows
    fcb = load()                          # (LANE, 1)
    logits_t = dot(fcw, pooled) + fcb     # (classes_pad, batch_pad) = (128, 128)
    assert next(it, None) is None, "parameter list / kernel consumption mismatch"
    o_ref[...] = logits_t


# ----------------------------------- wrappers ---------------------------------------

def _prep_conv3x3(p, cin_pad=None):
    """Fold BN scale; return ((Cout, 9*Cin) weight, (Cout, 1) bias), K ordered tap-major."""
    w = (p["w"] * p["scale"]).astype(jnp.float32)     # (3, 3, Cin, Cout)
    _, _, cin, cout = w.shape
    w = w.reshape(9, cin, cout)
    if cin_pad is not None and cin_pad > cin:
        w = jnp.pad(w, ((0, 0), (0, cin_pad - cin), (0, 0)))
        cin = cin_pad
    wt = jnp.transpose(w, (2, 0, 1)).reshape(cout, 9 * cin)
    bias = p["bias"].reshape(cout, 1).astype(jnp.float32)
    return wt, bias


def _flatten_params(params):
    """Fold BN into conv weights; produce flat arg list + static unit structure."""
    flat = []
    s, b = params["data_bn"]
    c_in = s.shape[0]
    flat.append(jnp.pad(s.reshape(-1, 1).astype(jnp.float32),
                        ((0, C_IN_PAD - c_in), (0, 0))))
    flat.append(jnp.pad(b.reshape(-1, 1).astype(jnp.float32),
                        ((0, C_IN_PAD - c_in), (0, 0))))

    wt, bias = _prep_conv3x3(params["init"], cin_pad=C_IN_PAD)
    flat += [wt, bias]

    units = []
    for stage in params["stages"]:
        for unit in stage:
            has_proj = "proj" in unit
            units.append((unit["stride"], has_proj))
            if has_proj:
                p = unit["proj"]
                pw = (p["w"] * p["scale"]).astype(jnp.float32)[0, 0]   # (Cin, Cout)
                flat += [pw.T, p["bias"].reshape(-1, 1).astype(jnp.float32)]
            wt, bias = _prep_conv3x3(unit["conv1"])
            flat += [wt, bias]
            wt, bias = _prep_conv3x3(unit["conv2"])
            flat += [wt, bias]

    fc_w = params["fc_w"].astype(jnp.float32)
    fc_b = params["fc_b"].astype(jnp.float32)
    c_last, ncls = fc_w.shape
    fcw_t = jnp.zeros((LANE, c_last), jnp.float32).at[:ncls, :].set(fc_w.T)
    fcb_t = jnp.zeros((LANE, 1), jnp.float32).at[:ncls, 0].set(fc_b)
    flat += [fcw_t, fcb_t]
    return flat, tuple(units)


def resnet_forward(x_nchw, params):
    N, C, H, W = x_nchw.shape
    num_classes = params["fc_w"].shape[1]

    # channels-on-sublanes, (batch*spatial)-on-lanes layout, channels padded to 8
    x = jnp.transpose(x_nchw.astype(jnp.float32), (1, 0, 2, 3)).reshape(C, N * H * W)
    x = jnp.pad(x, ((0, C_IN_PAD - C), (0, 0)))

    flat, units = _flatten_params(params)

    # static resolution bookkeeping (which masks / selection matrices are needed)
    resolutions = [(H, W)]
    down_resolutions = []
    h, w = H, W
    for stride, _ in units:
        if stride == 2:
            down_resolutions.append((h, w))
            h, w = h // 2, w // 2
            resolutions.append((h, w))
    final_hw = h * w

    masks = [_tap_masks(N, hh, ww) for hh, ww in resolutions]
    sels = [_downsample_matrix(N, hh, ww) for hh, ww in down_resolutions]
    pool = _pool_matrix(N, final_hw)

    inputs = [x] + masks + sels + [pool] + flat

    kernel = functools.partial(
        _fused_resnet_kernel, units=units,
        resolutions=tuple(resolutions),
        down_resolutions=tuple(down_resolutions))

    def whole(a):
        nd = a.ndim
        return pl.BlockSpec(a.shape, lambda i, _nd=nd: (0,) * _nd)

    out = pl.pallas_call(
        kernel,
        out_shape=jax.ShapeDtypeStruct((LANE, LANE), jnp.float32),
        grid=(1,),
        in_specs=[whole(a) for a in inputs],
        out_specs=pl.BlockSpec((LANE, LANE), lambda i: (0, 0)),
        compiler_params=pltpu.CompilerParams(
            dimension_semantics=("arbitrary",)),
    )(*inputs)
    return out[:num_classes, :N].T        # (N, num_classes)


# ------------------------------- parameter building ---------------------------------

def _bn_scale_bias(key, c):
    k1, k2, k3, k4 = jax.random.split(key, 4)
    gamma = jax.random.uniform(k1, (c,), minval=0.5, maxval=1.5, dtype=jnp.float32)
    beta = 0.1 * jax.random.normal(k2, (c,), dtype=jnp.float32)
    mean = 0.1 * jax.random.normal(k3, (c,), dtype=jnp.float32)
    var = jax.random.uniform(k4, (c,), minval=0.5, maxval=1.5, dtype=jnp.float32)
    scale = gamma / jnp.sqrt(var + EPS)
    bias = beta - mean * scale
    return scale, bias


def _kaiming_uniform(key, shape_hwio):
    fan_in = shape_hwio[0] * shape_hwio[1] * shape_hwio[2]
    bound = (6.0 / fan_in) ** 0.5
    return jax.random.uniform(key, shape_hwio, minval=-bound, maxval=bound,
                              dtype=jnp.float32)


def _conv_bn_params(key, ksize, cin, cout):
    kw, kb = jax.random.split(key)
    scale, bias = _bn_scale_bias(kb, cout)
    return {"w": _kaiming_uniform(kw, (ksize, ksize, cin, cout)),
            "scale": scale, "bias": bias}


def build_resnet_params(key, in_channels, init_unit_channels, channels, num_classes):
    params = {}
    key, k = jax.random.split(key)
    params["data_bn"] = _bn_scale_bias(k, in_channels)
    key, k = jax.random.split(key)
    params["init"] = _conv_bn_params(k, 3, in_channels, init_unit_channels)

    stages = []
    cin = init_unit_channels
    for stage_id, stage_channels in enumerate(channels):
        stage = []
        for unit_id, cout in enumerate(stage_channels):
            stride = 2 if (unit_id == 0 and stage_id != 0) else 1
            unit = {"stride": stride}
            key, k1, k2, k3 = jax.random.split(key, 4)
            unit["conv1"] = _conv_bn_params(k1, 3, cin, cout)
            unit["conv2"] = _conv_bn_params(k2, 3, cout, cout)
            if cin != cout or stride != 1:
                unit["proj"] = _conv_bn_params(k3, 1, cin, cout)
            stage.append(unit)
            cin = cout
        stages.append(stage)
    params["stages"] = stages

    key, kw, kb = jax.random.split(key, 3)
    bound = (6.0 / cin) ** 0.5
    params["fc_w"] = jax.random.uniform(kw, (cin, num_classes), minval=-bound,
                                        maxval=bound, dtype=jnp.float32)
    params["fc_b"] = 0.01 * jax.random.normal(kb, (num_classes,), dtype=jnp.float32)
    return params


# -------------------------------- pure-JAX reference --------------------------------

def ref_forward(x_nchw, params):
    x = jnp.transpose(x_nchw, (0, 2, 3, 1)).astype(jnp.float32)
    s, b = params["data_bn"]
    x = x * s + b

    def conv(x, p, stride, relu, pad):
        y = lax.conv_general_dilated(x, p["w"], (stride, stride),
                                     [(pad, pad), (pad, pad)],
                                     dimension_numbers=("NHWC", "HWIO", "NHWC"))
        y = y * p["scale"] + p["bias"]
        return jnp.maximum(y, 0.0) if relu else y

    x = conv(x, params["init"], 1, True, 1)
    for stage in params["stages"]:
        for unit in stage:
            stride = unit["stride"]
            residual = conv(x, unit["proj"], stride, False, 0) if "proj" in unit else x
            h = conv(x, unit["conv1"], stride, True, 1)
            h = conv(h, unit["conv2"], 1, False, 1)
            x = jnp.maximum(h + residual, 0.0)
    pooled = jnp.mean(x, axis=(1, 2))
    return pooled @ params["fc_w"] + params["fc_b"]


# --------------------------------------- main ----------------------------------------

if __name__ == "__main__":
    key = jax.random.PRNGKey(0)
    k_in, k_par = jax.random.split(key)

    # small config: in_channels=3, 16x16 images, channels=[[8,8],[16,16]], 10 classes
    in_channels, in_hw = 3, 16
    init_unit_channels = 8
    channels = [[8, 8], [16, 16]]
    num_classes = 10

    x = jax.random.normal(k_in, (2, in_channels, in_hw, in_hw), dtype=jnp.float32)
    params = build_resnet_params(k_par, in_channels, init_unit_channels,
                                 channels, num_classes)

    logits = jax.block_until_ready(resnet_forward(x, params))
    ref = jax.block_until_ready(ref_forward(x, params))

    assert logits.shape == (2, num_classes)
    assert jnp.allclose(logits, ref, rtol=1e-3, atol=1e-3), (
        f"max abs diff {jnp.max(jnp.abs(logits - ref))}")

    print("KERNEL_OK")
</pallas_src>

<mosaic_0001>
module attributes {stable_mosaic.version = 11 : i64} {
  func.func @_fused_resnet_kernel(%arg0: i32, %arg1: memref<8x512xf32, #tpu.memory_space<vmem>>, %arg2: memref<9x512xf32, #tpu.memory_space<vmem>>, %arg3: memref<9x128xf32, #tpu.memory_space<vmem>>, %arg4: memref<512x128xf32, #tpu.memory_space<vmem>>, %arg5: memref<128x128xf32, #tpu.memory_space<vmem>>, %arg6: memref<8x1xf32, #tpu.memory_space<vmem>>, %arg7: memref<8x1xf32, #tpu.memory_space<vmem>>, %arg8: memref<8x72xf32, #tpu.memory_space<vmem>>, %arg9: memref<8x1xf32, #tpu.memory_space<vmem>>, %arg10: memref<8x72xf32, #tpu.memory_space<vmem>>, %arg11: memref<8x1xf32, #tpu.memory_space<vmem>>, %arg12: memref<8x72xf32, #tpu.memory_space<vmem>>, %arg13: memref<8x1xf32, #tpu.memory_space<vmem>>, %arg14: memref<8x72xf32, #tpu.memory_space<vmem>>, %arg15: memref<8x1xf32, #tpu.memory_space<vmem>>, %arg16: memref<8x72xf32, #tpu.memory_space<vmem>>, %arg17: memref<8x1xf32, #tpu.memory_space<vmem>>, %arg18: memref<16x8xf32, #tpu.memory_space<vmem>>, %arg19: memref<16x1xf32, #tpu.memory_space<vmem>>, %arg20: memref<16x72xf32, #tpu.memory_space<vmem>>, %arg21: memref<16x1xf32, #tpu.memory_space<vmem>>, %arg22: memref<16x144xf32, #tpu.memory_space<vmem>>, %arg23: memref<16x1xf32, #tpu.memory_space<vmem>>, %arg24: memref<16x144xf32, #tpu.memory_space<vmem>>, %arg25: memref<16x1xf32, #tpu.memory_space<vmem>>, %arg26: memref<16x144xf32, #tpu.memory_space<vmem>>, %arg27: memref<16x1xf32, #tpu.memory_space<vmem>>, %arg28: memref<128x16xf32, #tpu.memory_space<vmem>>, %arg29: memref<128x1xf32, #tpu.memory_space<vmem>>, %arg30: memref<128x128xf32, #tpu.memory_space<vmem>>) attributes {dimension_semantics = [#tpu.dimension_semantics<arbitrary>], iteration_bounds = array<i64: 1>, scalar_prefetch = 0 : i64, scratch_operands = 0 : i64, tpu.core_type = #tpu.core_type<tc>, window_params = [{pipeline_mode = #tpu.pipeline_mode<synchronous>, transform_indices = @transform_0, window_bounds = array<i64: 8, 512>}, {pipeline_mode = #tpu.pipeline_mode<synchronous>, transform_indices = @transform_1, window_bounds = array<i64: 9, 512>}, {pipeline_mode = #tpu.pipeline_mode<synchronous>, transform_indices = @transform_2, window_bounds = array<i64: 9, 128>}, {pipeline_mode = #tpu.pipeline_mode<synchronous>, transform_indices = @transform_3, window_bounds = array<i64: 512, 128>}, {pipeline_mode = #tpu.pipeline_mode<synchronous>, transform_indices = @transform_4, window_bounds = array<i64: 128, 128>}, {pipeline_mode = #tpu.pipeline_mode<synchronous>, transform_indices = @transform_5, window_bounds = array<i64: 8, 1>}, {pipeline_mode = #tpu.pipeline_mode<synchronous>, transform_indices = @transform_6, window_bounds = array<i64: 8, 1>}, {pipeline_mode = #tpu.pipeline_mode<synchronous>, transform_indices = @transform_7, window_bounds = array<i64: 8, 72>}, {pipeline_mode = #tpu.pipeline_mode<synchronous>, transform_indices = @transform_8, window_bounds = array<i64: 8, 1>}, {pipeline_mode = #tpu.pipeline_mode<synchronous>, transform_indices = @transform_9, window_bounds = array<i64: 8, 72>}, {pipeline_mode = #tpu.pipeline_mode<synchronous>, transform_indices = @transform_10, window_bounds = array<i64: 8, 1>}, {pipeline_mode = #tpu.pipeline_mode<synchronous>, transform_indices = @transform_11, window_bounds = array<i64: 8, 72>}, {pipeline_mode = #tpu.pipeline_mode<synchronous>, transform_indices = @transform_12, window_bounds = array<i64: 8, 1>}, {pipeline_mode = #tpu.pipeline_mode<synchronous>, transform_indices = @transform_13, window_bounds = array<i64: 8, 72>}, {pipeline_mode = #tpu.pipeline_mode<synchronous>, transform_indices = @transform_14, window_bounds = array<i64: 8, 1>}, {pipeline_mode = #tpu.pipeline_mode<synchronous>, transform_indices = @transform_15, window_bounds = array<i64: 8, 72>}, {pipeline_mode = #tpu.pipeline_mode<synchronous>, transform_indices = @transform_16, window_bounds = array<i64: 8, 1>}, {pipeline_mode = #tpu.pipeline_mode<synchronous>, transform_indices = @transform_17, window_bounds = array<i64: 16, 8>}, {pipeline_mode = #tpu.pipeline_mode<synchronous>, transform_indices = @transform_18, window_bounds = array<i64: 16, 1>}, {pipeline_mode = #tpu.pipeline_mode<synchronous>, transform_indices = @transform_19, window_bounds = array<i64: 16, 72>}, {pipeline_mode = #tpu.pipeline_mode<synchronous>, transform_indices = @transform_20, window_bounds = array<i64: 16, 1>}, {pipeline_mode = #tpu.pipeline_mode<synchronous>, transform_indices = @transform_21, window_bounds = array<i64: 16, 144>}, {pipeline_mode = #tpu.pipeline_mode<synchronous>, transform_indices = @transform_22, window_bounds = array<i64: 16, 1>}, {pipeline_mode = #tpu.pipeline_mode<synchronous>, transform_indices = @transform_23, window_bounds = array<i64: 16, 144>}, {pipeline_mode = #tpu.pipeline_mode<synchronous>, transform_indices = @transform_24, window_bounds = array<i64: 16, 1>}, {pipeline_mode = #tpu.pipeline_mode<synchronous>, transform_indices = @transform_25, window_bounds = array<i64: 16, 144>}, {pipeline_mode = #tpu.pipeline_mode<synchronous>, transform_indices = @transform_26, window_bounds = array<i64: 16, 1>}, {pipeline_mode = #tpu.pipeline_mode<synchronous>, transform_indices = @transform_27, window_bounds = array<i64: 128, 16>}, {pipeline_mode = #tpu.pipeline_mode<synchronous>, transform_indices = @transform_28, window_bounds = array<i64: 128, 1>}, {pipeline_mode = #tpu.pipeline_mode<synchronous>, transform_indices = @transform_29, window_bounds = array<i64: 128, 128>}]} {
    %c0 = arith.constant 0 : index
    %c0_0 = arith.constant 0 : index
    %0 = vector.load %arg2[%c0, %c0_0] : memref<9x512xf32, #tpu.memory_space<vmem>>, vector<9x512xf32>
    %c0_1 = arith.constant 0 : index
    %c0_2 = arith.constant 0 : index
    %1 = vector.load %arg3[%c0_1, %c0_2] : memref<9x128xf32, #tpu.memory_space<vmem>>, vector<9x128xf32>
    %c0_3 = arith.constant 0 : index
    %c0_4 = arith.constant 0 : index
    %2 = vector.load %arg4[%c0_3, %c0_4] : memref<512x128xf32, #tpu.memory_space<vmem>>, vector<512x128xf32>
    %c0_5 = arith.constant 0 : index
    %c0_6 = arith.constant 0 : index
    %3 = vector.load %arg6[%c0_5, %c0_6] : memref<8x1xf32, #tpu.memory_space<vmem>>, vector<8x1xf32>
    %c0_7 = arith.constant 0 : index
    %c0_8 = arith.constant 0 : index
    %4 = vector.load %arg7[%c0_7, %c0_8] : memref<8x1xf32, #tpu.memory_space<vmem>>, vector<8x1xf32>
    %c0_9 = arith.constant 0 : index
    %c0_10 = arith.constant 0 : index
    %5 = vector.load %arg1[%c0_9, %c0_10] : memref<8x512xf32, #tpu.memory_space<vmem>>, vector<8x512xf32>
    %6 = vector.broadcast %3 : vector<8x1xf32> to vector<8x512xf32>
    %7 = arith.mulf %5, %6 : vector<8x512xf32>
    %8 = vector.broadcast %4 : vector<8x1xf32> to vector<8x512xf32>
    %9 = arith.addf %7, %8 : vector<8x512xf32>
    %c0_11 = arith.constant 0 : index
    %c0_12 = arith.constant 0 : index
    %10 = vector.load %arg8[%c0_11, %c0_12] : memref<8x72xf32, #tpu.memory_space<vmem>>, vector<8x72xf32>
    %c0_13 = arith.constant 0 : index
    %c0_14 = arith.constant 0 : index
    %11 = vector.load %arg9[%c0_13, %c0_14] : memref<8x1xf32, #tpu.memory_space<vmem>>, vector<8x1xf32>
    %c17_i32 = arith.constant 17 : i32
    %12 = tpu.dynamic_rotate %9 by %c17_i32 dim 1 : vector<8x512xf32>, i32 -> vector<8x512xf32>
    %13 = vector.extract_strided_slice %0 {offsets = [0, 0], sizes = [1, 512], strides = [1, 1]} : vector<9x512xf32> to vector<1x512xf32>
    %14 = vector.broadcast %13 : vector<1x512xf32> to vector<8x512xf32>
    %15 = arith.mulf %12, %14 : vector<8x512xf32>
    %c16_i32 = arith.constant 16 : i32
    %16 = tpu.dynamic_rotate %9 by %c16_i32 dim 1 : vector<8x512xf32>, i32 -> vector<8x512xf32>
    %17 = vector.extract_strided_slice %0 {offsets = [1, 0], sizes = [1, 512], strides = [1, 1]} : vector<9x512xf32> to vector<1x512xf32>
    %18 = vector.broadcast %17 : vector<1x512xf32> to vector<8x512xf32>
    %19 = arith.mulf %16, %18 : vector<8x512xf32>
    %c15_i32 = arith.constant 15 : i32
    %20 = tpu.dynamic_rotate %9 by %c15_i32 dim 1 : vector<8x512xf32>, i32 -> vector<8x512xf32>
    %21 = vector.extract_strided_slice %0 {offsets = [2, 0], sizes = [1, 512], strides = [1, 1]} : vector<9x512xf32> to vector<1x512xf32>
    %22 = vector.broadcast %21 : vector<1x512xf32> to vector<8x512xf32>
    %23 = arith.mulf %20, %22 : vector<8x512xf32>
    %c1_i32 = arith.constant 1 : i32
    %24 = tpu.dynamic_rotate %9 by %c1_i32 dim 1 : vector<8x512xf32>, i32 -> vector<8x512xf32>
    %25 = vector.extract_strided_slice %0 {offsets = [3, 0], sizes = [1, 512], strides = [1, 1]} : vector<9x512xf32> to vector<1x512xf32>
    %26 = vector.broadcast %25 : vector<1x512xf32> to vector<8x512xf32>
    %27 = arith.mulf %24, %26 : vector<8x512xf32>
    %28 = vector.extract_strided_slice %0 {offsets = [4, 0], sizes = [1, 512], strides = [1, 1]} : vector<9x512xf32> to vector<1x512xf32>
    %29 = vector.broadcast %28 : vector<1x512xf32> to vector<8x512xf32>
    %30 = arith.mulf %9, %29 : vector<8x512xf32>
    %c511_i32 = arith.constant 511 : i32
    %31 = tpu.dynamic_rotate %9 by %c511_i32 dim 1 : vector<8x512xf32>, i32 -> vector<8x512xf32>
    %32 = vector.extract_strided_slice %0 {offsets = [5, 0], sizes = [1, 512], strides = [1, 1]} : vector<9x512xf32> to vector<1x512xf32>
    %33 = vector.broadcast %32 : vector<1x512xf32> to vector<8x512xf32>
    %34 = arith.mulf %31, %33 : vector<8x512xf32>
    %c497_i32 = arith.constant 497 : i32
    %35 = tpu.dynamic_rotate %9 by %c497_i32 dim 1 : vector<8x512xf32>, i32 -> vector<8x512xf32>
    %36 = vector.extract_strided_slice %0 {offsets = [6, 0], sizes = [1, 512], strides = [1, 1]} : vector<9x512xf32> to vector<1x512xf32>
    %37 = vector.broadcast %36 : vector<1x512xf32> to vector<8x512xf32>
    %38 = arith.mulf %35, %37 : vector<8x512xf32>
    %c496_i32 = arith.constant 496 : i32
    %39 = tpu.dynamic_rotate %9 by %c496_i32 dim 1 : vector<8x512xf32>, i32 -> vector<8x512xf32>
    %40 = vector.extract_strided_slice %0 {offsets = [7, 0], sizes = [1, 512], strides = [1, 1]} : vector<9x512xf32> to vector<1x512xf32>
    %41 = vector.broadcast %40 : vector<1x512xf32> to vector<8x512xf32>
    %42 = arith.mulf %39, %41 : vector<8x512xf32>
    %c495_i32 = arith.constant 495 : i32
    %43 = tpu.dynamic_rotate %9 by %c495_i32 dim 1 : vector<8x512xf32>, i32 -> vector<8x512xf32>
    %44 = vector.extract_strided_slice %0 {offsets = [8, 0], sizes = [1, 512], strides = [1, 1]} : vector<9x512xf32> to vector<1x512xf32>
    %45 = vector.broadcast %44 : vector<1x512xf32> to vector<8x512xf32>
    %46 = arith.mulf %43, %45 : vector<8x512xf32>
    %47 = tpu.concatenate %15, %19, %23, %27, %30, %34, %38, %42, %46 in 0 : vector<8x512xf32>, vector<8x512xf32>, vector<8x512xf32>, vector<8x512xf32>, vector<8x512xf32>, vector<8x512xf32>, vector<8x512xf32>, vector<8x512xf32>, vector<8x512xf32> -> vector<72x512xf32>
    %cst = arith.constant dense<0.000000e+00> : vector<8x512xf32>
    %48 = tpu.matmul %10, %47, %cst {dimension_numbers = #tpu.dot_dimension_numbers<[1], [0], [0], [1], [0, 0, 1, 1], [], []>} : vector<8x72xf32>, vector<72x512xf32>, vector<8x512xf32> -> vector<8x512xf32>
    %49 = vector.broadcast %11 : vector<8x1xf32> to vector<8x512xf32>
    %50 = arith.addf %48, %49 : vector<8x512xf32>
    %cst_15 = arith.constant 0.000000e+00 : f32
    %51 = vector.broadcast %cst_15 : f32 to vector<8x512xf32>
    %52 = arith.maximumf %50, %51 : vector<8x512xf32>
    %c0_16 = arith.constant 0 : index
    %c0_17 = arith.constant 0 : index
    %53 = vector.load %arg10[%c0_16, %c0_17] : memref<8x72xf32, #tpu.memory_space<vmem>>, vector<8x72xf32>
    %c0_18 = arith.constant 0 : index
    %c0_19 = arith.constant 0 : index
    %54 = vector.load %arg11[%c0_18, %c0_19] : memref<8x1xf32, #tpu.memory_space<vmem>>, vector<8x1xf32>
    %c17_i32_20 = arith.constant 17 : i32
    %55 = tpu.dynamic_rotate %52 by %c17_i32_20 dim 1 : vector<8x512xf32>, i32 -> vector<8x512xf32>
    %56 = vector.extract_strided_slice %0 {offsets = [0, 0], sizes = [1, 512], strides = [1, 1]} : vector<9x512xf32> to vector<1x512xf32>
    %57 = vector.broadcast %56 : vector<1x512xf32> to vector<8x512xf32>
    %58 = arith.mulf %55, %57 : vector<8x512xf32>
    %c16_i32_21 = arith.constant 16 : i32
    %59 = tpu.dynamic_rotate %52 by %c16_i32_21 dim 1 : vector<8x512xf32>, i32 -> vector<8x512xf32>
    %60 = vector.extract_strided_slice %0 {offsets = [1, 0], sizes = [1, 512], strides = [1, 1]} : vector<9x512xf32> to vector<1x512xf32>
    %61 = vector.broadcast %60 : vector<1x512xf32> to vector<8x512xf32>
    %62 = arith.mulf %59, %61 : vector<8x512xf32>
    %c15_i32_22 = arith.constant 15 : i32
    %63 = tpu.dynamic_rotate %52 by %c15_i32_22 dim 1 : vector<8x512xf32>, i32 -> vector<8x512xf32>
    %64 = vector.extract_strided_slice %0 {offsets = [2, 0], sizes = [1, 512], strides = [1, 1]} : vector<9x512xf32> to vector<1x512xf32>
    %65 = vector.broadcast %64 : vector<1x512xf32> to vector<8x512xf32>
    %66 = arith.mulf %63, %65 : vector<8x512xf32>
    %c1_i32_23 = arith.constant 1 : i32
    %67 = tpu.dynamic_rotate %52 by %c1_i32_23 dim 1 : vector<8x512xf32>, i32 -> vector<8x512xf32>
    %68 = vector.extract_strided_slice %0 {offsets = [3, 0], sizes = [1, 512], strides = [1, 1]} : vector<9x512xf32> to vector<1x512xf32>
    %69 = vector.broadcast %68 : vector<1x512xf32> to vector<8x512xf32>
    %70 = arith.mulf %67, %69 : vector<8x512xf32>
    %71 = vector.extract_strided_slice %0 {offsets = [4, 0], sizes = [1, 512], strides = [1, 1]} : vector<9x512xf32> to vector<1x512xf32>
    %72 = vector.broadcast %71 : vector<1x512xf32> to vector<8x512xf32>
    %73 = arith.mulf %52, %72 : vector<8x512xf32>
    %c511_i32_24 = arith.constant 511 : i32
    %74 = tpu.dynamic_rotate %52 by %c511_i32_24 dim 1 : vector<8x512xf32>, i32 -> vector<8x512xf32>
    %75 = vector.extract_strided_slice %0 {offsets = [5, 0], sizes = [1, 512], strides = [1, 1]} : vector<9x512xf32> to vector<1x512xf32>
    %76 = vector.broadcast %75 : vector<1x512xf32> to vector<8x512xf32>
    %77 = arith.mulf %74, %76 : vector<8x512xf32>
    %c497_i32_25 = arith.constant 497 : i32
    %78 = tpu.dynamic_rotate %52 by %c497_i32_25 dim 1 : vector<8x512xf32>, i32 -> vector<8x512xf32>
    %79 = vector.extract_strided_slice %0 {offsets = [6, 0], sizes = [1, 512], strides = [1, 1]} : vector<9x512xf32> to vector<1x512xf32>
    %80 = vector.broadcast %79 : vector<1x512xf32> to vector<8x512xf32>
    %81 = arith.mulf %78, %80 : vector<8x512xf32>
    %c496_i32_26 = arith.constant 496 : i32
    %82 = tpu.dynamic_rotate %52 by %c496_i32_26 dim 1 : vector<8x512xf32>, i32 -> vector<8x512xf32>
    %83 = vector.extract_strided_slice %0 {offsets = [7, 0], sizes = [1, 512], strides = [1, 1]} : vector<9x512xf32> to vector<1x512xf32>
    %84 = vector.broadcast %83 : vector<1x512xf32> to vector<8x512xf32>
    %85 = arith.mulf %82, %84 : vector<8x512xf32>
    %c495_i32_27 = arith.constant 495 : i32
    %86 = tpu.dynamic_rotate %52 by %c495_i32_27 dim 1 : vector<8x512xf32>, i32 -> vector<8x512xf32>
    %87 = vector.extract_strided_slice %0 {offsets = [8, 0], sizes = [1, 512], strides = [1, 1]} : vector<9x512xf32> to vector<1x512xf32>
    %88 = vector.broadcast %87 : vector<1x512xf32> to vector<8x512xf32>
    %89 = arith.mulf %86, %88 : vector<8x512xf32>
    %90 = tpu.concatenate %58, %62, %66, %70, %73, %77, %81, %85, %89 in 0 : vector<8x512xf32>, vector<8x512xf32>, vector<8x512xf32>, vector<8x512xf32>, vector<8x512xf32>, vector<8x512xf32>, vector<8x512xf32>, vector<8x512xf32>, vector<8x512xf32> -> vector<72x512xf32>
    %cst_28 = arith.constant dense<0.000000e+00> : vector<8x512xf32>
    %91 = tpu.matmul %53, %90, %cst_28 {dimension_numbers = #tpu.dot_dimension_numbers<[1], [0], [0], [1], [0, 0, 1, 1], [], []>} : vector<8x72xf32>, vector<72x512xf32>, vector<8x512xf32> -> vector<8x512xf32>
    %92 = vector.broadcast %54 : vector<8x1xf32> to vector<8x512xf32>
    %93 = arith.addf %91, %92 : vector<8x512xf32>
    %cst_29 = arith.constant 0.000000e+00 : f32
    %94 = vector.broadcast %cst_29 : f32 to vector<8x512xf32>
    %95 = arith.maximumf %93, %94 : vector<8x512xf32>
    %c0_30 = arith.constant 0 : index
    %c0_31 = arith.constant 0 : index
    %96 = vector.load %arg12[%c0_30, %c0_31] : memref<8x72xf32, #tpu.memory_space<vmem>>, vector<8x72xf32>
    %c0_32 = arith.constant 0 : index
    %c0_33 = arith.constant 0 : index
    %97 = vector.load %arg13[%c0_32, %c0_33] : memref<8x1xf32, #tpu.memory_space<vmem>>, vector<8x1xf32>
    %c17_i32_34 = arith.constant 17 : i32
    %98 = tpu.dynamic_rotate %95 by %c17_i32_34 dim 1 : vector<8x512xf32>, i32 -> vector<8x512xf32>
    %99 = vector.extract_strided_slice %0 {offsets = [0, 0], sizes = [1, 512], strides = [1, 1]} : vector<9x512xf32> to vector<1x512xf32>
    %100 = vector.broadcast %99 : vector<1x512xf32> to vector<8x512xf32>
    %101 = arith.mulf %98, %100 : vector<8x512xf32>
    %c16_i32_35 = arith.constant 16 : i32
    %102 = tpu.dynamic_rotate %95 by %c16_i32_35 dim 1 : vector<8x512xf32>, i32 -> vector<8x512xf32>
    %103 = vector.extract_strided_slice %0 {offsets = [1, 0], sizes = [1, 512], strides = [1, 1]} : vector<9x512xf32> to vector<1x512xf32>
    %104 = vector.broadcast %103 : vector<1x512xf32> to vector<8x512xf32>
    %105 = arith.mulf %102, %104 : vector<8x512xf32>
    %c15_i32_36 = arith.constant 15 : i32
    %106 = tpu.dynamic_rotate %95 by %c15_i32_36 dim 1 : vector<8x512xf32>, i32 -> vector<8x512xf32>
    %107 = vector.extract_strided_slice %0 {offsets = [2, 0], sizes = [1, 512], strides = [1, 1]} : vector<9x512xf32> to vector<1x512xf32>
    %108 = vector.broadcast %107 : vector<1x512xf32> to vector<8x512xf32>
    %109 = arith.mulf %106, %108 : vector<8x512xf32>
    %c1_i32_37 = arith.constant 1 : i32
    %110 = tpu.dynamic_rotate %95 by %c1_i32_37 dim 1 : vector<8x512xf32>, i32 -> vector<8x512xf32>
    %111 = vector.extract_strided_slice %0 {offsets = [3, 0], sizes = [1, 512], strides = [1, 1]} : vector<9x512xf32> to vector<1x512xf32>
    %112 = vector.broadcast %111 : vector<1x512xf32> to vector<8x512xf32>
    %113 = arith.mulf %110, %112 : vector<8x512xf32>
    %114 = vector.extract_strided_slice %0 {offsets = [4, 0], sizes = [1, 512], strides = [1, 1]} : vector<9x512xf32> to vector<1x512xf32>
    %115 = vector.broadcast %114 : vector<1x512xf32> to vector<8x512xf32>
    %116 = arith.mulf %95, %115 : vector<8x512xf32>
    %c511_i32_38 = arith.constant 511 : i32
    %117 = tpu.dynamic_rotate %95 by %c511_i32_38 dim 1 : vector<8x512xf32>, i32 -> vector<8x512xf32>
    %118 = vector.extract_strided_slice %0 {offsets = [5, 0], sizes = [1, 512], strides = [1, 1]} : vector<9x512xf32> to vector<1x512xf32>
    %119 = vector.broadcast %118 : vector<1x512xf32> to vector<8x512xf32>
    %120 = arith.mulf %117, %119 : vector<8x512xf32>
    %c497_i32_39 = arith.constant 497 : i32
    %121 = tpu.dynamic_rotate %95 by %c497_i32_39 dim 1 : vector<8x512xf32>, i32 -> vector<8x512xf32>
    %122 = vector.extract_strided_slice %0 {offsets = [6, 0], sizes = [1, 512], strides = [1, 1]} : vector<9x512xf32> to vector<1x512xf32>
    %123 = vector.broadcast %122 : vector<1x512xf32> to vector<8x512xf32>
    %124 = arith.mulf %121, %123 : vector<8x512xf32>
    %c496_i32_40 = arith.constant 496 : i32
    %125 = tpu.dynamic_rotate %95 by %c496_i32_40 dim 1 : vector<8x512xf32>, i32 -> vector<8x512xf32>
    %126 = vector.extract_strided_slice %0 {offsets = [7, 0], sizes = [1, 512], strides = [1, 1]} : vector<9x512xf32> to vector<1x512xf32>
    %127 = vector.broadcast %126 : vector<1x512xf32> to vector<8x512xf32>
    %128 = arith.mulf %125, %127 : vector<8x512xf32>
    %c495_i32_41 = arith.constant 495 : i32
    %129 = tpu.dynamic_rotate %95 by %c495_i32_41 dim 1 : vector<8x512xf32>, i32 -> vector<8x512xf32>
    %130 = vector.extract_strided_slice %0 {offsets = [8, 0], sizes = [1, 512], strides = [1, 1]} : vector<9x512xf32> to vector<1x512xf32>
    %131 = vector.broadcast %130 : vector<1x512xf32> to vector<8x512xf32>
    %132 = arith.mulf %129, %131 : vector<8x512xf32>
    %133 = tpu.concatenate %101, %105, %109, %113, %116, %120, %124, %128, %132 in 0 : vector<8x512xf32>, vector<8x512xf32>, vector<8x512xf32>, vector<8x512xf32>, vector<8x512xf32>, vector<8x512xf32>, vector<8x512xf32>, vector<8x512xf32>, vector<8x512xf32> -> vector<72x512xf32>
    %cst_42 = arith.constant dense<0.000000e+00> : vector<8x512xf32>
    %134 = tpu.matmul %96, %133, %cst_42 {dimension_numbers = #tpu.dot_dimension_numbers<[1], [0], [0], [1], [0, 0, 1, 1], [], []>} : vector<8x72xf32>, vector<72x512xf32>, vector<8x512xf32> -> vector<8x512xf32>
    %135 = vector.broadcast %97 : vector<8x1xf32> to vector<8x512xf32>
    %136 = arith.addf %134, %135 : vector<8x512xf32>
    %137 = arith.addf %136, %52 : vector<8x512xf32>
    %cst_43 = arith.constant 0.000000e+00 : f32
    %138 = vector.broadcast %cst_43 : f32 to vector<8x512xf32>
    %139 = arith.maximumf %137, %138 : vector<8x512xf32>
    %c0_44 = arith.constant 0 : index
    %c0_45 = arith.constant 0 : index
    %140 = vector.load %arg14[%c0_44, %c0_45] : memref<8x72xf32, #tpu.memory_space<vmem>>, vector<8x72xf32>
    %c0_46 = arith.constant 0 : index
    %c0_47 = arith.constant 0 : index
    %141 = vector.load %arg15[%c0_46, %c0_47] : memref<8x1xf32, #tpu.memory_space<vmem>>, vector<8x1xf32>
    %c17_i32_48 = arith.constant 17 : i32
    %142 = tpu.dynamic_rotate %139 by %c17_i32_48 dim 1 : vector<8x512xf32>, i32 -> vector<8x512xf32>
    %143 = vector.extract_strided_slice %0 {offsets = [0, 0], sizes = [1, 512], strides = [1, 1]} : vector<9x512xf32> to vector<1x512xf32>
    %144 = vector.broadcast %143 : vector<1x512xf32> to vector<8x512xf32>
    %145 = arith.mulf %142, %144 : vector<8x512xf32>
    %c16_i32_49 = arith.constant 16 : i32
    %146 = tpu.dynamic_rotate %139 by %c16_i32_49 dim 1 : vector<8x512xf32>, i32 -> vector<8x512xf32>
    %147 = vector.extract_strided_slice %0 {offsets = [1, 0], sizes = [1, 512], strides = [1, 1]} : vector<9x512xf32> to vector<1x512xf32>
    %148 = vector.broadcast %147 : vector<1x512xf32> to vector<8x512xf32>
    %149 = arith.mulf %146, %148 : vector<8x512xf32>
    %c15_i32_50 = arith.constant 15 : i32
    %150 = tpu.dynamic_rotate %139 by %c15_i32_50 dim 1 : vector<8x512xf32>, i32 -> vector<8x512xf32>
    %151 = vector.extract_strided_slice %0 {offsets = [2, 0], sizes = [1, 512], strides = [1, 1]} : vector<9x512xf32> to vector<1x512xf32>
    %152 = vector.broadcast %151 : vector<1x512xf32> to vector<8x512xf32>
    %153 = arith.mulf %150, %152 : vector<8x512xf32>
    %c1_i32_51 = arith.constant 1 : i32
    %154 = tpu.dynamic_rotate %139 by %c1_i32_51 dim 1 : vector<8x512xf32>, i32 -> vector<8x512xf32>
    %155 = vector.extract_strided_slice %0 {offsets = [3, 0], sizes = [1, 512], strides = [1, 1]} : vector<9x512xf32> to vector<1x512xf32>
    %156 = vector.broadcast %155 : vector<1x512xf32> to vector<8x512xf32>
    %157 = arith.mulf %154, %156 : vector<8x512xf32>
    %158 = vector.extract_strided_slice %0 {offsets = [4, 0], sizes = [1, 512], strides = [1, 1]} : vector<9x512xf32> to vector<1x512xf32>
    %159 = vector.broadcast %158 : vector<1x512xf32> to vector<8x512xf32>
    %160 = arith.mulf %139, %159 : vector<8x512xf32>
    %c511_i32_52 = arith.constant 511 : i32
    %161 = tpu.dynamic_rotate %139 by %c511_i32_52 dim 1 : vector<8x512xf32>, i32 -> vector<8x512xf32>
    %162 = vector.extract_strided_slice %0 {offsets = [5, 0], sizes = [1, 512], strides = [1, 1]} : vector<9x512xf32> to vector<1x512xf32>
    %163 = vector.broadcast %162 : vector<1x512xf32> to vector<8x512xf32>
    %164 = arith.mulf %161, %163 : vector<8x512xf32>
    %c497_i32_53 = arith.constant 497 : i32
    %165 = tpu.dynamic_rotate %139 by %c497_i32_53 dim 1 : vector<8x512xf32>, i32 -> vector<8x512xf32>
    %166 = vector.extract_strided_slice %0 {offsets = [6, 0], sizes = [1, 512], strides = [1, 1]} : vector<9x512xf32> to vector<1x512xf32>
    %167 = vector.broadcast %166 : vector<1x512xf32> to vector<8x512xf32>
    %168 = arith.mulf %165, %167 : vector<8x512xf32>
    %c496_i32_54 = arith.constant 496 : i32
    %169 = tpu.dynamic_rotate %139 by %c496_i32_54 dim 1 : vector<8x512xf32>, i32 -> vector<8x512xf32>
    %170 = vector.extract_strided_slice %0 {offsets = [7, 0], sizes = [1, 512], strides = [1, 1]} : vector<9x512xf32> to vector<1x512xf32>
    %171 = vector.broadcast %170 : vector<1x512xf32> to vector<8x512xf32>
    %172 = arith.mulf %169, %171 : vector<8x512xf32>
    %c495_i32_55 = arith.constant 495 : i32
    %173 = tpu.dynamic_rotate %139 by %c495_i32_55 dim 1 : vector<8x512xf32>, i32 -> vector<8x512xf32>
    %174 = vector.extract_strided_slice %0 {offsets = [8, 0], sizes = [1, 512], strides = [1, 1]} : vector<9x512xf32> to vector<1x512xf32>
    %175 = vector.broadcast %174 : vector<1x512xf32> to vector<8x512xf32>
    %176 = arith.mulf %173, %175 : vector<8x512xf32>
    %177 = tpu.concatenate %145, %149, %153, %157, %160, %164, %168, %172, %176 in 0 : vector<8x512xf32>, vector<8x512xf32>, vector<8x512xf32>, vector<8x512xf32>, vector<8x512xf32>, vector<8x512xf32>, vector<8x512xf32>, vector<8x512xf32>, vector<8x512xf32> -> vector<72x512xf32>
    %cst_56 = arith.constant dense<0.000000e+00> : vector<8x512xf32>
    %178 = tpu.matmul %140, %177, %cst_56 {dimension_numbers = #tpu.dot_dimension_numbers<[1], [0], [0], [1], [0, 0, 1, 1], [], []>} : vector<8x72xf32>, vector<72x512xf32>, vector<8x512xf32> -> vector<8x512xf32>
    %179 = vector.broadcast %141 : vector<8x1xf32> to vector<8x512xf32>
    %180 = arith.addf %178, %179 : vector<8x512xf32>
    %cst_57 = arith.constant 0.000000e+00 : f32
    %181 = vector.broadcast %cst_57 : f32 to vector<8x512xf32>
    %182 = arith.maximumf %180, %181 : vector<8x512xf32>
    %c0_58 = arith.constant 0 : index
    %c0_59 = arith.constant 0 : index
    %183 = vector.load %arg16[%c0_58, %c0_59] : memref<8x72xf32, #tpu.memory_space<vmem>>, vector<8x72xf32>
    %c0_60 = arith.constant 0 : index
    %c0_61 = arith.constant 0 : index
    %184 = vector.load %arg17[%c0_60, %c0_61] : memref<8x1xf32, #tpu.memory_space<vmem>>, vector<8x1xf32>
    %c17_i32_62 = arith.constant 17 : i32
    %185 = tpu.dynamic_rotate %182 by %c17_i32_62 dim 1 : vector<8x512xf32>, i32 -> vector<8x512xf32>
    %186 = vector.extract_strided_slice %0 {offsets = [0, 0], sizes = [1, 512], strides = [1, 1]} : vector<9x512xf32> to vector<1x512xf32>
    %187 = vector.broadcast %186 : vector<1x512xf32> to vector<8x512xf32>
    %188 = arith.mulf %185, %187 : vector<8x512xf32>
    %c16_i32_63 = arith.constant 16 : i32
    %189 = tpu.dynamic_rotate %182 by %c16_i32_63 dim 1 : vector<8x512xf32>, i32 -> vector<8x512xf32>
    %190 = vector.extract_strided_slice %0 {offsets = [1, 0], sizes = [1, 512], strides = [1, 1]} : vector<9x512xf32> to vector<1x512xf32>
    %191 = vector.broadcast %190 : vector<1x512xf32> to vector<8x512xf32>
    %192 = arith.mulf %189, %191 : vector<8x512xf32>
    %c15_i32_64 = arith.constant 15 : i32
    %193 = tpu.dynamic_rotate %182 by %c15_i32_64 dim 1 : vector<8x512xf32>, i32 -> vector<8x512xf32>
    %194 = vector.extract_strided_slice %0 {offsets = [2, 0], sizes = [1, 512], strides = [1, 1]} : vector<9x512xf32> to vector<1x512xf32>
    %195 = vector.broadcast %194 : vector<1x512xf32> to vector<8x512xf32>
    %196 = arith.mulf %193, %195 : vector<8x512xf32>
    %c1_i32_65 = arith.constant 1 : i32
    %197 = tpu.dynamic_rotate %182 by %c1_i32_65 dim 1 : vector<8x512xf32>, i32 -> vector<8x512xf32>
    %198 = vector.extract_strided_slice %0 {offsets = [3, 0], sizes = [1, 512], strides = [1, 1]} : vector<9x512xf32> to vector<1x512xf32>
    %199 = vector.broadcast %198 : vector<1x512xf32> to vector<8x512xf32>
    %200 = arith.mulf %197, %199 : vector<8x512xf32>
    %201 = vector.extract_strided_slice %0 {offsets = [4, 0], sizes = [1, 512], strides = [1, 1]} : vector<9x512xf32> to vector<1x512xf32>
    %202 = vector.broadcast %201 : vector<1x512xf32> to vector<8x512xf32>
    %203 = arith.mulf %182, %202 : vector<8x512xf32>
    %c511_i32_66 = arith.constant 511 : i32
    %204 = tpu.dynamic_rotate %182 by %c511_i32_66 dim 1 : vector<8x512xf32>, i32 -> vector<8x512xf32>
    %205 = vector.extract_strided_slice %0 {offsets = [5, 0], sizes = [1, 512], strides = [1, 1]} : vector<9x512xf32> to vector<1x512xf32>
    %206 = vector.broadcast %205 : vector<1x512xf32> to vector<8x512xf32>
    %207 = arith.mulf %204, %206 : vector<8x512xf32>
    %c497_i32_67 = arith.constant 497 : i32
    %208 = tpu.dynamic_rotate %182 by %c497_i32_67 dim 1 : vector<8x512xf32>, i32 -> vector<8x512xf32>
    %209 = vector.extract_strided_slice %0 {offsets = [6, 0], sizes = [1, 512], strides = [1, 1]} : vector<9x512xf32> to vector<1x512xf32>
    %210 = vector.broadcast %209 : vector<1x512xf32> to vector<8x512xf32>
    %211 = arith.mulf %208, %210 : vector<8x512xf32>
    %c496_i32_68 = arith.constant 496 : i32
    %212 = tpu.dynamic_rotate %182 by %c496_i32_68 dim 1 : vector<8x512xf32>, i32 -> vector<8x512xf32>
    %213 = vector.extract_strided_slice %0 {offsets = [7, 0], sizes = [1, 512], strides = [1, 1]} : vector<9x512xf32> to vector<1x512xf32>
    %214 = vector.broadcast %213 : vector<1x512xf32> to vector<8x512xf32>
    %215 = arith.mulf %212, %214 : vector<8x512xf32>
    %c495_i32_69 = arith.constant 495 : i32
    %216 = tpu.dynamic_rotate %182 by %c495_i32_69 dim 1 : vector<8x512xf32>, i32 -> vector<8x512xf32>
    %217 = vector.extract_strided_slice %0 {offsets = [8, 0], sizes = [1, 512], strides = [1, 1]} : vector<9x512xf32> to vector<1x512xf32>
    %218 = vector.broadcast %217 : vector<1x512xf32> to vector<8x512xf32>
    %219 = arith.mulf %216, %218 : vector<8x512xf32>
    %220 = tpu.concatenate %188, %192, %196, %200, %203, %207, %211, %215, %219 in 0 : vector<8x512xf32>, vector<8x512xf32>, vector<8x512xf32>, vector<8x512xf32>, vector<8x512xf32>, vector<8x512xf32>, vector<8x512xf32>, vector<8x512xf32>, vector<8x512xf32> -> vector<72x512xf32>
    %cst_70 = arith.constant dense<0.000000e+00> : vector<8x512xf32>
    %221 = tpu.matmul %183, %220, %cst_70 {dimension_numbers = #tpu.dot_dimension_numbers<[1], [0], [0], [1], [0, 0, 1, 1], [], []>} : vector<8x72xf32>, vector<72x512xf32>, vector<8x512xf32> -> vector<8x512xf32>
    %222 = vector.broadcast %184 : vector<8x1xf32> to vector<8x512xf32>
    %223 = arith.addf %221, %222 : vector<8x512xf32>
    %224 = arith.addf %223, %139 : vector<8x512xf32>
    %cst_71 = arith.constant 0.000000e+00 : f32
    %225 = vector.broadcast %cst_71 : f32 to vector<8x512xf32>
    %226 = arith.maximumf %224, %225 : vector<8x512xf32>
    %c0_72 = arith.constant 0 : index
    %c0_73 = arith.constant 0 : index
    %227 = vector.load %arg18[%c0_72, %c0_73] : memref<16x8xf32, #tpu.memory_space<vmem>>, vector<16x8xf32>
    %c0_74 = arith.constant 0 : index
    %c0_75 = arith.constant 0 : index
    %228 = vector.load %arg19[%c0_74, %c0_75] : memref<16x1xf32, #tpu.memory_space<vmem>>, vector<16x1xf32>
    %cst_76 = arith.constant dense<0.000000e+00> : vector<8x128xf32>
    %229 = tpu.matmul %226, %2, %cst_76 {dimension_numbers = #tpu.dot_dimension_numbers<[1], [0], [0], [1], [0, 0, 1, 1], [], []>} : vector<8x512xf32>, vector<512x128xf32>, vector<8x128xf32> -> vector<8x128xf32>
    %cst_77 = arith.constant dense<0.000000e+00> : vector<16x128xf32>
    %230 = tpu.matmul %227, %229, %cst_77 {dimension_numbers = #tpu.dot_dimension_numbers<[1], [0], [0], [1], [0, 0, 1, 1], [], []>} : vector<16x8xf32>, vector<8x128xf32>, vector<16x128xf32> -> vector<16x128xf32>
    %231 = vector.broadcast %228 : vector<16x1xf32> to vector<16x128xf32>
    %232 = arith.addf %230, %231 : vector<16x128xf32>
    %c0_78 = arith.constant 0 : index
    %c0_79 = arith.constant 0 : index
    %233 = vector.load %arg20[%c0_78, %c0_79] : memref<16x72xf32, #tpu.memory_space<vmem>>, vector<16x72xf32>
    %c0_80 = arith.constant 0 : index
    %c0_81 = arith.constant 0 : index
    %234 = vector.load %arg21[%c0_80, %c0_81] : memref<16x1xf32, #tpu.memory_space<vmem>>, vector<16x1xf32>
    %c17_i32_82 = arith.constant 17 : i32
    %235 = tpu.dynamic_rotate %226 by %c17_i32_82 dim 1 : vector<8x512xf32>, i32 -> vector<8x512xf32>
    %236 = vector.extract_strided_slice %0 {offsets = [0, 0], sizes = [1, 512], strides = [1, 1]} : vector<9x512xf32> to vector<1x512xf32>
    %237 = vector.broadcast %236 : vector<1x512xf32> to vector<8x512xf32>
    %238 = arith.mulf %235, %237 : vector<8x512xf32>
    %c16_i32_83 = arith.constant 16 : i32
    %239 = tpu.dynamic_rotate %226 by %c16_i32_83 dim 1 : vector<8x512xf32>, i32 -> vector<8x512xf32>
    %240 = vector.extract_strided_slice %0 {offsets = [1, 0], sizes = [1, 512], strides = [1, 1]} : vector<9x512xf32> to vector<1x512xf32>
    %241 = vector.broadcast %240 : vector<1x512xf32> to vector<8x512xf32>
    %242 = arith.mulf %239, %241 : vector<8x512xf32>
    %c15_i32_84 = arith.constant 15 : i32
    %243 = tpu.dynamic_rotate %226 by %c15_i32_84 dim 1 : vector<8x512xf32>, i32 -> vector<8x512xf32>
    %244 = vector.extract_strided_slice %0 {offsets = [2, 0], sizes = [1, 512], strides = [1, 1]} : vector<9x512xf32> to vector<1x512xf32>
    %245 = vector.broadcast %244 : vector<1x512xf32> to vector<8x512xf32>
    %246 = arith.mulf %243, %245 : vector<8x512xf32>
    %c1_i32_85 = arith.constant 1 : i32
    %247 = tpu.dynamic_rotate %226 by %c1_i32_85 dim 1 : vector<8x512xf32>, i32 -> vector<8x512xf32>
    %248 = vector.extract_strided_slice %0 {offsets = [3, 0], sizes = [1, 512], strides = [1, 1]} : vector<9x512xf32> to vector<1x512xf32>
    %249 = vector.broadcast %248 : vector<1x512xf32> to vector<8x512xf32>
    %250 = arith.mulf %247, %249 : vector<8x512xf32>
    %251 = vector.extract_strided_slice %0 {offsets = [4, 0], sizes = [1, 512], strides = [1, 1]} : vector<9x512xf32> to vector<1x512xf32>
    %252 = vector.broadcast %251 : vector<1x512xf32> to vector<8x512xf32>
    %253 = arith.mulf %226, %252 : vector<8x512xf32>
    %c511_i32_86 = arith.constant 511 : i32
    %254 = tpu.dynamic_rotate %226 by %c511_i32_86 dim 1 : vector<8x512xf32>, i32 -> vector<8x512xf32>
    %255 = vector.extract_strided_slice %0 {offsets = [5, 0], sizes = [1, 512], strides = [1, 1]} : vector<9x512xf32> to vector<1x512xf32>
    %256 = vector.broadcast %255 : vector<1x512xf32> to vector<8x512xf32>
    %257 = arith.mulf %254, %256 : vector<8x512xf32>
    %c497_i32_87 = arith.constant 497 : i32
    %258 = tpu.dynamic_rotate %226 by %c497_i32_87 dim 1 : vector<8x512xf32>, i32 -> vector<8x512xf32>
    %259 = vector.extract_strided_slice %0 {offsets = [6, 0], sizes = [1, 512], strides = [1, 1]} : vector<9x512xf32> to vector<1x512xf32>
    %260 = vector.broadcast %259 : vector<1x512xf32> to vector<8x512xf32>
    %261 = arith.mulf %258, %260 : vector<8x512xf32>
    %c496_i32_88 = arith.constant 496 : i32
    %262 = tpu.dynamic_rotate %226 by %c496_i32_88 dim 1 : vector<8x512xf32>, i32 -> vector<8x512xf32>
    %263 = vector.extract_strided_slice %0 {offsets = [7, 0], sizes = [1, 512], strides = [1, 1]} : vector<9x512xf32> to vector<1x512xf32>
    %264 = vector.broadcast %263 : vector<1x512xf32> to vector<8x512xf32>
    %265 = arith.mulf %262, %264 : vector<8x512xf32>
    %c495_i32_89 = arith.constant 495 : i32
    %266 = tpu.dynamic_rotate %226 by %c495_i32_89 dim 1 : vector<8x512xf32>, i32 -> vector<8x512xf32>
    %267 = vector.extract_strided_slice %0 {offsets = [8, 0], sizes = [1, 512], strides = [1, 1]} : vector<9x512xf32> to vector<1x512xf32>
    %268 = vector.broadcast %267 : vector<1x512xf32> to vector<8x512xf32>
    %269 = arith.mulf %266, %268 : vector<8x512xf32>
    %270 = tpu.concatenate %238, %242, %246, %250, %253, %257, %261, %265, %269 in 0 : vector<8x512xf32>, vector<8x512xf32>, vector<8x512xf32>, vector<8x512xf32>, vector<8x512xf32>, vector<8x512xf32>, vector<8x512xf32>, vector<8x512xf32>, vector<8x512xf32> -> vector<72x512xf32>
    %cst_90 = arith.constant dense<0.000000e+00> : vector<16x512xf32>
    %271 = tpu.matmul %233, %270, %cst_90 {dimension_numbers = #tpu.dot_dimension_numbers<[1], [0], [0], [1], [0, 0, 1, 1], [], []>} : vector<16x72xf32>, vector<72x512xf32>, vector<16x512xf32> -> vector<16x512xf32>
    %272 = vector.broadcast %234 : vector<16x1xf32> to vector<16x512xf32>
    %273 = arith.addf %271, %272 : vector<16x512xf32>
    %cst_91 = arith.constant 0.000000e+00 : f32
    %274 = vector.broadcast %cst_91 : f32 to vector<16x512xf32>
    %275 = arith.maximumf %273, %274 : vector<16x512xf32>
    %cst_92 = arith.constant dense<0.000000e+00> : vector<16x128xf32>
    %276 = tpu.matmul %275, %2, %cst_92 {dimension_numbers = #tpu.dot_dimension_numbers<[1], [0], [0], [1], [0, 0, 1, 1], [], []>} : vector<16x512xf32>, vector<512x128xf32>, vector<16x128xf32> -> vector<16x128xf32>
    %c0_93 = arith.constant 0 : index
    %c0_94 = arith.constant 0 : index
    %277 = vector.load %arg22[%c0_93, %c0_94] : memref<16x144xf32, #tpu.memory_space<vmem>>, vector<16x144xf32>
    %c0_95 = arith.constant 0 : index
    %c0_96 = arith.constant 0 : index
    %278 = vector.load %arg23[%c0_95, %c0_96] : memref<16x1xf32, #tpu.memory_space<vmem>>, vector<16x1xf32>
    %c9_i32 = arith.constant 9 : i32
    %279 = tpu.dynamic_rotate %276 by %c9_i32 dim 1 : vector<16x128xf32>, i32 -> vector<16x128xf32>
    %280 = vector.extract_strided_slice %1 {offsets = [0, 0], sizes = [1, 128], strides = [1, 1]} : vector<9x128xf32> to vector<1x128xf32>
    %281 = vector.broadcast %280 : vector<1x128xf32> to vector<16x128xf32>
    %282 = arith.mulf %279, %281 : vector<16x128xf32>
    %c8_i32 = arith.constant 8 : i32
    %283 = tpu.dynamic_rotate %276 by %c8_i32 dim 1 : vector<16x128xf32>, i32 -> vector<16x128xf32>
    %284 = vector.extract_strided_slice %1 {offsets = [1, 0], sizes = [1, 128], strides = [1, 1]} : vector<9x128xf32> to vector<1x128xf32>
    %285 = vector.broadcast %284 : vector<1x128xf32> to vector<16x128xf32>
    %286 = arith.mulf %283, %285 : vector<16x128xf32>
    %c7_i32 = arith.constant 7 : i32
    %287 = tpu.dynamic_rotate %276 by %c7_i32 dim 1 : vector<16x128xf32>, i32 -> vector<16x128xf32>
    %288 = vector.extract_strided_slice %1 {offsets = [2, 0], sizes = [1, 128], strides = [1, 1]} : vector<9x128xf32> to vector<1x128xf32>
    %289 = vector.broadcast %288 : vector<1x128xf32> to vector<16x128xf32>
    %290 = arith.mulf %287, %289 : vector<16x128xf32>
    %c1_i32_97 = arith.constant 1 : i32
    %291 = tpu.dynamic_rotate %276 by %c1_i32_97 dim 1 : vector<16x128xf32>, i32 -> vector<16x128xf32>
    %292 = vector.extract_strided_slice %1 {offsets = [3, 0], sizes = [1, 128], strides = [1, 1]} : vector<9x128xf32> to vector<1x128xf32>
    %293 = vector.broadcast %292 : vector<1x128xf32> to vector<16x128xf32>
    %294 = arith.mulf %291, %293 : vector<16x128xf32>
    %295 = vector.extract_strided_slice %1 {offsets = [4, 0], sizes = [1, 128], strides = [1, 1]} : vector<9x128xf32> to vector<1x128xf32>
    %296 = vector.broadcast %295 : vector<1x128xf32> to vector<16x128xf32>
    %297 = arith.mulf %276, %296 : vector<16x128xf32>
    %c127_i32 = arith.constant 127 : i32
    %298 = tpu.dynamic_rotate %276 by %c127_i32 dim 1 : vector<16x128xf32>, i32 -> vector<16x128xf32>
    %299 = vector.extract_strided_slice %1 {offsets = [5, 0], sizes = [1, 128], strides = [1, 1]} : vector<9x128xf32> to vector<1x128xf32>
    %300 = vector.broadcast %299 : vector<1x128xf32> to vector<16x128xf32>
    %301 = arith.mulf %298, %300 : vector<16x128xf32>
    %c121_i32 = arith.constant 121 : i32
    %302 = tpu.dynamic_rotate %276 by %c121_i32 dim 1 : vector<16x128xf32>, i32 -> vector<16x128xf32>
    %303 = vector.extract_strided_slice %1 {offsets = [6, 0], sizes = [1, 128], strides = [1, 1]} : vector<9x128xf32> to vector<1x128xf32>
    %304 = vector.broadcast %303 : vector<1x128xf32> to vector<16x128xf32>
    %305 = arith.mulf %302, %304 : vector<16x128xf32>
    %c120_i32 = arith.constant 120 : i32
    %306 = tpu.dynamic_rotate %276 by %c120_i32 dim 1 : vector<16x128xf32>, i32 -> vector<16x128xf32>
    %307 = vector.extract_strided_slice %1 {offsets = [7, 0], sizes = [1, 128], strides = [1, 1]} : vector<9x128xf32> to vector<1x128xf32>
    %308 = vector.broadcast %307 : vector<1x128xf32> to vector<16x128xf32>
    %309 = arith.mulf %306, %308 : vector<16x128xf32>
    %c119_i32 = arith.constant 119 : i32
    %310 = tpu.dynamic_rotate %276 by %c119_i32 dim 1 : vector<16x128xf32>, i32 -> vector<16x128xf32>
    %311 = vector.extract_strided_slice %1 {offsets = [8, 0], sizes = [1, 128], strides = [1, 1]} : vector<9x128xf32> to vector<1x128xf32>
    %312 = vector.broadcast %311 : vector<1x128xf32> to vector<16x128xf32>
    %313 = arith.mulf %310, %312 : vector<16x128xf32>
    %314 = tpu.concatenate %282, %286, %290, %294, %297, %301, %305, %309, %313 in 0 : vector<16x128xf32>, vector<16x128xf32>, vector<16x128xf32>, vector<16x128xf32>, vector<16x128xf32>, vector<16x128xf32>, vector<16x128xf32>, vector<16x128xf32>, vector<16x128xf32> -> vector<144x128xf32>
    %cst_98 = arith.constant dense<0.000000e+00> : vector<16x128xf32>
    %315 = tpu.matmul %277, %314, %cst_98 {dimension_numbers = #tpu.dot_dimension_numbers<[1], [0], [0], [1], [0, 0, 1, 1], [], []>} : vector<16x144xf32>, vector<144x128xf32>, vector<16x128xf32> -> vector<16x128xf32>
    %316 = vector.broadcast %278 : vector<16x1xf32> to vector<16x128xf32>
    %317 = arith.addf %315, %316 : vector<16x128xf32>
    %318 = arith.addf %317, %232 : vector<16x128xf32>
    %cst_99 = arith.constant 0.000000e+00 : f32
    %319 = vector.broadcast %cst_99 : f32 to vector<16x128xf32>
    %320 = arith.maximumf %318, %319 : vector<16x128xf32>
    %c0_100 = arith.constant 0 : index
    %c0_101 = arith.constant 0 : index
    %321 = vector.load %arg24[%c0_100, %c0_101] : memref<16x144xf32, #tpu.memory_space<vmem>>, vector<16x144xf32>
    %c0_102 = arith.constant 0 : index
    %c0_103 = arith.constant 0 : index
    %322 = vector.load %arg25[%c0_102, %c0_103] : memref<16x1xf32, #tpu.memory_space<vmem>>, vector<16x1xf32>
    %c9_i32_104 = arith.constant 9 : i32
    %323 = tpu.dynamic_rotate %320 by %c9_i32_104 dim 1 : vector<16x128xf32>, i32 -> vector<16x128xf32>
    %324 = vector.extract_strided_slice %1 {offsets = [0, 0], sizes = [1, 128], strides = [1, 1]} : vector<9x128xf32> to vector<1x128xf32>
    %325 = vector.broadcast %324 : vector<1x128xf32> to vector<16x128xf32>
    %326 = arith.mulf %323, %325 : vector<16x128xf32>
    %c8_i32_105 = arith.constant 8 : i32
    %327 = tpu.dynamic_rotate %320 by %c8_i32_105 dim 1 : vector<16x128xf32>, i32 -> vector<16x128xf32>
    %328 = vector.extract_strided_slice %1 {offsets = [1, 0], sizes = [1, 128], strides = [1, 1]} : vector<9x128xf32> to vector<1x128xf32>
    %329 = vector.broadcast %328 : vector<1x128xf32> to vector<16x128xf32>
    %330 = arith.mulf %327, %329 : vector<16x128xf32>
    %c7_i32_106 = arith.constant 7 : i32
    %331 = tpu.dynamic_rotate %320 by %c7_i32_106 dim 1 : vector<16x128xf32>, i32 -> vector<16x128xf32>
    %332 = vector.extract_strided_slice %1 {offsets = [2, 0], sizes = [1, 128], strides = [1, 1]} : vector<9x128xf32> to vector<1x128xf32>
    %333 = vector.broadcast %332 : vector<1x128xf32> to vector<16x128xf32>
    %334 = arith.mulf %331, %333 : vector<16x128xf32>
    %c1_i32_107 = arith.constant 1 : i32
    %335 = tpu.dynamic_rotate %320 by %c1_i32_107 dim 1 : vector<16x128xf32>, i32 -> vector<16x128xf32>
    %336 = vector.extract_strided_slice %1 {offsets = [3, 0], sizes = [1, 128], strides = [1, 1]} : vector<9x128xf32> to vector<1x128xf32>
    %337 = vector.broadcast %336 : vector<1x128xf32> to vector<16x128xf32>
    %338 = arith.mulf %335, %337 : vector<16x128xf32>
    %339 = vector.extract_strided_slice %1 {offsets = [4, 0], sizes = [1, 128], strides = [1, 1]} : vector<9x128xf32> to vector<1x128xf32>
    %340 = vector.broadcast %339 : vector<1x128xf32> to vector<16x128xf32>
    %341 = arith.mulf %320, %340 : vector<16x128xf32>
    %c127_i32_108 = arith.constant 127 : i32
    %342 = tpu.dynamic_rotate %320 by %c127_i32_108 dim 1 : vector<16x128xf32>, i32 -> vector<16x128xf32>
    %343 = vector.extract_strided_slice %1 {offsets = [5, 0], sizes = [1, 128], strides = [1, 1]} : vector<9x128xf32> to vector<1x128xf32>
    %344 = vector.broadcast %343 : vector<1x128xf32> to vector<16x128xf32>
    %345 = arith.mulf %342, %344 : vector<16x128xf32>
    %c121_i32_109 = arith.constant 121 : i32
    %346 = tpu.dynamic_rotate %320 by %c121_i32_109 dim 1 : vector<16x128xf32>, i32 -> vector<16x128xf32>
    %347 = vector.extract_strided_slice %1 {offsets = [6, 0], sizes = [1, 128], strides = [1, 1]} : vector<9x128xf32> to vector<1x128xf32>
    %348 = vector.broadcast %347 : vector<1x128xf32> to vector<16x128xf32>
    %349 = arith.mulf %346, %348 : vector<16x128xf32>
    %c120_i32_110 = arith.constant 120 : i32
    %350 = tpu.dynamic_rotate %320 by %c120_i32_110 dim 1 : vector<16x128xf32>, i32 -> vector<16x128xf32>
    %351 = vector.extract_strided_slice %1 {offsets = [7, 0], sizes = [1, 128], strides = [1, 1]} : vector<9x128xf32> to vector<1x128xf32>
    %352 = vector.broadcast %351 : vector<1x128xf32> to vector<16x128xf32>
    %353 = arith.mulf %350, %352 : vector<16x128xf32>
    %c119_i32_111 = arith.constant 119 : i32
    %354 = tpu.dynamic_rotate %320 by %c119_i32_111 dim 1 : vector<16x128xf32>, i32 -> vector<16x128xf32>
    %355 = vector.extract_strided_slice %1 {offsets = [8, 0], sizes = [1, 128], strides = [1, 1]} : vector<9x128xf32> to vector<1x128xf32>
    %356 = vector.broadcast %355 : vector<1x128xf32> to vector<16x128xf32>
    %357 = arith.mulf %354, %356 : vector<16x128xf32>
    %358 = tpu.concatenate %326, %330, %334, %338, %341, %345, %349, %353, %357 in 0 : vector<16x128xf32>, vector<16x128xf32>, vector<16x128xf32>, vector<16x128xf32>, vector<16x128xf32>, vector<16x128xf32>, vector<16x128xf32>, vector<16x128xf32>, vector<16x128xf32> -> vector<144x128xf32>
    %cst_112 = arith.constant dense<0.000000e+00> : vector<16x128xf32>
    %359 = tpu.matmul %321, %358, %cst_112 {dimension_numbers = #tpu.dot_dimension_numbers<[1], [0], [0], [1], [0, 0, 1, 1], [], []>} : vector<16x144xf32>, vector<144x128xf32>, vector<16x128xf32> -> vector<16x128xf32>
    %360 = vector.broadcast %322 : vector<16x1xf32> to vector<16x128xf32>
    %361 = arith.addf %359, %360 : vector<16x128xf32>
    %cst_113 = arith.constant 0.000000e+00 : f32
    %362 = vector.broadcast %cst_113 : f32 to vector<16x128xf32>
    %363 = arith.maximumf %361, %362 : vector<16x128xf32>
    %c0_114 = arith.constant 0 : index
    %c0_115 = arith.constant 0 : index
    %364 = vector.load %arg26[%c0_114, %c0_115] : memref<16x144xf32, #tpu.memory_space<vmem>>, vector<16x144xf32>
    %c0_116 = arith.constant 0 : index
    %c0_117 = arith.constant 0 : index
    %365 = vector.load %arg27[%c0_116, %c0_117] : memref<16x1xf32, #tpu.memory_space<vmem>>, vector<16x1xf32>
    %c9_i32_118 = arith.constant 9 : i32
    %366 = tpu.dynamic_rotate %363 by %c9_i32_118 dim 1 : vector<16x128xf32>, i32 -> vector<16x128xf32>
    %367 = vector.extract_strided_slice %1 {offsets = [0, 0], sizes = [1, 128], strides = [1, 1]} : vector<9x128xf32> to vector<1x128xf32>
    %368 = vector.broadcast %367 : vector<1x128xf32> to vector<16x128xf32>
    %369 = arith.mulf %366, %368 : vector<16x128xf32>
    %c8_i32_119 = arith.constant 8 : i32
    %370 = tpu.dynamic_rotate %363 by %c8_i32_119 dim 1 : vector<16x128xf32>, i32 -> vector<16x128xf32>
    %371 = vector.extract_strided_slice %1 {offsets = [1, 0], sizes = [1, 128], strides = [1, 1]} : vector<9x128xf32> to vector<1x128xf32>
    %372 = vector.broadcast %371 : vector<1x128xf32> to vector<16x128xf32>
    %373 = arith.mulf %370, %372 : vector<16x128xf32>
    %c7_i32_120 = arith.constant 7 : i32
    %374 = tpu.dynamic_rotate %363 by %c7_i32_120 dim 1 : vector<16x128xf32>, i32 -> vector<16x128xf32>
    %375 = vector.extract_strided_slice %1 {offsets = [2, 0], sizes = [1, 128], strides = [1, 1]} : vector<9x128xf32> to vector<1x128xf32>
    %376 = vector.broadcast %375 : vector<1x128xf32> to vector<16x128xf32>
    %377 = arith.mulf %374, %376 : vector<16x128xf32>
    %c1_i32_121 = arith.constant 1 : i32
    %378 = tpu.dynamic_rotate %363 by %c1_i32_121 dim 1 : vector<16x128xf32>, i32 -> vector<16x128xf32>
    %379 = vector.extract_strided_slice %1 {offsets = [3, 0], sizes = [1, 128], strides = [1, 1]} : vector<9x128xf32> to vector<1x128xf32>
    %380 = vector.broadcast %379 : vector<1x128xf32> to vector<16x128xf32>
    %381 = arith.mulf %378, %380 : vector<16x128xf32>
    %382 = vector.extract_strided_slice %1 {offsets = [4, 0], sizes = [1, 128], strides = [1, 1]} : vector<9x128xf32> to vector<1x128xf32>
    %383 = vector.broadcast %382 : vector<1x128xf32> to vector<16x128xf32>
    %384 = arith.mulf %363, %383 : vector<16x128xf32>
    %c127_i32_122 = arith.constant 127 : i32
    %385 = tpu.dynamic_rotate %363 by %c127_i32_122 dim 1 : vector<16x128xf32>, i32 -> vector<16x128xf32>
    %386 = vector.extract_strided_slice %1 {offsets = [5, 0], sizes = [1, 128], strides = [1, 1]} : vector<9x128xf32> to vector<1x128xf32>
    %387 = vector.broadcast %386 : vector<1x128xf32> to vector<16x128xf32>
    %388 = arith.mulf %385, %387 : vector<16x128xf32>
    %c121_i32_123 = arith.constant 121 : i32
    %389 = tpu.dynamic_rotate %363 by %c121_i32_123 dim 1 : vector<16x128xf32>, i32 -> vector<16x128xf32>
    %390 = vector.extract_strided_slice %1 {offsets = [6, 0], sizes = [1, 128], strides = [1, 1]} : vector<9x128xf32> to vector<1x128xf32>
    %391 = vector.broadcast %390 : vector<1x128xf32> to vector<16x128xf32>
    %392 = arith.mulf %389, %391 : vector<16x128xf32>
    %c120_i32_124 = arith.constant 120 : i32
    %393 = tpu.dynamic_rotate %363 by %c120_i32_124 dim 1 : vector<16x128xf32>, i32 -> vector<16x128xf32>
    %394 = vector.extract_strided_slice %1 {offsets = [7, 0], sizes = [1, 128], strides = [1, 1]} : vector<9x128xf32> to vector<1x128xf32>
    %395 = vector.broadcast %394 : vector<1x128xf32> to vector<16x128xf32>
    %396 = arith.mulf %393, %395 : vector<16x128xf32>
    %c119_i32_125 = arith.constant 119 : i32
    %397 = tpu.dynamic_rotate %363 by %c119_i32_125 dim 1 : vector<16x128xf32>, i32 -> vector<16x128xf32>
    %398 = vector.extract_strided_slice %1 {offsets = [8, 0], sizes = [1, 128], strides = [1, 1]} : vector<9x128xf32> to vector<1x128xf32>
    %399 = vector.broadcast %398 : vector<1x128xf32> to vector<16x128xf32>
    %400 = arith.mulf %397, %399 : vector<16x128xf32>
    %401 = tpu.concatenate %369, %373, %377, %381, %384, %388, %392, %396, %400 in 0 : vector<16x128xf32>, vector<16x128xf32>, vector<16x128xf32>, vector<16x128xf32>, vector<16x128xf32>, vector<16x128xf32>, vector<16x128xf32>, vector<16x128xf32>, vector<16x128xf32> -> vector<144x128xf32>
    %cst_126 = arith.constant dense<0.000000e+00> : vector<16x128xf32>
    %402 = tpu.matmul %364, %401, %cst_126 {dimension_numbers = #tpu.dot_dimension_numbers<[1], [0], [0], [1], [0, 0, 1, 1], [], []>} : vector<16x144xf32>, vector<144x128xf32>, vector<16x128xf32> -> vector<16x128xf32>
    %403 = vector.broadcast %365 : vector<16x1xf32> to vector<16x128xf32>
    %404 = arith.addf %402, %403 : vector<16x128xf32>
    %405 = arith.addf %404, %320 : vector<16x128xf32>
    %cst_127 = arith.constant 0.000000e+00 : f32
    %406 = vector.broadcast %cst_127 : f32 to vector<16x128xf32>
    %407 = arith.maximumf %405, %406 : vector<16x128xf32>
    %c0_128 = arith.constant 0 : index
    %c0_129 = arith.constant 0 : index
    %408 = vector.load %arg5[%c0_128, %c0_129] : memref<128x128xf32, #tpu.memory_space<vmem>>, vector<128x128xf32>
    %cst_130 = arith.constant dense<0.000000e+00> : vector<16x128xf32>
    %409 = tpu.matmul %407, %408, %cst_130 {dimension_numbers = #tpu.dot_dimension_numbers<[1], [0], [0], [1], [0, 0, 1, 1], [], []>} : vector<16x128xf32>, vector<128x128xf32>, vector<16x128xf32> -> vector<16x128xf32>
    %c0_131 = arith.constant 0 : index
    %c0_132 = arith.constant 0 : index
    %410 = vector.load %arg28[%c0_131, %c0_132] : memref<128x16xf32, #tpu.memory_space<vmem>>, vector<128x16xf32>
    %c0_133 = arith.constant 0 : index
    %c0_134 = arith.constant 0 : index
    %411 = vector.load %arg29[%c0_133, %c0_134] : memref<128x1xf32, #tpu.memory_space<vmem>>, vector<128x1xf32>
    %cst_135 = arith.constant dense<0.000000e+00> : vector<128x128xf32>
    %412 = tpu.matmul %410, %409, %cst_135 {dimension_numbers = #tpu.dot_dimension_numbers<[1], [0], [0], [1], [0, 0, 1, 1], [], []>} : vector<128x16xf32>, vector<16x128xf32>, vector<128x128xf32> -> vector<128x128xf32>
    %413 = vector.broadcast %411 : vector<128x1xf32> to vector<128x128xf32>
    %414 = arith.addf %412, %413 : vector<128x128xf32>
    %c0_136 = arith.constant 0 : index
    %c0_137 = arith.constant 0 : index
    %415 = vector.load %arg30[%c0_136, %c0_137] : memref<128x128xf32, #tpu.memory_space<vmem>>, vector<128x128xf32>
    tpu.vector_store %arg30[%c0_136, %c0_137], %414 {strides = array<i32>} : memref<128x128xf32, #tpu.memory_space<vmem>>, vector<128x128xf32>,
    return
  }
  func.func @transform_0(%arg0: i32) -> (i32, i32) {
    %c0_i32 = arith.constant 0 : i32
    %c0_i32_0 = arith.constant 0 : i32
    %c0_i32_1 = arith.constant 0 : i32
    return %c0_i32, %c0_i32_0 : i32, i32
  }
  func.func @transform_1(%arg0: i32) -> (i32, i32) {
    %c0_i32 = arith.constant 0 : i32
    %c0_i32_0 = arith.constant 0 : i32
    %c0_i32_1 = arith.constant 0 : i32
    return %c0_i32, %c0_i32_0 : i32, i32
  }
  func.func @transform_2(%arg0: i32) -> (i32, i32) {
    %c0_i32 = arith.constant 0 : i32
    %c0_i32_0 = arith.constant 0 : i32
    %c0_i32_1 = arith.constant 0 : i32
    return %c0_i32, %c0_i32_0 : i32, i32
  }
  func.func @transform_3(%arg0: i32) -> (i32, i32) {
    %c0_i32 = arith.constant 0 : i32
    %c0_i32_0 = arith.constant 0 : i32
    %c0_i32_1 = arith.constant 0 : i32
    return %c0_i32, %c0_i32_0 : i32, i32
  }
  func.func @transform_4(%arg0: i32) -> (i32, i32) {
    %c0_i32 = arith.constant 0 : i32
    %c0_i32_0 = arith.constant 0 : i32
    %c0_i32_1 = arith.constant 0 : i32
    return %c0_i32, %c0_i32_0 : i32, i32
  }
  func.func @transform_5(%arg0: i32) -> (i32, i32) {
    %c0_i32 = arith.constant 0 : i32
    %c0_i32_0 = arith.constant 0 : i32
    %c0_i32_1 = arith.constant 0 : i32
    return %c0_i32, %c0_i32_0 : i32, i32
  }
  func.func @transform_6(%arg0: i32) -> (i32, i32) {
    %c0_i32 = arith.constant 0 : i32
    %c0_i32_0 = arith.constant 0 : i32
    %c0_i32_1 = arith.constant 0 : i32
    return %c0_i32, %c0_i32_0 : i32, i32
  }
  func.func @transform_7(%arg0: i32) -> (i32, i32) {
    %c0_i32 = arith.constant 0 : i32
    %c0_i32_0 = arith.constant 0 : i32
    %c0_i32_1 = arith.constant 0 : i32
    return %c0_i32, %c0_i32_0 : i32, i32
  }
  func.func @transform_8(%arg0: i32) -> (i32, i32) {
    %c0_i32 = arith.constant 0 : i32
    %c0_i32_0 = arith.constant 0 : i32
    %c0_i32_1 = arith.constant 0 : i32
    return %c0_i32, %c0_i32_0 : i32, i32
  }
  func.func @transform_9(%arg0: i32) -> (i32, i32) {
    %c0_i32 = arith.constant 0 : i32
    %c0_i32_0 = arith.constant 0 : i32
    %c0_i32_1 = arith.constant 0 : i32
    return %c0_i32, %c0_i32_0 : i32, i32
  }
  func.func @transform_10(%arg0: i32) -> (i32, i32) {
    %c0_i32 = arith.constant 0 : i32
    %c0_i32_0 = arith.constant 0 : i32
    %c0_i32_1 = arith.constant 0 : i32
    return %c0_i32, %c0_i32_0 : i32, i32
  }
  func.func @transform_11(%arg0: i32) -> (i32, i32) {
    %c0_i32 = arith.constant 0 : i32
    %c0_i32_0 = arith.constant 0 : i32
    %c0_i32_1 = arith.constant 0 : i32
    return %c0_i32, %c0_i32_0 : i32, i32
  }
  func.func @transform_12(%arg0: i32) -> (i32, i32) {
    %c0_i32 = arith.constant 0 : i32
    %c0_i32_0 = arith.constant 0 : i32
    %c0_i32_1 = arith.constant 0 : i32
    return %c0_i32, %c0_i32_0 : i32, i32
  }
  func.func @transform_13(%arg0: i32) -> (i32, i32) {
    %c0_i32 = arith.constant 0 : i32
    %c0_i32_0 = arith.constant 0 : i32
    %c0_i32_1 = arith.constant 0 : i32
    return %c0_i32, %c0_i32_0 : i32, i32
  }
  func.func @transform_14(%arg0: i32) -> (i32, i32) {
    %c0_i32 = arith.constant 0 : i32
    %c0_i32_0 = arith.constant 0 : i32
    %c0_i32_1 = arith.constant 0 : i32
    return %c0_i32, %c0_i32_0 : i32, i32
  }
  func.func @transform_15(%arg0: i32) -> (i32, i32) {
    %c0_i32 = arith.constant 0 : i32
    %c0_i32_0 = arith.constant 0 : i32
    %c0_i32_1 = arith.constant 0 : i32
    return %c0_i32, %c0_i32_0 : i32, i32
  }
  func.func @transform_16(%arg0: i32) -> (i32, i32) {
    %c0_i32 = arith.constant 0 : i32
    %c0_i32_0 = arith.constant 0 : i32
    %c0_i32_1 = arith.constant 0 : i32
    return %c0_i32, %c0_i32_0 : i32, i32
  }
  func.func @transform_17(%arg0: i32) -> (i32, i32) {
    %c0_i32 = arith.constant 0 : i32
    %c0_i32_0 = arith.constant 0 : i32
    %c0_i32_1 = arith.constant 0 : i32
    return %c0_i32, %c0_i32_0 : i32, i32
  }
  func.func @transform_18(%arg0: i32) -> (i32, i32) {
    %c0_i32 = arith.constant 0 : i32
    %c0_i32_0 = arith.constant 0 : i32
    %c0_i32_1 = arith.constant 0 : i32
    return %c0_i32, %c0_i32_0 : i32, i32
  }
  func.func @transform_19(%arg0: i32) -> (i32, i32) {
    %c0_i32 = arith.constant 0 : i32
    %c0_i32_0 = arith.constant 0 : i32
    %c0_i32_1 = arith.constant 0 : i32
    return %c0_i32, %c0_i32_0 : i32, i32
  }
  func.func @transform_20(%arg0: i32) -> (i32, i32) {
    %c0_i32 = arith.constant 0 : i32
    %c0_i32_0 = arith.constant 0 : i32
    %c0_i32_1 = arith.constant 0 : i32
    return %c0_i32, %c0_i32_0 : i32, i32
  }
  func.func @transform_21(%arg0: i32) -> (i32, i32) {
    %c0_i32 = arith.constant 0 : i32
    %c0_i32_0 = arith.constant 0 : i32
    %c0_i32_1 = arith.constant 0 : i32
    return %c0_i32, %c0_i32_0 : i32, i32
  }
  func.func @transform_22(%arg0: i32) -> (i32, i32) {
    %c0_i32 = arith.constant 0 : i32
    %c0_i32_0 = arith.constant 0 : i32
    %c0_i32_1 = arith.constant 0 : i32
    return %c0_i32, %c0_i32_0 : i32, i32
  }
  func.func @transform_23(%arg0: i32) -> (i32, i32) {
    %c0_i32 = arith.constant 0 : i32
    %c0_i32_0 = arith.constant 0 : i32
    %c0_i32_1 = arith.constant 0 : i32
    return %c0_i32, %c0_i32_0 : i32, i32
  }
  func.func @transform_24(%arg0: i32) -> (i32, i32) {
    %c0_i32 = arith.constant 0 : i32
    %c0_i32_0 = arith.constant 0 : i32
    %c0_i32_1 = arith.constant 0 : i32
    return %c0_i32, %c0_i32_0 : i32, i32
  }
  func.func @transform_25(%arg0: i32) -> (i32, i32) {
    %c0_i32 = arith.constant 0 : i32
    %c0_i32_0 = arith.constant 0 : i32
    %c0_i32_1 = arith.constant 0 : i32
    return %c0_i32, %c0_i32_0 : i32, i32
  }
  func.func @transform_26(%arg0: i32) -> (i32, i32) {
    %c0_i32 = arith.constant 0 : i32
    %c0_i32_0 = arith.constant 0 : i32
    %c0_i32_1 = arith.constant 0 : i32
    return %c0_i32, %c0_i32_0 : i32, i32
  }
  func.func @transform_27(%arg0: i32) -> (i32, i32) {
    %c0_i32 = arith.constant 0 : i32
    %c0_i32_0 = arith.constant 0 : i32
    %c0_i32_1 = arith.constant 0 : i32
    return %c0_i32, %c0_i32_0 : i32, i32
  }
  func.func @transform_28(%arg0: i32) -> (i32, i32) {
    %c0_i32 = arith.constant 0 : i32
    %c0_i32_0 = arith.constant 0 : i32
    %c0_i32_1 = arith.constant 0 : i32
    return %c0_i32, %c0_i32_0 : i32, i32
  }
  func.func @transform_29(%arg0: i32) -> (i32, i32) {
    %c0_i32 = arith.constant 0 : i32
    %c0_i32_0 = arith.constant 0 : i32
    %c0_i32_1 = arith.constant 0 : i32
    return %c0_i32, %c0_i32_0 : i32, i32
  }
}

</mosaic_0001>

<bundles_post_ra>
// kernel: tpu_custom_call.1
= control target key start
LH: loop header
LB: loop body
LE: loop exit
PB: predicated region body
PF: predicated region fallthrough
CT: control target
= control target key end

     0   :  { %s2759_s6 = smov 1   ;;  %s2760_s10 = smov 2   ;;  %s4970_s0 = inlined_call_operand.smem [shape: u32[30], index: -1, kind: input, shape index: {}] }
   0x1   :  { %s2814_s5 = sld [smem:[%s4970_s0]]   ;;  %s2761_s14 = smov 3  }
   0x2   :  { %s2819_s9 = sld [smem:[%s4970_s0 + %s2759_s6]]   ;;  %s2762_s18 = smov 4  }
   0x3   :  { %s2824_s13 = sld [smem:[%s4970_s0 + %s2760_s10]]   ;;  %s2763_s22 = smov 5  }
   0x4   :  { %s2829_s17 = sld [smem:[%s4970_s0 + %s2761_s14]]   ;;  %s2764_s26 = smov 6  }
   0x5   :  { %s2834_s21 = sld [smem:[%s4970_s0 + %s2762_s18]]   ;;  %s2765_s30 = smov 7  }
   0x6   :  { %s2839_s25 = sld [smem:[%s4970_s0 + %s2763_s22]]   ;;  %s2766_s4 = smov 8  }
   0x7   :  { %s2844_s29 = sld [smem:[%s4970_s0 + %s2764_s26]]   ;;  %s2767_s10 = smov 9  }
   0x8   :  { %s2849_s3 = sld [smem:[%s4970_s0 + %s2765_s30]]   ;;  %s2768_s15 = smov 10  }
   0x9   :  { %5061 = sst [smem:[#allocation8_spill]] %s2824_s13  ;;  %s2769_s20 = smov 11  }
   0xa   :  { %s2854_s8 = sld [smem:[%s4970_s0 + %s2766_s4]]   ;;  %s2770_s26 = smov 12  }
   0xb   :  { %5062 = sst [smem:[#allocation9_spill]] %s2834_s21  ;;  %s2771_s1 = smov 13  }
   0xc   :  { %s2859_s14 = sld [smem:[%s4970_s0 + %s2767_s10]]   ;;  %s2772_s7 = smov 14  }
   0xd   :  { %s2864_s19 = sld [smem:[%s4970_s0 + %s2768_s15]]   ;;  %s2773_s15 = smov 15  }
   0xe   :  { %s2869_s24 = sld [smem:[%s4970_s0 + %s2769_s20]]   ;;  %s2774_s22 = smov 16  }
   0xf   :  { %s2874_s30 = sld [smem:[%s4970_s0 + %s2770_s26]]   ;;  %s2775_s28 = smov 17  }
  0x10   :  { %s2879_s6 = sld [smem:[%s4970_s0 + %s2771_s1]]  }
  0x11   :  { %s2884_s12 = sld [smem:[%s4970_s0 + %s2772_s7]]   ;;  %s2776_s7 = smov 18  }
  0x12   :  { %s2889_s20 = sld [smem:[%s4970_s0 + %s2773_s15]]   ;;  %s2777_s15 = smov 19  }
  0x13   :  { %s2894_s27 = sld [smem:[%s4970_s0 + %s2774_s22]]   ;;  %s2778_s22 = smov 20  }
  0x14   :  { %s2899_s4 = sld [smem:[%s4970_s0 + %s2775_s28]]   ;;  %s2779_s28 = smov 21  }
  0x15   :  { %s2904_s21 = sld [smem:[%s4970_s0 + %s2776_s7]]   ;;  %s2780_s7 = smov 22  }
  0x16   :  { %s2909_s13 = sld [smem:[%s4970_s0 + %s2777_s15]]   ;;  %s2781_s15 = smov 23  }
  0x18   :  { %5063 = sst [smem:[#allocation10_spill]] %s2889_s20 }
  0x19   :  { %s2914_s20 = sld [smem:[%s4970_s0 + %s2778_s22]]   ;;  %s2782_s22 = smov 24  }
  0x1a   :  { %5064 = sst [smem:[#allocation11_spill]] %s2899_s4 }
  0x1b   :  { %5065 = sst [smem:[#allocation12_spill]] %s2904_s21 }
  0x1c   :  { %5066 = sst [smem:[#allocation13_spill]] %s2909_s13 }
  0x1d   :  { %s2919_s4 = sld [smem:[%s4970_s0 + %s2779_s28]]   ;;  %s2783_s28 = smov 25  }
  0x1e   :  { %s2924_s21 = sld [smem:[%s4970_s0 + %s2780_s7]]   ;;  %s2784_s7 = smov 26  }
  0x1f   :  { %5067 = sst [smem:[#allocation14_spill]] %s2914_s20 }
  0x20   :  { %s2929_s13 = sld [smem:[%s4970_s0 + %s2781_s15]]   ;;  %s2785_s15 = smov 27  }
  0x21   :  { %s2934_s20 = sld [smem:[%s4970_s0 + %s2782_s22]]   ;;  %s2786_s22 = smov 28  }
  0x23   :  { %5068 = sst [smem:[#allocation15_spill]] %s2919_s4 }
  0x24   :  { %5069 = sst [smem:[#allocation16_spill]] %s2924_s21 }
  0x25   :  { %s2939_s4 = sld [smem:[%s4970_s0 + %s2783_s28]]   ;;  %s2787_s28 = smov 29  }
  0x26   :  { %5070 = sst [smem:[#allocation17_spill]] %s2929_s13 }
  0x27   :  { %5071 = sst [smem:[#allocation18_spill]] %s2934_s20 }
  0x28   :  { %s2944_s21 = sld [smem:[%s4970_s0 + %s2784_s7]]  }
  0x29   :  { %s2949_s13 = sld [smem:[%s4970_s0 + %s2785_s15]]  }
  0x2a   :  { %s2954_s20 = sld [smem:[%s4970_s0 + %s2786_s22]]  }
  0x2b   :  { %5072 = sst [smem:[#allocation19_spill]] %s2939_s4 }
  0x2c   :  { %s2959_s4 = sld [smem:[%s4970_s0 + %s2787_s28]]  }
  0x2d   :  { %64 = vsyncpa [#allocation3], 0 }
  0x2e   :  { %65 = vsyncpa [#allocation4], 0  ;;  %s76_s7 = sshll.u32 %s2829_s17, 4  ;;  %s2788_s10 = smov [#allocation2]   ;;  %s77_s7 = int_to_ptr.hbm [resolvable:$true] %s76_s7 }
  0x2f   :  { %s78_s11 = sshll.u32 %s2788_s10, 4  ;;  %s2707_s15 = sshra.s32 %s77_s7, 4  ;;  %s79_s11 = int_to_ptr.vmem [resolvable:$true] %s78_s11  ;;  %s2708_s15 = int_to_ptr.hbm [resolvable:$true] %s2707_s15 }
  0x30   :  { %s2709_s16 = scalar_lea.hbm %s2708_s15, 512  ;;  %s2711_s18 = scalar_lea.hbm %s2829_s17, 512 }
  0x31   :  { %p2710_p0 = scmp.ne.s32.totalorder %s2708_s15, %s2709_s16  ;;  %p2712_p1 = scmp.lt.s32.totalorder %s2708_s15, %s2829_s17 }
  0x32   :  { %p2713_p2 = scmp.lt.s32.totalorder %s2711_s18, %s2709_s16 }
  0x34   :  { %p2714_p3 = por %p2713_p2, %p2712_p1 }
  0x36   :  { %p2715_p4 = pnand %p2714_p3, %p2710_p0 }
  0x38   :  { %2718 = shalt.err (!%p2715_p4)
}
  0x39   :  { %s2789_s0 = smov 128   ;;  %s2790_s22 = smov 8  }
  0x3a   :  { %84 = dma.hbm_to_vmem [thread:$0]  %s77_s7, 8192, %s79_s11, [#allocation3], %s2789_s0, %s2789_s0, %s2790_s22  }
  0x3b   :  { %2755 = dma.done.wait [#allocation3], 8192  }
  0x3c   :  { %2756 = vsyncadd [#allocation3], 4294959104  ;;  %v2791_v0 = vmov 0   ;;  %v213_v1 = vld [vmem:[%s2839_s25] sm:$0xff]  ;;  %v217_v5 = vld [vmem:[%s2814_s5 + $0x10] sm:$0xff]  ;;  %s2792_s17 = smov 111   ;;  %v247_v19 = vlaneseq }
  0x3d   :  { %2693 = vset.pattern.permute.xlu0 %v2791_v0  ;;  %2694 = vset.pattern.permute.xlu1 %v2791_v0  ;;  %v214_v2 = vld [vmem:[%s2844_s29] sm:$0xff]  ;;  %v218_v6 = vld [vmem:[%s2814_s5 + $0x18] sm:$0xff]  ;;  %s2793_s25 = smov 112   ;;  %s2794_s29 = smov 113   ;;  %v216_v14 = vld [vmem:[%s2814_s5 + $0x8] sm:$0xff]  ;;  %vm422_vm8 = vcmask 588800  }
  0x3e   :  { %2695 = vset.pattern.permute.xlu2 %v2791_v0  ;;  %221 = vperm.xlu0 %2693, %v213_v1   ;;  %v215_v4 = vld [vmem:[%s2814_s5] sm:$0xff]  ;;  %s2795_s23 = smov 127   ;;  %s2796_s26 = smov 1   ;;  %v3047_v21 = vand.u32 127, %v247_v19  ;;  %v3051_v22 = vld [vmem:[%s2819_s9 + $0x38] ss:$0 sm:$0xff] }
  0x3f   :  { %s2797_s5 = smov 15   ;;  %s2798_s28 = smov 16   ;;  %v3059_v28 = vld [vmem:[%s2819_s9 + $0x20] ss:$0 sm:$0xff]  ;;  %v3062_v29 = vld [vmem:[%s2819_s9 + $0x28] ss:$0 sm:$0xff] }
  0x40   :  { %s2799_s1 = smov 17   ;;  %vm404_vm0 = vcmp.lt.s32.totalorder %v3047_v21, 111  ;;  %v3065_v30 = vld [vmem:[%s2819_s9 + $0x30] ss:$0 sm:$0xff]  ;;  %v3082_v41 = vld [vmem:[%s2819_s9 + $0x18] sm:$0xff]  ;;  %vm383_vm1 = vcmp.lt.s32.totalorder %v3047_v21, 112 }
  0x41   :  { %v3079_v40 = vld [vmem:[%s2819_s9 + $0x10] sm:$0xff]  ;;  %v3089_v43 = vperm.slane %v3082_v41, 7  ;;  %v3100_v50 = vld [vmem:[%s2819_s9] sm:$0xff]  ;;  %v3103_v51 = vld [vmem:[%s2819_s9 + $0x8] sm:$0xff]  ;;  %vm362_vm2 = vcmp.lt.s32.totalorder %v3047_v21, 113  ;;  %v3116_v55 = vperm.slane %v3082_v41, 6 }
  0x42   :  { %v3086_v42 = vperm.slane %v3079_v40, 7  ;;  %v3106_v52 = vperm.slane %v3100_v50, 7  ;;  %v3109_v53 = vperm.slane %v3103_v51, 7  ;;  %v3113_v54 = vperm.slane %v3079_v40, 6  ;;  %s2804_s2 = smov 9   ;;  %s5233_s7 = sld [smem:[#allocation8_spill]] }
  0x43   :  { %vm341_vm3 = vcmp.lt.s32.totalorder %v3047_v21, 127  ;;  %vm312_vm4 = vcmp.lt.s32.totalorder %v3047_v21, 1  ;;  %vm291_vm5 = vcmp.lt.s32.totalorder %v3047_v21, 15  ;;  %vm270_vm6 = vcmp.lt.s32.totalorder %v3047_v21, 16  ;;  %s5234_s10 = sld [smem:[#allocation15_spill]]  ;;  %s2550_s18 = sshll.u32 %s2959_s4, 4  ;;  %s2551_s18 = int_to_ptr.hbm [resolvable:$true] %s2550_s18 }
  0x44   :  { %5073 = vst [vmem:[#allocation20_spill] sm:$0xff] %v3106_v52  ;;  %vm249_vm7 = vcmp.lt.s32.totalorder %v3047_v21, 17  ;;  %vm1516_vm9 = vcmask 64512   ;;  %vm1965_vm10 = vcmask 130048   ;;  %s5235_s11 = sld [smem:[#allocation18_spill]] }
  0x45   :  { %s5236_s15 = sld [smem:[#allocation17_spill]] }
  0x46   :  { %230 = vperm.xlu0 %2693, %v214_v2  }
  0xb0   :  { %v222_v3 = vpop.permute.xlu0 %221 }
  0xb1   :  { %v224_v7 = vmul.f32 %v222_v3, %v215_v4  ;;  %v226_v8 = vmul.f32 %v222_v3, %v217_v5  ;;  %v227_v9 = vmul.f32 %v222_v3, %v218_v6  ;;  %v225_v15 = vmul.f32 %v222_v3, %v216_v14 }
  0xb2   :  { %v3134_v3 = vperm.slane %v3079_v40, 5  ;;  %v3137_v4 = vperm.slane %v3082_v41, 5 }
  0xb8   :  { %v231_v10 = vpop.permute.xlu0 %230 }
  0xb9   :  { %v2972_v11 = vadd.f32 %v231_v10, %v224_v7  ;;  %v2974_v12 = vadd.f32 %v231_v10, %v226_v8  ;;  %v2976_v13 = vadd.f32 %v231_v10, %v227_v9  ;;  %v2997_v16 = vadd.f32 %v231_v10, %v225_v15 }
  0xba   :  { %v3142_v7 = vperm.slane %v3079_v40, 4  ;;  %v3145_v8 = vperm.slane %v3082_v41, 4 }
  0xbb   :  { %402 = vrot.lane.b32.xlu2 %v2976_v13, %s2792_s17  ;;  %379 = vrot.lane.b32.xlu0 %v2974_v12, %s2793_s25 }
  0xbc   :  { %396 = vrot.lane.b32.xlu1 %v2972_v11, %s2792_s17 }
  0xc3   :  { %358 = vrot.lane.b32.xlu0 %v2974_v12, %s2794_s29  ;;  %375 = vrot.lane.b32.xlu2 %v2972_v11, %s2793_s25 }
  0xc4   :  { %400 = vrot.lane.b32.xlu1 %v2974_v12, %s2792_s17 }
  0xcb   :  { %337 = vrot.lane.b32.xlu0 %v2974_v12, %s2795_s23  ;;  %354 = vrot.lane.b32.xlu2 %v2972_v11, %s2794_s29 }
  0xcc   :  { %381 = vrot.lane.b32.xlu1 %v2976_v13, %s2793_s25 }
  0xd3   :  { %377 = vrot.lane.b32.xlu0 %v2997_v16, %s2793_s25  ;;  %333 = vrot.lane.b32.xlu2 %v2972_v11, %s2795_s23 }
  0xd4   :  { %360 = vrot.lane.b32.xlu1 %v2976_v13, %s2794_s29 }
  0xdb   :  { %310 = vrot.lane.b32.xlu0 %v2976_v13, %s2796_s26  ;;  %398 = vrot.lane.b32.xlu2 %v2997_v16, %s2792_s17 }
  0xdc   :  { %339 = vrot.lane.b32.xlu1 %v2976_v13, %s2795_s23 }
  0xe3   :  { %287 = vrot.lane.b32.xlu0 %v2974_v12, %s2797_s5  ;;  %308 = vrot.lane.b32.xlu2 %v2974_v12, %s2796_s26 }
  0xe4   :  { %306 = vrot.lane.b32.xlu1 %v2997_v16, %s2796_s26 }
  0xeb   :  { %264 = vrot.lane.b32.xlu0 %v2997_v16, %s2798_s28  ;;  %285 = vrot.lane.b32.xlu2 %v2997_v16, %s2797_s5 }
  0xec   :  { %356 = vrot.lane.b32.xlu1 %v2997_v16, %s2794_s29 }
  0xf3   :  { %241 = vrot.lane.b32.xlu0 %v2997_v16, %s2799_s1  ;;  %335 = vrot.lane.b32.xlu2 %v2997_v16, %s2795_s23 }
  0xf4   :  { %289 = vrot.lane.b32.xlu1 %v2976_v13, %s2797_s5 }
  0xfb   :  { %304 = vrot.lane.b32.xlu0 %v2972_v11, %s2796_s26  ;;  %268 = vrot.lane.b32.xlu2 %v2976_v13, %s2798_s28 }
  0xfc   :  { %266 = vrot.lane.b32.xlu1 %v2974_v12, %s2798_s28 }
 0x103   :  { %239 = vrot.lane.b32.xlu0 %v2972_v11, %s2799_s1  ;;  %245 = vrot.lane.b32.xlu2 %v2976_v13, %s2799_s1 }
 0x104   :  { %243 = vrot.lane.b32.xlu1 %v2974_v12, %s2799_s1 }
 0x10b   :  { %262 = vrot.lane.b32.xlu2 %v2972_v11, %s2798_s28 }
 0x10c   :  { %283 = vrot.lane.b32.xlu1 %v2972_v11, %s2797_s5 }
 0x115   :  { %v403_v17 = vpop.permute.xlu2 %402 }
 0x11d   :  { %v376_v18 = vpop.permute.xlu2 %375 }
 0x125   :  { %v3045_v20 = vpop.permute.xlu2 %354 }
 0x12d   :  { %v380_v23 = vpop.permute.xlu0 %379  ;;  %v3053_v24 = vpop.permute.xlu2 %333 }
 0x12e   :  { %v397_v25 = vpop.permute.xlu1 %396 }
 0x12f   :  { %v408_v26 = vsel %vm404_vm0, %v403_v17, %v397_v25 }
 0x130   :  { %v416_v27 = vmul.f32 %v3051_v22, %v408_v26 }
 0x132   :  { %493 = vmatpush.msra.mxu3 %v416_v27  ;;  %v3170_v27 = vperm.slane %v3079_v40, 3 }
 0x135   :  { %v3067_v31 = vpop.permute.xlu0 %358  ;;  %v399_v32 = vpop.permute.xlu2 %398 }
 0x136   :  { %v401_v33 = vpop.permute.xlu1 %400  ;;  %v407_v34 = vsel %vm404_vm0, %v397_v25, %v399_v32  ;;  %v332_v25 = vmul.f32 %v3145_v8, %v2976_v13 }
 0x137   :  { %v413_v35 = vmul.f32 %v3059_v28, %v407_v34  ;;  %v406_v36 = vsel %vm404_vm0, %v399_v32, %v401_v33  ;;  %v405_v37 = vsel %vm404_vm0, %v401_v33, %v403_v17  ;;  %v3157_v17 = vperm.slane %v3082_v41, 3 }
 0x138   :  { %v414_v38 = vmul.f32 %v3062_v29, %v406_v36  ;;  %v415_v39 = vmul.f32 %v3065_v30, %v405_v37  ;;  %v3174_v34 = vperm.slane %v3079_v40, 2 }
 0x139   :  { %433 = vmatpush.msra.mxu0 %v413_v35  ;;  %5074 = vst [vmem:[#allocation21_spill] sm:$0xff] %v3157_v17 }
 0x13a   :  { %453 = vmatpush.msra.mxu1 %v414_v38  ;;  %473 = vmatpush.msra.mxu2 %v415_v39  ;;  %5075 = vst [vmem:[#allocation22_spill] sm:$0xff] %v3174_v34  ;;  %v3184_v38 = vperm.slane %v3100_v50, 6  ;;  %v3187_v39 = vperm.slane %v3103_v51, 6 }
 0x13d   :  { %v3091_v44 = vpop.permute.xlu0 %337  ;;  %v309_v0 = vpop.permute.xlu2 %308 }
 0x13e   :  { %v382_v45 = vpop.permute.xlu1 %381 }
 0x13f   :  { %v384_v46 = vsel %vm383_vm1, %v380_v23, %v382_v45  ;;  %v387_v47 = vsel %vm383_vm1, %v382_v45, %v376_v18 }
 0x140   :  { %v394_v48 = vmul.f32 %v3086_v42, %v384_v46  ;;  %v395_v49 = vmul.f32 %v3089_v43, %v387_v47  ;;  %v3192_v47 = vperm.slane %v3100_v50, 5 }
 0x142   :  { %474 = vmatpush.msra.mxu2 %v394_v48  ;;  %494 = vmatpush.msra.mxu3 %v395_v49  ;;  %v3195_v48 = vperm.slane %v3103_v51, 5 }
 0x145   :  { %v378_v56 = vpop.permute.xlu0 %377  ;;  %v3162_v19 = vpop.permute.xlu2 %285 }
 0x146   :  { %v361_v57 = vpop.permute.xlu1 %360  ;;  %v386_v58 = vsel %vm383_vm1, %v376_v18, %v378_v56  ;;  %v385_v59 = vsel %vm383_vm1, %v378_v56, %v380_v23  ;;  %v331_v23 = vmul.f32 %v3142_v7, %v2974_v12 }
 0x147   :  { %v392_v60 = vmul.f32 %v3106_v52, %v386_v58  ;;  %v393_v61 = vmul.f32 %v3109_v53, %v385_v59  ;;  %v363_v62 = vsel %vm362_vm2, %v3067_v31, %v361_v57  ;;  %v366_v63 = vsel %vm362_vm2, %v361_v57, %v3045_v20 }
 0x148   :  { %v373_v1 = vmul.f32 %v3113_v54, %v363_v62  ;;  %v374_v2 = vmul.f32 %v3116_v55, %v366_v63  ;;  %v3224_v63 = vperm.slane %v3082_v41, 2 }
 0x149   :  { %434 = vmatpush.msra.mxu0 %v392_v60  ;;  %454 = vmatpush.msra.mxu1 %v393_v61  ;;  %v3212_v61 = vperm.slane %v3100_v50, 4 }
 0x14a   :  { %475 = vmatpush.msra.mxu2 %v373_v1  ;;  %495 = vmatpush.msra.mxu3 %v374_v2  ;;  %5076 = vst [vmem:[#allocation23_spill] sm:$0xff] %v3224_v63 }
 0x14d   :  { %v3139_v5 = vpop.permute.xlu0 %310  ;;  %v336_v37 = vpop.permute.xlu2 %335 }
 0x14e   :  { %v340_v6 = vpop.permute.xlu1 %339  ;;  %v313_v18 = vsel %vm312_vm4, %v309_v0, %v3139_v5  ;;  %v344_v57 = vsel %vm341_vm3, %v3053_v24, %v336_v37  ;;  %v343_v58 = vsel %vm341_vm3, %v336_v37, %v3091_v44  ;;  %v3259_v37 = vperm.slane %v3079_v40, 0 }
 0x14f   :  { %v342_v9 = vsel %vm341_vm3, %v3091_v44, %v340_v6  ;;  %v345_v10 = vsel %vm341_vm3, %v340_v6, %v3053_v24  ;;  %v324_v26 = vmul.f32 %v3157_v17, %v313_v18  ;;  %v351_v24 = vmul.f32 %v3195_v48, %v343_v58  ;;  %v238_v6 = vld [vmem:[%s2854_s8] sm:$0xff]  ;;  %s5158_s8 = sld [smem:[#allocation14_spill]] }
 0x150   :  { %v352_v14 = vmul.f32 %v3134_v3, %v342_v9  ;;  %v353_v15 = vmul.f32 %v3137_v4, %v345_v10  ;;  %v329_v44 = vmul.f32 %v3212_v61, %v2972_v11  ;;  %419 = vperm.xlu1 %2694, %v238_v6   ;;  %v3231_v11 = vperm.slane %v3100_v50, 3  ;;  %5080 = vst [vmem:[#allocation27_spill] sm:$0xff] %v3259_v37 }
 0x152   :  { %476 = vmatpush.msra.mxu2 %v352_v14  ;;  %496 = vmatpush.msra.mxu3 %v353_v15  ;;  %5077 = vst [vmem:[#allocation24_spill] sm:$0xff] %v3231_v11  ;;  %v3237_v14 = vperm.slane %v3079_v40, 1  ;;  %v3240_v15 = vperm.slane %v3082_v41, 1 }
 0x154   :  { %477 = vmatpush.msra.mxu2 %v331_v23  ;;  %497 = vmatpush.msra.mxu3 %v332_v25  ;;  %5078 = vst [vmem:[#allocation25_spill] sm:$0xff] %v3237_v14 }
 0x155   :  { %v288_v32 = vpop.permute.xlu0 %287  ;;  %v269_v9 = vpop.permute.xlu2 %268  ;;  %5079 = vst [vmem:[#allocation26_spill] sm:$0xff] %v3240_v15 }
 0x156   :  { %v307_v33 = vpop.permute.xlu1 %306  ;;  %498 = vmatpush.msra.mxu3 %v324_v26  ;;  %v293_v13 = vsel %vm291_vm5, %v3162_v19, %v288_v32 }
 0x157   :  { %v314_v12 = vsel %vm312_vm4, %v307_v33, %v309_v0  ;;  %v302_v36 = vmul.f32 %v3174_v34, %v293_v13 }
 0x158   :  { %v323_v35 = vmul.f32 %v3170_v27, %v314_v12 }
 0x15a   :  { %478 = vmatpush.msra.mxu2 %v323_v35 }
 0x15c   :  { %479 = vmatpush.msra.mxu2 %v302_v36 }
 0x15d   :  { %v3189_v45 = vpop.permute.xlu0 %264 }
 0x15e   :  { %v357_v46 = vpop.permute.xlu1 %356 }
 0x15f   :  { %v365_v49 = vsel %vm362_vm2, %v3045_v20, %v357_v46  ;;  %v364_v56 = vsel %vm362_vm2, %v357_v46, %v3067_v31  ;;  %v3215_v20 = vperm.slane %v3103_v51, 4  ;;  %v350_v31 = vmul.f32 %v3192_v47, %v344_v57 }
 0x160   :  { %v371_v59 = vmul.f32 %v3184_v38, %v365_v49  ;;  %v372_v60 = vmul.f32 %v3187_v39, %v364_v56  ;;  %v3262_v46 = vperm.slane %v3082_v41, 0  ;;  %v3274_v41 = vperm.slane %v3100_v50, 2 }
 0x161   :  { %v330_v62 = vmul.f32 %v3215_v20, %v2997_v16  ;;  %v3234_v16 = vperm.slane %v3103_v51, 3 }
 0x162   :  { %435 = vmatpush.msra.mxu0 %v371_v59  ;;  %455 = vmatpush.msra.mxu1 %v372_v60  ;;  %5081 = vst [vmem:[#allocation28_spill] sm:$0xff] %v3262_v46  ;;  %v237_v60 = vld [vmem:[%s2849_s3] sm:$0xff]  ;;  %s5091_s3 = sld [smem:[#allocation10_spill]] }
 0x163   :  { %5082 = vst [vmem:[#allocation29_spill] sm:$0xff] %v3274_v41 }
 0x164   :  { %436 = vmatpush.msra.mxu0 %v350_v31  ;;  %456 = vmatpush.msra.mxu1 %v351_v24  ;;  %v3277_v31 = vperm.slane %v3103_v51, 2 }
 0x165   :  { %v242_v0 = vpop.permute.xlu0 %241 }
 0x166   :  { %v290_v1 = vpop.permute.xlu1 %289  ;;  %437 = vmatpush.msra.mxu0 %v329_v44  ;;  %457 = vmatpush.msra.mxu1 %v330_v62  ;;  %v3280_v62 = vperm.slane %v3100_v50, 1 }
 0x167   :  { %v292_v2 = vsel %vm291_vm5, %v288_v32, %v290_v1 }
 0x168   :  { %v303_v10 = vmul.f32 %v3224_v63, %v292_v2  ;;  %5083 = vst [vmem:[#allocation30_spill] sm:$0xff] %v3280_v62  ;;  %v3283_v2 = vperm.slane %v3103_v51, 1 }
 0x16a   :  { %499 = vmatpush.msra.mxu3 %v303_v10 }
 0x16d   :  { %v305_v18 = vpop.permute.xlu0 %304 }
 0x16e   :  { %v267_v23 = vpop.permute.xlu1 %266  ;;  %v316_v25 = vsel %vm312_vm4, %v3139_v5, %v305_v18  ;;  %v315_v26 = vsel %vm312_vm4, %v305_v18, %v307_v33  ;;  %v246_v33 = vpop.permute.xlu2 %245 }
 0x16f   :  { %v321_v32 = vmul.f32 %v3231_v11, %v316_v25  ;;  %v322_v12 = vmul.f32 %v3234_v16, %v315_v26  ;;  %v272_v13 = vsel %vm270_vm6, %v3189_v45, %v267_v23  ;;  %v271_v35 = vsel %vm270_vm6, %v267_v23, %v269_v9 }
 0x170   :  { %v281_v36 = vmul.f32 %v3237_v14, %v272_v13  ;;  %v282_v5 = vmul.f32 %v3240_v15, %v271_v35 }
 0x171   :  { %438 = vmatpush.msra.mxu0 %v321_v32  ;;  %458 = vmatpush.msra.mxu1 %v322_v12  ;;  %v3298_v32 = vperm.slane %v3100_v50, 0 }
 0x172   :  { %480 = vmatpush.msra.mxu2 %v281_v36  ;;  %500 = vmatpush.msra.mxu3 %v282_v5 }
 0x173   :  { %5084 = vst [vmem:[#allocation31_spill] sm:$0xff] %v3298_v32 }
 0x175   :  { %v240_v24 = vpop.permute.xlu0 %239 }
 0x176   :  { %v244_v49 = vpop.permute.xlu1 %243  ;;  %v263_v40 = vpop.permute.xlu2 %262 }
 0x177   :  { %v251_v56 = vsel %vm249_vm7, %v242_v0, %v244_v49  ;;  %v250_v57 = vsel %vm249_vm7, %v244_v49, %v246_v33  ;;  %v274_v18 = vsel %vm270_vm6, %v269_v9, %v263_v40  ;;  %v273_v23 = vsel %vm270_vm6, %v263_v40, %v3189_v45 }
 0x178   :  { %v260_v58 = vmul.f32 %v3259_v37, %v251_v56  ;;  %v261_v59 = vmul.f32 %v3262_v46, %v250_v57  ;;  %v252_v9 = vsel %vm249_vm7, %v240_v24, %v242_v0  ;;  %v279_v45 = vmul.f32 %v3280_v62, %v274_v18 }
 0x179   :  { %v280_v12 = vmul.f32 %v3283_v2, %v273_v23 }
 0x17a   :  { %481 = vmatpush.msra.mxu2 %v260_v58  ;;  %501 = vmatpush.msra.mxu3 %v261_v59 }
 0x17b   :  { %2594 = vmatmul.msk.f32.vlgmr.msra.gmra.mxu2 %vm422_vm8, %v237_v60  ;;  %2595 = vmatmul.msk.f32.vlgmr.msra.gmra.mxu3 %vm422_vm8, %v237_v60 }
 0x17e   :  { %v284_v44 = vpop.permute.xlu1 %283 }
 0x17f   :  { %v295_v6 = vsel %vm291_vm5, %v290_v1, %v284_v44  ;;  %v294_v10 = vsel %vm291_vm5, %v284_v44, %v3162_v19  ;;  %v3301_v1 = vperm.slane %v3103_v51, 0  ;;  %v253_v19 = vsel %vm249_vm7, %v246_v33, %v240_v24  ;;  %v511_v24 = vld [vmem:[%s2864_s19] sm:$0xff]  ;;  %s2800_s19 = smov 121  }
 0x180   :  { %v300_v25 = vmul.f32 %v3274_v41, %v295_v6  ;;  %v301_v26 = vmul.f32 %v3277_v31, %v294_v10  ;;  %v258_v50 = vmul.f32 %v3298_v32, %v253_v19 }
 0x181   :  { %v259_v13 = vmul.f32 %v3301_v1, %v252_v9 }
 0x182   :  { %439 = vmatpush.msra.mxu0 %v300_v25  ;;  %459 = vmatpush.msra.mxu1 %v301_v26 }
 0x184   :  { %440 = vmatpush.msra.mxu0 %v279_v45  ;;  %460 = vmatpush.msra.mxu1 %v280_v12 }
 0x186   :  { %441 = vmatpush.msra.mxu0 %v258_v50  ;;  %461 = vmatpush.msra.mxu1 %v259_v13 }
 0x187   :  { %2592 = vmatmul.msk.f32.vlgmr.msra.gmra.mxu0 %vm422_vm8, %v237_v60  ;;  %2593 = vmatmul.msk.f32.vlgmr.msra.gmra.mxu1 %vm422_vm8, %v237_v60 }
 0x1c2   :  { %v420_v51 = vpop.permute.xlu1 %419 }
 0x1fe   :  { %v503_v56 = vpop.f32.mrf.mxu3  ;;  %v483_v59 = vpop.f32.mrf.mxu2 }
 0x1ff   :  { %v504_v57 = vadd.f32 %v503_v56, %v420_v51  ;;  %v484_v60 = vadd.f32 %v483_v59, %v420_v51 }
 0x201   :  { %v3329_v58 = vmax.f32 %v504_v57, 0.0  ;;  %v3337_v40 = vmax.f32 %v484_v60, 0.0 }
 0x203   :  { %5085 = vst [vmem:[#allocation32_spill] sm:$0xff] %v3337_v40 }
 0x204   :  { %v443_v0 = vpop.f32.mrf.mxu0  ;;  %v463_v35 = vpop.f32.mrf.mxu1 }
 0x205   :  { %v444_v36 = vadd.f32 %v443_v0, %v420_v51  ;;  %v464_v5 = vadd.f32 %v463_v35, %v420_v51 }
 0x207   :  { %v3313_v33 = vmax.f32 %v444_v36, 0.0  ;;  %v3315_v49 = vmax.f32 %v464_v5, 0.0 }
 0x209   :  { %562 = vrot.lane.b32.xlu1 %v3315_v49, %s2796_s26  ;;  %614 = vrot.lane.b32.xlu0 %v3315_v49, %s2793_s25 }
 0x20a   :  { %628 = vrot.lane.b32.xlu2 %v3313_v33, %s2792_s17 }
 0x211   :  { %598 = vrot.lane.b32.xlu1 %v3315_v49, %s2794_s29  ;;  %530 = vrot.lane.b32.xlu0 %v3315_v49, %s2798_s28 }
 0x212   :  { %612 = vrot.lane.b32.xlu2 %v3313_v33, %s2793_s25 }
 0x219   :  { %634 = vrot.lane.b32.xlu1 %v3329_v58, %s2792_s17  ;;  %514 = vrot.lane.b32.xlu0 %v3315_v49, %s2799_s1 }
 0x21a   :  { %596 = vrot.lane.b32.xlu2 %v3313_v33, %s2794_s29 }
 0x221   :  { %618 = vrot.lane.b32.xlu1 %v3329_v58, %s2793_s25  ;;  %632 = vrot.lane.b32.xlu0 %v3337_v40, %s2792_s17 }
 0x222   :  { %580 = vrot.lane.b32.xlu2 %v3313_v33, %s2795_s23 }
 0x229   :  { %602 = vrot.lane.b32.xlu1 %v3329_v58, %s2794_s29  ;;  %616 = vrot.lane.b32.xlu0 %v3337_v40, %s2793_s25 }
 0x22a   :  { %630 = vrot.lane.b32.xlu2 %v3315_v49, %s2792_s17 }
 0x231   :  { %586 = vrot.lane.b32.xlu1 %v3329_v58, %s2795_s23  ;;  %600 = vrot.lane.b32.xlu0 %v3337_v40, %s2794_s29 }
 0x232   :  { %546 = vrot.lane.b32.xlu2 %v3315_v49, %s2797_s5 }
 0x239   :  { %550 = vrot.lane.b32.xlu1 %v3329_v58, %s2797_s5  ;;  %584 = vrot.lane.b32.xlu0 %v3337_v40, %s2795_s23 }
 0x23a   :  { %582 = vrot.lane.b32.xlu2 %v3315_v49, %s2795_s23 }
 0x241   :  { %532 = vrot.lane.b32.xlu1 %v3337_v40, %s2798_s28  ;;  %566 = vrot.lane.b32.xlu0 %v3329_v58, %s2796_s26 }
 0x242   :  { %564 = vrot.lane.b32.xlu2 %v3337_v40, %s2796_s26 }
 0x249   :  { %516 = vrot.lane.b32.xlu1 %v3337_v40, %s2799_s1  ;;  %548 = vrot.lane.b32.xlu0 %v3337_v40, %s2797_s5 }
 0x24a   :  { %534 = vrot.lane.b32.xlu2 %v3329_v58, %s2798_s28 }
 0x251   :  { %544 = vrot.lane.b32.xlu1 %v3313_v33, %s2797_s5  ;;  %560 = vrot.lane.b32.xlu0 %v3313_v33, %s2796_s26 }
 0x252   :  { %518 = vrot.lane.b32.xlu2 %v3329_v58, %s2799_s1 }
 0x259   :  { %646 = vperm.xlu1 %2694, %v511_v24   ;;  %512 = vrot.lane.b32.xlu0 %v3313_v33, %s2799_s1 }
 0x25a   :  { %528 = vrot.lane.b32.xlu2 %v3313_v33, %s2798_s28 }
 0x264   :  { %v629_v44 = vpop.permute.xlu2 %628 }
 0x26c   :  { %v613_v6 = vpop.permute.xlu2 %612 }
 0x274   :  { %v597_v10 = vpop.permute.xlu2 %596 }
 0x27b   :  { %v3386_v18 = vpop.permute.xlu1 %562  ;;  %v615_v23 = vpop.permute.xlu0 %614 }
 0x27c   :  { %v581_v25 = vpop.permute.xlu2 %580  ;;  %v622_v12 = vsel %vm383_vm1, %v613_v6, %v615_v23 }
 0x27d   :  { %v624_v51 = vmul.f32 %v622_v12, %v3106_v52 }
 0x283   :  { %v599_v26 = vpop.permute.xlu1 %598  ;;  %v3388_v19 = vpop.permute.xlu0 %530 }
 0x284   :  { %v631_v9 = vpop.permute.xlu2 %630  ;;  %v606_v13 = vsel %vm362_vm2, %v597_v10, %v599_v26 }
 0x285   :  { %v638_v45 = vsel %vm404_vm0, %v629_v44, %v631_v9  ;;  %v608_v0 = vmul.f32 %v606_v13, %v3184_v38 }
 0x286   :  { %v640_v50 = vmul.f32 %v3059_v28, %v638_v45 }
 0x288   :  { %659 = vmatpush.msrb.mxu0 %v640_v50 }
 0x28a   :  { %660 = vmatpush.msrb.mxu0 %v624_v51 }
 0x28b   :  { %v635_v35 = vpop.permute.xlu1 %634  ;;  %v3399_v36 = vpop.permute.xlu0 %514 }
 0x28c   :  { %661 = vmatpush.msrb.mxu0 %v608_v0  ;;  %v3401_v5 = vpop.permute.xlu2 %546  ;;  %v639_v56 = vsel %vm404_vm0, %v635_v35, %v629_v44 }
 0x28d   :  { %v643_v57 = vmul.f32 %v3051_v22, %v639_v56 }
 0x28f   :  { %719 = vmatpush.msrb.mxu3 %v643_v57 }
 0x293   :  { %v619_v59 = vpop.permute.xlu1 %618  ;;  %v633_v60 = vpop.permute.xlu0 %632 }
 0x294   :  { %v583_v24 = vpop.permute.xlu2 %582  ;;  %v637_v45 = vsel %vm404_vm0, %v631_v9, %v633_v60  ;;  %v636_v12 = vsel %vm404_vm0, %v633_v60, %v635_v35  ;;  %v623_v50 = vsel %vm383_vm1, %v619_v59, %v613_v6  ;;  %v576_v9 = vmul.f32 %v3313_v33, %v3212_v61 }
 0x295   :  { %v590_v13 = vsel %vm341_vm3, %v581_v25, %v583_v24  ;;  %v641_v44 = vmul.f32 %v3062_v29, %v637_v45  ;;  %v642_v51 = vmul.f32 %v3065_v30, %v636_v12  ;;  %v627_v0 = vmul.f32 %v623_v50, %v3089_v43 }
 0x296   :  { %v592_v56 = vmul.f32 %v590_v13, %v3192_v47 }
 0x297   :  { %679 = vmatpush.msrb.mxu1 %v641_v44  ;;  %699 = vmatpush.msrb.mxu2 %v642_v51 }
 0x298   :  { %662 = vmatpush.msrb.mxu0 %v592_v56  ;;  %720 = vmatpush.msrb.mxu3 %v627_v0 }
 0x29a   :  { %663 = vmatpush.msrb.mxu0 %v576_v9 }
 0x29b   :  { %v603_v6 = vpop.permute.xlu1 %602  ;;  %v617_v35 = vpop.permute.xlu0 %616 }
 0x29c   :  { %v621_v57 = vsel %vm383_vm1, %v615_v23, %v617_v35  ;;  %v620_v60 = vsel %vm383_vm1, %v617_v35, %v619_v59  ;;  %v607_v45 = vsel %vm362_vm2, %v603_v6, %v597_v10  ;;  %v565_v0 = vpop.permute.xlu2 %564 }
 0x29d   :  { %v625_v12 = vmul.f32 %v621_v57, %v3109_v53  ;;  %v626_v50 = vmul.f32 %v620_v60, %v3086_v42  ;;  %v611_v13 = vmul.f32 %v607_v45, %v3116_v55  ;;  %v579_v57 = vmul.f32 %v3329_v58, %v3145_v8 }
 0x29f   :  { %680 = vmatpush.msrb.mxu1 %v625_v12  ;;  %700 = vmatpush.msrb.mxu2 %v626_v50 }
 0x2a0   :  { %721 = vmatpush.msrb.mxu3 %v611_v13  ;;  %v569_v13 = vsel %vm312_vm4, %v3386_v18, %v565_v0 }
 0x2a3   :  { %v587_v44 = vpop.permute.xlu1 %586  ;;  %v601_v51 = vpop.permute.xlu0 %600 }
 0x2a4   :  { %v605_v23 = vsel %vm362_vm2, %v599_v26, %v601_v51  ;;  %v604_v59 = vsel %vm362_vm2, %v601_v51, %v603_v6  ;;  %v591_v10 = vsel %vm341_vm3, %v587_v44, %v581_v25  ;;  %v535_v50 = vpop.permute.xlu2 %534  ;;  %v577_v51 = vmul.f32 %v3315_v49, %v3215_v20 }
 0x2a5   :  { %v609_v56 = vmul.f32 %v605_v23, %v3187_v39  ;;  %v610_v9 = vmul.f32 %v604_v59, %v3113_v54  ;;  %v595_v35 = vmul.f32 %v591_v10, %v3137_v4 }
 0x2a7   :  { %681 = vmatpush.msrb.mxu1 %v609_v56  ;;  %701 = vmatpush.msrb.mxu2 %v610_v9 }
 0x2a8   :  { %722 = vmatpush.msrb.mxu3 %v595_v35 }
 0x2aa   :  { %723 = vmatpush.msrb.mxu3 %v579_v57 }
 0x2ab   :  { %v551_v26 = vpop.permute.xlu1 %550  ;;  %v585_v60 = vpop.permute.xlu0 %584 }
 0x2ac   :  { %v589_v6 = vsel %vm341_vm3, %v583_v24, %v585_v60  ;;  %v588_v25 = vsel %vm341_vm3, %v585_v60, %v587_v44  ;;  %v578_v24 = vmul.f32 %v3337_v40, %v3142_v7  ;;  %v574_v44 = vmul.f32 %v569_v13, %v3170_v27  ;;  %v519_v9 = vpop.permute.xlu2 %518 }
 0x2ad   :  { %v593_v45 = vmul.f32 %v589_v6, %v3195_v48  ;;  %v594_v12 = vmul.f32 %v588_v25, %v3134_v3 }
 0x2af   :  { %682 = vmatpush.msrb.mxu1 %v593_v45  ;;  %702 = vmatpush.msrb.mxu2 %v594_v12 }
 0x2b1   :  { %683 = vmatpush.msrb.mxu1 %v577_v51  ;;  %703 = vmatpush.msrb.mxu2 %v578_v24 }
 0x2b3   :  { %v533_v23 = vpop.permute.xlu1 %532  ;;  %v567_v59 = vpop.permute.xlu0 %566  ;;  %704 = vmatpush.msrb.mxu2 %v574_v44 }
 0x2b4   :  { %v568_v10 = vsel %vm312_vm4, %v565_v0, %v567_v59  ;;  %v537_v25 = vsel %vm270_vm6, %v3388_v19, %v533_v23  ;;  %v536_v0 = vsel %vm270_vm6, %v533_v23, %v535_v50 }
 0x2b5   :  { %v575_v56 = vmul.f32 %v568_v10, %v3157_v17  ;;  %v542_v24 = vmul.f32 %v537_v25, %v3237_v14  ;;  %v543_v44 = vmul.f32 %v536_v0, %v3240_v15 }
 0x2b7   :  { %724 = vmatpush.msrb.mxu3 %v575_v56  ;;  %v510_v56 = vld [vmem:[%s2859_s14] sm:$0xff]  ;;  %s5159_s14 = sld [smem:[#allocation11_spill]] }
 0x2bb   :  { %v517_v35 = vpop.permute.xlu1 %516  ;;  %v549_v57 = vpop.permute.xlu0 %548 }
 0x2bc   :  { %v553_v60 = vsel %vm291_vm5, %v3401_v5, %v549_v57  ;;  %v552_v6 = vsel %vm291_vm5, %v549_v57, %v551_v26  ;;  %v521_v13 = vsel %vm249_vm7, %v3399_v36, %v517_v35  ;;  %v520_v51 = vsel %vm249_vm7, %v517_v35, %v519_v9  ;;  %v529_v57 = vpop.permute.xlu2 %528 }
 0x2bd   :  { %v558_v45 = vmul.f32 %v553_v60, %v3174_v34  ;;  %v559_v12 = vmul.f32 %v552_v6, %v3224_v63  ;;  %v526_v23 = vmul.f32 %v521_v13, %v3259_v37  ;;  %v527_v10 = vmul.f32 %v520_v51, %v3262_v46 }
 0x2be   :  { %v539_v51 = vsel %vm270_vm6, %v535_v50, %v529_v57 }
 0x2bf   :  { %705 = vmatpush.msrb.mxu2 %v558_v45  ;;  %725 = vmatpush.msrb.mxu3 %v559_v12 }
 0x2c1   :  { %706 = vmatpush.msrb.mxu2 %v542_v24  ;;  %726 = vmatpush.msrb.mxu3 %v543_v44  ;;  %v540_v24 = vmul.f32 %v539_v51, %v3280_v62 }
 0x2c3   :  { %v545_v60 = vpop.permute.xlu1 %544  ;;  %v561_v6 = vpop.permute.xlu0 %560  ;;  %707 = vmatpush.msrb.mxu2 %v526_v23  ;;  %727 = vmatpush.msrb.mxu3 %v527_v10 }
 0x2c4   :  { %2598 = vmatmul.msk.f32.vlgmr.msrb.gmra.mxu2 %vm422_vm8, %v510_v56  ;;  %2599 = vmatmul.msk.f32.vlgmr.msrb.gmra.mxu3 %vm422_vm8, %v510_v56  ;;  %v571_v35 = vsel %vm312_vm4, %v567_v59, %v561_v6  ;;  %v570_v25 = vsel %vm312_vm4, %v561_v6, %v3386_v18  ;;  %v555_v0 = vsel %vm291_vm5, %v551_v26, %v545_v60 }
 0x2c5   :  { %v572_v45 = vmul.f32 %v571_v35, %v3231_v11  ;;  %v573_v12 = vmul.f32 %v570_v25, %v3234_v16  ;;  %v554_v13 = vsel %vm291_vm5, %v545_v60, %v3401_v5  ;;  %v538_v59 = vsel %vm270_vm6, %v529_v57, %v3388_v19 }
 0x2c6   :  { %v556_v18 = vmul.f32 %v555_v0, %v3274_v41  ;;  %v557_v26 = vmul.f32 %v554_v13, %v3277_v31  ;;  %v541_v44 = vmul.f32 %v538_v59, %v3283_v2  ;;  %v737_v59 = vld [vmem:[%s2874_s30] sm:$0xff]  ;;  %s5231_s30 = sld [smem:[#allocation12_spill]] }
 0x2c7   :  { %664 = vmatpush.msrb.mxu0 %v572_v45  ;;  %684 = vmatpush.msrb.mxu1 %v573_v12 }
 0x2c9   :  { %665 = vmatpush.msrb.mxu0 %v556_v18  ;;  %685 = vmatpush.msrb.mxu1 %v557_v26 }
 0x2cb   :  { %v513_v5 = vpop.permute.xlu0 %512  ;;  %666 = vmatpush.msrb.mxu0 %v540_v24  ;;  %686 = vmatpush.msrb.mxu1 %v541_v44  ;;  %v647_v57 = vpop.permute.xlu1 %646 }
 0x2cc   :  { %v523_v50 = vsel %vm249_vm7, %v519_v9, %v513_v5  ;;  %v522_v19 = vsel %vm249_vm7, %v513_v5, %v3399_v36 }
 0x2cd   :  { %v524_v23 = vmul.f32 %v523_v50, %v3298_v32  ;;  %v525_v10 = vmul.f32 %v522_v19, %v3301_v1 }
 0x2cf   :  { %667 = vmatpush.msrb.mxu0 %v524_v23  ;;  %687 = vmatpush.msrb.mxu1 %v525_v10 }
 0x2d0   :  { %2596 = vmatmul.msk.f32.vlgmr.msrb.gmra.mxu0 %vm422_vm8, %v510_v56  ;;  %2597 = vmatmul.msk.f32.vlgmr.msrb.gmra.mxu1 %vm422_vm8, %v510_v56 }
 0x347   :  { %v729_v36 = vpop.f32.mrf.mxu3  ;;  %v709_v12 = vpop.f32.mrf.mxu2 }
 0x348   :  { %v730_v56 = vadd.f32 %v729_v36, %v647_v57  ;;  %v710_v13 = vadd.f32 %v709_v12, %v647_v57 }
 0x34a   :  { %v3527_v45 = vmax.f32 %v730_v56, 0.0  ;;  %v3535_v51 = vmax.f32 %v710_v13, 0.0 }
 0x34d   :  { %v669_v60 = vpop.f32.mrf.mxu0  ;;  %v689_v6 = vpop.f32.mrf.mxu1 }
 0x34e   :  { %v670_v35 = vadd.f32 %v669_v60, %v647_v57  ;;  %v690_v25 = vadd.f32 %v689_v6, %v647_v57 }
 0x350   :  { %v3511_v9 = vmax.f32 %v670_v35, 0.0  ;;  %v3513_v0 = vmax.f32 %v690_v25, 0.0 }
 0x352   :  { %788 = vrot.lane.b32.xlu1 %v3513_v0, %s2796_s26  ;;  %840 = vrot.lane.b32.xlu0 %v3513_v0, %s2793_s25 }
 0x353   :  { %854 = vrot.lane.b32.xlu2 %v3511_v9, %s2792_s17 }
 0x35a   :  { %824 = vrot.lane.b32.xlu1 %v3513_v0, %s2794_s29  ;;  %756 = vrot.lane.b32.xlu0 %v3513_v0, %s2798_s28 }
 0x35b   :  { %838 = vrot.lane.b32.xlu2 %v3511_v9, %s2793_s25 }
 0x362   :  { %860 = vrot.lane.b32.xlu1 %v3527_v45, %s2792_s17  ;;  %740 = vrot.lane.b32.xlu0 %v3513_v0, %s2799_s1 }
 0x363   :  { %822 = vrot.lane.b32.xlu2 %v3511_v9, %s2794_s29 }
 0x36a   :  { %844 = vrot.lane.b32.xlu1 %v3527_v45, %s2793_s25  ;;  %858 = vrot.lane.b32.xlu0 %v3535_v51, %s2792_s17 }
 0x36b   :  { %806 = vrot.lane.b32.xlu2 %v3511_v9, %s2795_s23 }
 0x372   :  { %828 = vrot.lane.b32.xlu1 %v3527_v45, %s2794_s29  ;;  %842 = vrot.lane.b32.xlu0 %v3535_v51, %s2793_s25 }
 0x373   :  { %856 = vrot.lane.b32.xlu2 %v3513_v0, %s2792_s17 }
 0x37a   :  { %812 = vrot.lane.b32.xlu1 %v3527_v45, %s2795_s23  ;;  %826 = vrot.lane.b32.xlu0 %v3535_v51, %s2794_s29 }
 0x37b   :  { %772 = vrot.lane.b32.xlu2 %v3513_v0, %s2797_s5 }
 0x382   :  { %776 = vrot.lane.b32.xlu1 %v3527_v45, %s2797_s5  ;;  %810 = vrot.lane.b32.xlu0 %v3535_v51, %s2795_s23 }
 0x383   :  { %808 = vrot.lane.b32.xlu2 %v3513_v0, %s2795_s23 }
 0x38a   :  { %758 = vrot.lane.b32.xlu1 %v3535_v51, %s2798_s28  ;;  %792 = vrot.lane.b32.xlu0 %v3527_v45, %s2796_s26 }
 0x38b   :  { %790 = vrot.lane.b32.xlu2 %v3535_v51, %s2796_s26 }
 0x392   :  { %742 = vrot.lane.b32.xlu1 %v3535_v51, %s2799_s1  ;;  %774 = vrot.lane.b32.xlu0 %v3535_v51, %s2797_s5 }
 0x393   :  { %760 = vrot.lane.b32.xlu2 %v3527_v45, %s2798_s28 }
 0x39a   :  { %770 = vrot.lane.b32.xlu1 %v3511_v9, %s2797_s5  ;;  %786 = vrot.lane.b32.xlu0 %v3511_v9, %s2796_s26 }
 0x39b   :  { %744 = vrot.lane.b32.xlu2 %v3527_v45, %s2799_s1 }
 0x3a2   :  { %872 = vperm.xlu1 %2694, %v737_v59   ;;  %738 = vrot.lane.b32.xlu0 %v3511_v9, %s2799_s1 }
 0x3a3   :  { %754 = vrot.lane.b32.xlu2 %v3511_v9, %s2798_s28 }
 0x3ad   :  { %v855_v18 = vpop.permute.xlu2 %854 }
 0x3b5   :  { %v839_v26 = vpop.permute.xlu2 %838 }
 0x3bd   :  { %v823_v24 = vpop.permute.xlu2 %822 }
 0x3c4   :  { %v3584_v44 = vpop.permute.xlu1 %788  ;;  %v841_v5 = vpop.permute.xlu0 %840 }
 0x3c5   :  { %v807_v50 = vpop.permute.xlu2 %806  ;;  %v848_v57 = vsel %vm383_vm1, %v839_v26, %v841_v5 }
 0x3c6   :  { %v850_v25 = vmul.f32 %v848_v57, %v3106_v52 }
 0x3cc   :  { %v825_v19 = vpop.permute.xlu1 %824  ;;  %v3586_v23 = vpop.permute.xlu0 %756 }
 0x3cd   :  { %v857_v10 = vpop.permute.xlu2 %856  ;;  %v832_v35 = vsel %vm362_vm2, %v823_v24, %v825_v19 }
 0x3ce   :  { %v864_v60 = vsel %vm404_vm0, %v855_v18, %v857_v10  ;;  %v834_v36 = vmul.f32 %v832_v35, %v3184_v38 }
 0x3cf   :  { %v866_v6 = vmul.f32 %v3059_v28, %v864_v60 }
 0x3d1   :  { %885 = vmatpush.msra.mxu0 %v866_v6 }
 0x3d3   :  { %886 = vmatpush.msra.mxu0 %v850_v25 }
 0x3d4   :  { %v861_v56 = vpop.permute.xlu1 %860  ;;  %v3597_v12 = vpop.permute.xlu0 %740 }
 0x3d5   :  { %v865_v13 = vsel %vm404_vm0, %v861_v56, %v855_v18  ;;  %887 = vmatpush.msra.mxu0 %v834_v36  ;;  %v3601_v59 = vpop.permute.xlu2 %772 }
 0x3d6   :  { %v869_v28 = vmul.f32 %v3051_v22, %v865_v13 }
 0x3d8   :  { %945 = vmatpush.msra.mxu3 %v869_v28 }
 0x3dc   :  { %v845_v60 = vpop.permute.xlu1 %844  ;;  %v859_v40 = vpop.permute.xlu0 %858 }
 0x3dd   :  { %v849_v57 = vsel %vm383_vm1, %v845_v60, %v839_v26  ;;  %v862_v6 = vsel %vm404_vm0, %v859_v40, %v861_v56  ;;  %v863_v35 = vsel %vm404_vm0, %v857_v10, %v859_v40  ;;  %v809_v25 = vpop.permute.xlu2 %808  ;;  %v802_v26 = vmul.f32 %v3511_v9, %v3212_v61 }
 0x3de   :  { %v867_v18 = vmul.f32 %v3062_v29, %v863_v35  ;;  %v868_v36 = vmul.f32 %v3065_v30, %v862_v6  ;;  %v816_v22 = vsel %vm341_vm3, %v807_v50, %v809_v25  ;;  %v853_v13 = vmul.f32 %v849_v57, %v3089_v43 }
 0x3df   :  { %v818_v28 = vmul.f32 %v816_v22, %v3192_v47 }
 0x3e0   :  { %905 = vmatpush.msra.mxu1 %v867_v18  ;;  %925 = vmatpush.msra.mxu2 %v868_v36 }
 0x3e1   :  { %888 = vmatpush.msra.mxu0 %v818_v28  ;;  %946 = vmatpush.msra.mxu3 %v853_v13 }
 0x3e3   :  { %889 = vmatpush.msra.mxu0 %v802_v26  ;;  %v805_v26 = vmul.f32 %v3527_v45, %v3145_v8  ;;  %v803_v45 = vmul.f32 %v3513_v0, %v3215_v20 }
 0x3e4   :  { %v829_v40 = vpop.permute.xlu1 %828  ;;  %v843_v10 = vpop.permute.xlu0 %842 }
 0x3e5   :  { %v833_v29 = vsel %vm362_vm2, %v829_v40, %v823_v24  ;;  %v846_v30 = vsel %vm383_vm1, %v843_v10, %v845_v60  ;;  %v847_v56 = vsel %vm383_vm1, %v841_v5, %v843_v10  ;;  %v791_v36 = vpop.permute.xlu2 %790 }
 0x3e6   :  { %v851_v57 = vmul.f32 %v847_v56, %v3109_v53  ;;  %v852_v6 = vmul.f32 %v846_v30, %v3086_v42  ;;  %v837_v35 = vmul.f32 %v833_v29, %v3116_v55  ;;  %v795_v56 = vsel %vm312_vm4, %v3584_v44, %v791_v36 }
 0x3e8   :  { %906 = vmatpush.msra.mxu1 %v851_v57  ;;  %926 = vmatpush.msra.mxu2 %v852_v6  ;;  %v804_v6 = vmul.f32 %v3535_v51, %v3142_v7 }
 0x3e9   :  { %947 = vmatpush.msra.mxu3 %v837_v35 }
 0x3ec   :  { %v813_v9 = vpop.permute.xlu1 %812  ;;  %v827_v18 = vpop.permute.xlu0 %826 }
 0x3ed   :  { %v817_v24 = vsel %vm341_vm3, %v813_v9, %v807_v50  ;;  %v830_v60 = vsel %vm362_vm2, %v827_v18, %v829_v40  ;;  %v831_v5 = vsel %vm362_vm2, %v825_v19, %v827_v18  ;;  %v761_v57 = vpop.permute.xlu2 %760 }
 0x3ee   :  { %v835_v22 = vmul.f32 %v831_v5, %v3187_v39  ;;  %v836_v13 = vmul.f32 %v830_v60, %v3113_v54  ;;  %v821_v28 = vmul.f32 %v817_v24, %v3137_v4 }
 0x3f0   :  { %907 = vmatpush.msra.mxu1 %v835_v22  ;;  %927 = vmatpush.msra.mxu2 %v836_v13 }
 0x3f1   :  { %948 = vmatpush.msra.mxu3 %v821_v28 }
 0x3f3   :  { %949 = vmatpush.msra.mxu3 %v805_v26 }
 0x3f4   :  { %v777_v50 = vpop.permute.xlu1 %776  ;;  %v811_v10 = vpop.permute.xlu0 %810 }
 0x3f5   :  { %v814_v40 = vsel %vm341_vm3, %v811_v10, %v813_v9  ;;  %v815_v19 = vsel %vm341_vm3, %v809_v25, %v811_v10  ;;  %v800_v25 = vmul.f32 %v795_v56, %v3170_v27  ;;  %v745_v60 = vpop.permute.xlu2 %744 }
 0x3f6   :  { %v819_v29 = vmul.f32 %v815_v19, %v3195_v48  ;;  %v820_v30 = vmul.f32 %v814_v40, %v3134_v3 }
 0x3f8   :  { %908 = vmatpush.msra.mxu1 %v819_v29  ;;  %928 = vmatpush.msra.mxu2 %v820_v30 }
 0x3fa   :  { %909 = vmatpush.msra.mxu1 %v803_v45  ;;  %929 = vmatpush.msra.mxu2 %v804_v6  ;;  %v736_v45 = vld [vmem:[%s2869_s24] sm:$0xff]  ;;  %s2801_s24 = smov 120  }
 0x3fc   :  { %v759_v35 = vpop.permute.xlu1 %758  ;;  %v793_v9 = vpop.permute.xlu0 %792  ;;  %930 = vmatpush.msra.mxu2 %v800_v25 }
 0x3fd   :  { %v794_v18 = vsel %vm312_vm4, %v791_v36, %v793_v9  ;;  %v762_v0 = vsel %vm270_vm6, %v759_v35, %v761_v57  ;;  %v763_v51 = vsel %vm270_vm6, %v3586_v23, %v759_v35  ;;  %v755_v6 = vpop.permute.xlu2 %754 }
 0x3fe   :  { %v801_v24 = vmul.f32 %v794_v18, %v3157_v17  ;;  %v768_v19 = vmul.f32 %v763_v51, %v3237_v14  ;;  %v769_v29 = vmul.f32 %v762_v0, %v3240_v15 }
 0x400   :  { %950 = vmatpush.msra.mxu3 %v801_v24 }
 0x404   :  { %v743_v5 = vpop.permute.xlu1 %742  ;;  %v775_v22 = vpop.permute.xlu0 %774 }
 0x405   :  { %v778_v13 = vsel %vm291_vm5, %v775_v22, %v777_v50  ;;  %v779_v36 = vsel %vm291_vm5, %v3601_v59, %v775_v22  ;;  %v746_v10 = vsel %vm249_vm7, %v743_v5, %v745_v60  ;;  %v747_v40 = vsel %vm249_vm7, %v3597_v12, %v743_v5 }
 0x406   :  { %v784_v28 = vmul.f32 %v779_v36, %v3174_v34  ;;  %v785_v26 = vmul.f32 %v778_v13, %v3224_v63  ;;  %v752_v30 = vmul.f32 %v747_v40, %v3259_v37  ;;  %v753_v56 = vmul.f32 %v746_v10, %v3262_v46 }
 0x408   :  { %931 = vmatpush.msra.mxu2 %v784_v28  ;;  %951 = vmatpush.msra.mxu3 %v785_v26 }
 0x40a   :  { %932 = vmatpush.msra.mxu2 %v768_v19  ;;  %952 = vmatpush.msra.mxu3 %v769_v29 }
 0x40c   :  { %v771_v25 = vpop.permute.xlu1 %770  ;;  %v787_v35 = vpop.permute.xlu0 %786  ;;  %933 = vmatpush.msra.mxu2 %v752_v30  ;;  %953 = vmatpush.msra.mxu3 %v753_v56 }
 0x40d   :  { %v780_v18 = vsel %vm291_vm5, %v771_v25, %v3601_v59  ;;  %v781_v24 = vsel %vm291_vm5, %v777_v50, %v771_v25  ;;  %v796_v5 = vsel %vm312_vm4, %v787_v35, %v3584_v44  ;;  %v797_v22 = vsel %vm312_vm4, %v793_v9, %v787_v35  ;;  %2602 = vmatmul.msk.f32.vlgmr.msra.gmra.mxu2 %vm422_vm8, %v736_v45 }
 0x40e   :  { %2603 = vmatmul.msk.f32.vlgmr.msra.gmra.mxu3 %vm422_vm8, %v736_v45  ;;  %v798_v0 = vmul.f32 %v797_v22, %v3231_v11  ;;  %v799_v51 = vmul.f32 %v796_v5, %v3234_v16  ;;  %v764_v59 = vsel %vm270_vm6, %v755_v6, %v3586_v23  ;;  %v765_v50 = vsel %vm270_vm6, %v761_v57, %v755_v6 }
 0x40f   :  { %v782_v44 = vmul.f32 %v781_v24, %v3274_v41  ;;  %v783_v9 = vmul.f32 %v780_v18, %v3277_v31  ;;  %v766_v13 = vmul.f32 %v765_v50, %v3280_v62  ;;  %v767_v36 = vmul.f32 %v764_v59, %v3283_v2  ;;  %v5089_v24 = vld [vmem:[#allocation32_spill] sm:$0xff] }
 0x410   :  { %890 = vmatpush.msra.mxu0 %v798_v0  ;;  %910 = vmatpush.msra.mxu1 %v799_v51  ;;  %v967_v0 = vld [vmem:[%s2884_s12] sm:$0xff]  ;;  %s2802_s12 = smov 7  }
 0x412   :  { %891 = vmatpush.msra.mxu0 %v782_v44  ;;  %911 = vmatpush.msra.mxu1 %v783_v9 }
 0x414   :  { %v739_v28 = vpop.permute.xlu0 %738  ;;  %892 = vmatpush.msra.mxu0 %v766_v13  ;;  %912 = vmatpush.msra.mxu1 %v767_v36  ;;  %v873_v40 = vpop.permute.xlu1 %872 }
 0x415   :  { %v748_v23 = vsel %vm249_vm7, %v739_v28, %v3597_v12  ;;  %v749_v57 = vsel %vm249_vm7, %v745_v60, %v739_v28  ;;  %v3791_v28 = vld [vmem:[%s2819_s9 + $0x20] ss:$0 sm:$0xff] }
 0x416   :  { %v750_v26 = vmul.f32 %v749_v57, %v3298_v32  ;;  %v751_v10 = vmul.f32 %v748_v23, %v3301_v1 }
 0x418   :  { %893 = vmatpush.msra.mxu0 %v750_v26  ;;  %913 = vmatpush.msra.mxu1 %v751_v10 }
 0x419   :  { %2600 = vmatmul.msk.f32.vlgmr.msra.gmra.mxu0 %vm422_vm8, %v736_v45  ;;  %2601 = vmatmul.msk.f32.vlgmr.msra.gmra.mxu1 %vm422_vm8, %v736_v45 }
 0x491   :  { %v955_v45 = vpop.f32.mrf.mxu3 }
 0x492   :  { %v956_v35 = vadd.f32 %v955_v45, %v873_v40 }
 0x496   :  { %v895_v19 = vpop.f32.mrf.mxu0  ;;  %v915_v29 = vpop.f32.mrf.mxu1 }
 0x497   :  { %v896_v30 = vadd.f32 %v895_v19, %v873_v40  ;;  %v916_v56 = vadd.f32 %v915_v29, %v873_v40 }
 0x499   :  { %v958_v12 = vadd.f32 %v896_v30, %v3313_v33  ;;  %v959_v6 = vadd.f32 %v916_v56, %v3315_v49  ;;  %v961_v33 = vadd.f32 %v956_v35, %v3329_v58  ;;  %v935_v58 = vpop.f32.mrf.mxu2 }
 0x49a   :  { %v936_v18 = vadd.f32 %v935_v58, %v873_v40 }
 0x49b   :  { %v3711_v60 = vmax.f32 %v958_v12, 0.0  ;;  %v3713_v25 = vmax.f32 %v959_v6, 0.0  ;;  %v3728_v49 = vmax.f32 %v961_v33, 0.0  ;;  %v3808_v6 = vld [vmem:[%s2819_s9 + $0x38] ss:$0 sm:$0xff] }
 0x49c   :  { %v960_v5 = vadd.f32 %v936_v18, %v5089_v24 }
 0x49d   :  { %5086 = vst [vmem:[#allocation33_spill] sm:$0xff] %v3711_v60  ;;  %1054 = vrot.lane.b32.xlu1 %v3713_v25, %s2794_s29  ;;  %1036 = vrot.lane.b32.xlu0 %v3711_v60, %s2795_s23 }
 0x49e   :  { %5087 = vst [vmem:[#allocation34_spill] sm:$0xff] %v3713_v25  ;;  %1084 = vrot.lane.b32.xlu2 %v3711_v60, %s2792_s17  ;;  %v3749_v22 = vmax.f32 %v960_v5, 0.0 }
 0x49f   :  { %5088 = vst [vmem:[#allocation35_spill] sm:$0xff] %v3728_v49 }
 0x4a0   :  { %5090 = vst [vmem:[#allocation32_spill] sm:$0xff] %v3749_v22 }
 0x4a5   :  { %970 = vrot.lane.b32.xlu1 %v3713_v25, %s2799_s1  ;;  %1016 = vrot.lane.b32.xlu0 %v3711_v60, %s2796_s26 }
 0x4a6   :  { %1068 = vrot.lane.b32.xlu2 %v3711_v60, %s2793_s25 }
 0x4ad   :  { %1090 = vrot.lane.b32.xlu1 %v3728_v49, %s2792_s17  ;;  %1070 = vrot.lane.b32.xlu0 %v3713_v25, %s2793_s25 }
 0x4ae   :  { %1052 = vrot.lane.b32.xlu2 %v3711_v60, %s2794_s29 }
 0x4b5   :  { %1074 = vrot.lane.b32.xlu1 %v3728_v49, %s2793_s25  ;;  %1002 = vrot.lane.b32.xlu0 %v3713_v25, %s2797_s5 }
 0x4b6   :  { %1086 = vrot.lane.b32.xlu2 %v3713_v25, %s2792_s17 }
 0x4bd   :  { %1058 = vrot.lane.b32.xlu1 %v3728_v49, %s2794_s29  ;;  %986 = vrot.lane.b32.xlu0 %v3713_v25, %s2798_s28 }
 0x4be   :  { %1018 = vrot.lane.b32.xlu2 %v3713_v25, %s2796_s26 }
 0x4c5   :  { %1040 = vrot.lane.b32.xlu1 %v3749_v22, %s2795_s23  ;;  %1088 = vrot.lane.b32.xlu0 %v3749_v22, %s2792_s17 }
 0x4c6   :  { %1038 = vrot.lane.b32.xlu2 %v3713_v25, %s2795_s23 }
 0x4cd   :  { %1022 = vrot.lane.b32.xlu1 %v3728_v49, %s2796_s26  ;;  %1072 = vrot.lane.b32.xlu0 %v3749_v22, %s2793_s25 }
 0x4ce   :  { %1042 = vrot.lane.b32.xlu2 %v3728_v49, %s2795_s23 }
 0x4d5   :  { %1004 = vrot.lane.b32.xlu1 %v3749_v22, %s2797_s5  ;;  %1056 = vrot.lane.b32.xlu0 %v3749_v22, %s2794_s29 }
 0x4d6   :  { %1006 = vrot.lane.b32.xlu2 %v3728_v49, %s2797_s5 }
 0x4dd   :  { %988 = vrot.lane.b32.xlu1 %v3749_v22, %s2798_s28  ;;  %1020 = vrot.lane.b32.xlu0 %v3749_v22, %s2796_s26 }
 0x4de   :  { %990 = vrot.lane.b32.xlu2 %v3728_v49, %s2798_s28 }
 0x4e5   :  { %1000 = vrot.lane.b32.xlu1 %v3711_v60, %s2797_s5  ;;  %974 = vrot.lane.b32.xlu0 %v3728_v49, %s2799_s1 }
 0x4e6   :  { %972 = vrot.lane.b32.xlu2 %v3749_v22, %s2799_s1 }
 0x4ed   :  { %1102 = vperm.xlu1 %2694, %v967_v0   ;;  %968 = vrot.lane.b32.xlu0 %v3711_v60, %s2799_s1  ;;  %v1032_v0 = vmul.f32 %v3711_v60, %v3212_v61 }
 0x4ee   :  { %984 = vrot.lane.b32.xlu2 %v3711_v60, %s2798_s28 }
 0x4f8   :  { %v1085_v51 = vpop.permute.xlu2 %1084 }
 0x500   :  { %v1069_v59 = vpop.permute.xlu2 %1068 }
 0x508   :  { %v1053_v50 = vpop.permute.xlu2 %1052 }
 0x50f   :  { %v3786_v44 = vpop.permute.xlu1 %1054  ;;  %v1037_v9 = vpop.permute.xlu0 %1036 }
 0x510   :  { %v1087_v13 = vpop.permute.xlu2 %1086  ;;  %v1062_v29 = vsel %vm362_vm2, %v1053_v50, %v3786_v44 }
 0x511   :  { %v1094_v36 = vsel %vm404_vm0, %v1085_v51, %v1087_v13  ;;  %v1064_v58 = vmul.f32 %v1062_v29, %v3184_v38 }
 0x512   :  { %v1096_v23 = vmul.f32 %v3791_v28, %v1094_v36 }
 0x514   :  { %1115 = vmatpush.msrb.mxu0 %v1096_v23 }
 0x517   :  { %v3794_v57 = vpop.permute.xlu1 %970  ;;  %v3796_v26 = vpop.permute.xlu0 %1016 }
 0x518   :  { %v3798_v10 = vpop.permute.xlu2 %1018 }
 0x51f   :  { %v1091_v40 = vpop.permute.xlu1 %1090  ;;  %v1071_v19 = vpop.permute.xlu0 %1070 }
 0x520   :  { %v1095_v30 = vsel %vm404_vm0, %v1091_v40, %v1085_v51  ;;  %v1078_v56 = vsel %vm383_vm1, %v1069_v59, %v1071_v19  ;;  %v1039_v12 = vpop.permute.xlu2 %1038 }
 0x521   :  { %v1099_v45 = vmul.f32 %v3808_v6, %v1095_v30  ;;  %v1080_v35 = vmul.f32 %v1078_v56, %v3106_v52  ;;  %v1046_v33 = vsel %vm341_vm3, %v1037_v9, %v1039_v12 }
 0x522   :  { %v1048_v18 = vmul.f32 %v1046_v33, %v3192_v47  ;;  %v1035_v33 = vmul.f32 %v3728_v49, %v3145_v8 }
 0x523   :  { %1116 = vmatpush.msrb.mxu0 %v1080_v35  ;;  %1175 = vmatpush.msrb.mxu3 %v1099_v45 }
 0x525   :  { %1117 = vmatpush.msrb.mxu0 %v1064_v58 }
 0x527   :  { %v1075_v24 = vpop.permute.xlu1 %1074  ;;  %v3816_v5 = vpop.permute.xlu0 %1002  ;;  %1118 = vmatpush.msrb.mxu0 %v1048_v18 }
 0x528   :  { %v1079_v51 = vsel %vm383_vm1, %v1075_v24, %v1069_v59  ;;  %v1043_v23 = vpop.permute.xlu2 %1042 }
 0x529   :  { %1119 = vmatpush.msrb.mxu0 %v1032_v0  ;;  %v1083_v36 = vmul.f32 %v1079_v51, %v3089_v43  ;;  %v1047_v56 = vsel %vm341_vm3, %v1043_v23, %v1037_v9  ;;  %v3840_v51 = vld [vmem:[%s2819_s9 + $0x28] ss:$0 sm:$0xff] }
 0x52a   :  { %v1051_v59 = vmul.f32 %v1047_v56, %v3137_v4  ;;  %v3844_v56 = vld [vmem:[%s2819_s9 + $0x30] ss:$0 sm:$0xff] }
 0x52b   :  { %1176 = vmatpush.msrb.mxu3 %v1083_v36 }
 0x52f   :  { %v1059_v29 = vpop.permute.xlu1 %1058  ;;  %v3823_v30 = vpop.permute.xlu0 %986 }
 0x530   :  { %v1063_v45 = vsel %vm362_vm2, %v1059_v29, %v1053_v50  ;;  %v3833_v58 = vpop.permute.xlu2 %1006 }
 0x531   :  { %v1067_v35 = vmul.f32 %v1063_v45, %v3116_v55 }
 0x533   :  { %1177 = vmatpush.msrb.mxu3 %v1067_v35 }
 0x535   :  { %1178 = vmatpush.msrb.mxu3 %v1051_v59 }
 0x537   :  { %v1041_v18 = vpop.permute.xlu1 %1040  ;;  %v1089_v0 = vpop.permute.xlu0 %1088  ;;  %1179 = vmatpush.msrb.mxu3 %v1035_v33 }
 0x538   :  { %v1092_v9 = vsel %vm404_vm0, %v1089_v0, %v1091_v40  ;;  %v1093_v50 = vsel %vm404_vm0, %v1087_v13, %v1089_v0  ;;  %v991_v0 = vpop.permute.xlu2 %990  ;;  %v1044_v60 = vsel %vm341_vm3, %v1041_v18, %v1043_v23 }
 0x539   :  { %v1097_v36 = vmul.f32 %v3840_v51, %v1093_v50  ;;  %v1098_v45 = vmul.f32 %v3844_v56, %v1092_v9  ;;  %v1050_v23 = vmul.f32 %v1044_v60, %v3134_v3 }
 0x53b   :  { %1135 = vmatpush.msrb.mxu1 %v1097_v36  ;;  %1155 = vmatpush.msrb.mxu2 %v1098_v45 }
 0x53f   :  { %v1023_v35 = vpop.permute.xlu1 %1022  ;;  %v1073_v59 = vpop.permute.xlu0 %1072 }
 0x540   :  { %v1027_v33 = vsel %vm312_vm4, %v1023_v35, %v3796_v26  ;;  %v1076_v40 = vsel %vm383_vm1, %v1073_v59, %v1075_v24  ;;  %v1077_v13 = vsel %vm383_vm1, %v1071_v19, %v1073_v59  ;;  %v1045_v24 = vsel %vm341_vm3, %v1039_v12, %v1041_v18 }
 0x541   :  { %v1028_v50 = vmul.f32 %v1027_v33, %v3231_v11  ;;  %v1081_v49 = vmul.f32 %v1077_v13, %v3109_v53  ;;  %v1082_v9 = vmul.f32 %v1076_v40, %v3086_v42  ;;  %v973_v40 = vpop.permute.xlu2 %972  ;;  %v1049_v13 = vmul.f32 %v1045_v24, %v3195_v48 }
 0x542   :  { %v1026_v12 = vsel %vm312_vm4, %v3796_v26, %v3798_v10 }
 0x543   :  { %1120 = vmatpush.msrb.mxu0 %v1028_v50  ;;  %1136 = vmatpush.msrb.mxu1 %v1081_v49 }
 0x544   :  { %1156 = vmatpush.msrb.mxu2 %v1082_v9  ;;  %v1029_v9 = vmul.f32 %v1026_v12, %v3234_v16 }
 0x547   :  { %v1005_v36 = vpop.permute.xlu1 %1004  ;;  %v1057_v45 = vpop.permute.xlu0 %1056 }
 0x548   :  { %v1060_v19 = vsel %vm362_vm2, %v1057_v45, %v1059_v29  ;;  %v1061_v59 = vsel %vm362_vm2, %v3786_v44, %v1057_v45  ;;  %v1033_v44 = vmul.f32 %v3713_v25, %v3215_v20  ;;  %v1034_v29 = vmul.f32 %v3749_v22, %v3142_v7 }
 0x549   :  { %v1065_v33 = vmul.f32 %v1061_v59, %v3187_v39  ;;  %v1066_v49 = vmul.f32 %v1060_v19, %v3113_v54  ;;  %v1008_v60 = vsel %vm291_vm5, %v1005_v36, %v3833_v58  ;;  %v1009_v26 = vsel %vm291_vm5, %v3816_v5, %v1005_v36 }
 0x54a   :  { %v1015_v36 = vmul.f32 %v1008_v60, %v3224_v63 }
 0x54b   :  { %1137 = vmatpush.msrb.mxu1 %v1065_v33  ;;  %1157 = vmatpush.msrb.mxu2 %v1066_v49 }
 0x54d   :  { %1138 = vmatpush.msrb.mxu1 %v1049_v13  ;;  %1158 = vmatpush.msrb.mxu2 %v1050_v23  ;;  %v985_v13 = vpop.permute.xlu2 %984 }
 0x54f   :  { %v989_v18 = vpop.permute.xlu1 %988  ;;  %v1021_v50 = vpop.permute.xlu0 %1020  ;;  %1139 = vmatpush.msrb.mxu1 %v1033_v44  ;;  %1159 = vmatpush.msrb.mxu2 %v1034_v29 }
 0x550   :  { %v1024_v45 = vsel %vm312_vm4, %v1021_v50, %v1023_v35  ;;  %v1025_v24 = vsel %vm312_vm4, %v3798_v10, %v1021_v50  ;;  %v992_v33 = vsel %vm270_vm6, %v989_v18, %v991_v0  ;;  %v993_v49 = vsel %vm270_vm6, %v3823_v30, %v989_v18  ;;  %v966_v50 = vld [vmem:[%s2879_s6] sm:$0xff]  ;;  %s5232_s6 = sld [smem:[#allocation16_spill]] }
 0x551   :  { %v1030_v19 = vmul.f32 %v1025_v24, %v3170_v27  ;;  %v1031_v59 = vmul.f32 %v1024_v45, %v3157_v17  ;;  %1140 = vmatpush.msrb.mxu1 %v1029_v9  ;;  %v1014_v35 = vmul.f32 %v1009_v26, %v3174_v34  ;;  %v977_v10 = vsel %vm249_vm7, %v3794_v57, %v973_v40 }
 0x552   :  { %v998_v23 = vmul.f32 %v993_v49, %v3237_v14  ;;  %v999_v12 = vmul.f32 %v992_v33, %v3240_v15  ;;  %v982_v44 = vmul.f32 %v977_v10, %v3259_v37  ;;  %v995_v9 = vsel %vm270_vm6, %v991_v0, %v985_v13 }
 0x553   :  { %1160 = vmatpush.msrb.mxu2 %v1030_v19  ;;  %1180 = vmatpush.msrb.mxu3 %v1031_v59  ;;  %v994_v24 = vsel %vm270_vm6, %v985_v13, %v3823_v30 }
 0x555   :  { %1161 = vmatpush.msrb.mxu2 %v1014_v35  ;;  %1181 = vmatpush.msrb.mxu3 %v1015_v36 }
 0x557   :  { %v1001_v29 = vpop.permute.xlu1 %1000  ;;  %v975_v18 = vpop.permute.xlu0 %974  ;;  %1162 = vmatpush.msrb.mxu2 %v998_v23  ;;  %1182 = vmatpush.msrb.mxu3 %v999_v12 }
 0x558   :  { %v1010_v60 = vsel %vm291_vm5, %v1001_v29, %v3816_v5  ;;  %v1011_v26 = vsel %vm291_vm5, %v3833_v58, %v1001_v29  ;;  %v976_v45 = vsel %vm249_vm7, %v973_v40, %v975_v18  ;;  %v996_v5 = vmul.f32 %v995_v9, %v3280_v62 }
 0x559   :  { %v1012_v19 = vmul.f32 %v1011_v26, %v3274_v41  ;;  %v1013_v59 = vmul.f32 %v1010_v60, %v3277_v31  ;;  %v983_v0 = vmul.f32 %v976_v45, %v3262_v46  ;;  %1163 = vmatpush.msrb.mxu2 %v982_v44  ;;  %v997_v58 = vmul.f32 %v994_v24, %v3283_v2  ;;  %v1193_v45 = vld [vmem:[%s2894_s27] sm:$0xff]  ;;  %s2803_s27 = smov 119  }
 0x55a   :  { %2606 = vmatmul.msk.f32.vlgmr.msrb.gmra.mxu2 %vm422_vm8, %v966_v50 }
 0x55b   :  { %1121 = vmatpush.msrb.mxu0 %v1012_v19  ;;  %1141 = vmatpush.msrb.mxu1 %v1013_v59 }
 0x55c   :  { %1183 = vmatpush.msrb.mxu3 %v983_v0 }
 0x55d   :  { %2607 = vmatmul.msk.f32.vlgmr.msrb.gmra.mxu3 %vm422_vm8, %v966_v50  ;;  %1122 = vmatpush.msrb.mxu0 %v996_v5 }
 0x55e   :  { %1142 = vmatpush.msrb.mxu1 %v997_v58 }
 0x55f   :  { %v969_v30 = vpop.permute.xlu0 %968  ;;  %v1103_v36 = vpop.permute.xlu1 %1102 }
 0x560   :  { %v978_v40 = vsel %vm249_vm7, %v969_v30, %v3794_v57  ;;  %v979_v33 = vsel %vm249_vm7, %v975_v18, %v969_v30 }
 0x561   :  { %v980_v49 = vmul.f32 %v979_v33, %v3298_v32  ;;  %v981_v35 = vmul.f32 %v978_v40, %v3301_v1 }
 0x563   :  { %1123 = vmatpush.msrb.mxu0 %v980_v49  ;;  %1143 = vmatpush.msrb.mxu1 %v981_v35 }
 0x564   :  { %2604 = vmatmul.msk.f32.vlgmr.msrb.gmra.mxu0 %vm422_vm8, %v966_v50  ;;  %2605 = vmatmul.msk.f32.vlgmr.msrb.gmra.mxu1 %vm422_vm8, %v966_v50 }
 0x5dd   :  { %v1165_v9 = vpop.f32.mrf.mxu2 }
 0x5de   :  { %v1166_v60 = vadd.f32 %v1165_v9, %v1103_v36 }
 0x5e0   :  { %v1185_v29 = vpop.f32.mrf.mxu3  ;;  %v3971_v26 = vmax.f32 %v1166_v60, 0.0 }
 0x5e1   :  { %v1125_v10 = vpop.f32.mrf.mxu0  ;;  %v1145_v57 = vpop.f32.mrf.mxu1  ;;  %v1186_v18 = vadd.f32 %v1185_v29, %v1103_v36 }
 0x5e2   :  { %v1126_v13 = vadd.f32 %v1125_v10, %v1103_v36  ;;  %v1146_v12 = vadd.f32 %v1145_v57, %v1103_v36 }
 0x5e3   :  { %v3963_v50 = vmax.f32 %v1186_v18, 0.0 }
 0x5e4   :  { %v3935_v23 = vmax.f32 %v1126_v13, 0.0  ;;  %v3949_v44 = vmax.f32 %v1146_v12, 0.0 }
 0x5e6   :  { %1262 = vrot.lane.b32.xlu0 %v3935_v23, %s2795_s23  ;;  %1294 = vrot.lane.b32.xlu1 %v3935_v23, %s2793_s25 }
 0x5e7   :  { %1310 = vrot.lane.b32.xlu2 %v3935_v23, %s2792_s17 }
 0x5ee   :  { %1242 = vrot.lane.b32.xlu0 %v3935_v23, %s2796_s26  ;;  %1194 = vrot.lane.b32.xlu1 %v3935_v23, %s2799_s1 }
 0x5ef   :  { %1278 = vrot.lane.b32.xlu2 %v3935_v23, %s2794_s29 }
 0x5f6   :  { %1210 = vrot.lane.b32.xlu0 %v3935_v23, %s2798_s28  ;;  %1264 = vrot.lane.b32.xlu1 %v3949_v44, %s2795_s23 }
 0x5f7   :  { %1226 = vrot.lane.b32.xlu2 %v3935_v23, %s2797_s5 }
 0x5fe   :  { %1312 = vrot.lane.b32.xlu0 %v3949_v44, %s2792_s17  ;;  %1244 = vrot.lane.b32.xlu1 %v3949_v44, %s2796_s26 }
 0x5ff   :  { %1296 = vrot.lane.b32.xlu2 %v3949_v44, %s2793_s25 }
 0x606   :  { %1280 = vrot.lane.b32.xlu0 %v3949_v44, %s2794_s29  ;;  %1316 = vrot.lane.b32.xlu1 %v3963_v50, %s2792_s17 }
 0x607   :  { %1228 = vrot.lane.b32.xlu2 %v3949_v44, %s2797_s5 }
 0x60e   :  { %1212 = vrot.lane.b32.xlu0 %v3949_v44, %s2798_s28  ;;  %1298 = vrot.lane.b32.xlu1 %v3971_v26, %s2793_s25 }
 0x60f   :  { %1300 = vrot.lane.b32.xlu2 %v3963_v50, %s2793_s25 }
 0x616   :  { %1314 = vrot.lane.b32.xlu0 %v3971_v26, %s2792_s17  ;;  %1266 = vrot.lane.b32.xlu1 %v3971_v26, %s2795_s23 }
 0x617   :  { %1282 = vrot.lane.b32.xlu2 %v3971_v26, %s2794_s29 }
 0x61e   :  { %1284 = vrot.lane.b32.xlu0 %v3963_v50, %s2794_s29  ;;  %1248 = vrot.lane.b32.xlu1 %v3963_v50, %s2796_s26 }
 0x61f   :  { %1268 = vrot.lane.b32.xlu2 %v3963_v50, %s2795_s23 }
 0x626   :  { %1232 = vrot.lane.b32.xlu0 %v3963_v50, %s2797_s5  ;;  %1216 = vrot.lane.b32.xlu1 %v3963_v50, %s2798_s28 }
 0x627   :  { %1246 = vrot.lane.b32.xlu2 %v3971_v26, %s2796_s26 }
 0x62e   :  { %1230 = vrot.lane.b32.xlu0 %v3971_v26, %s2797_s5  ;;  %1214 = vrot.lane.b32.xlu1 %v3971_v26, %s2798_s28 }
 0x62f   :  { %1200 = vrot.lane.b32.xlu2 %v3963_v50, %s2799_s1 }
 0x636   :  { %1198 = vrot.lane.b32.xlu0 %v3971_v26, %s2799_s1  ;;  %1328 = vperm.xlu1 %2694, %v1193_v45  }
 0x637   :  { %1196 = vrot.lane.b32.xlu2 %v3949_v44, %s2799_s1 }
 0x641   :  { %v1311_v24 = vpop.permute.xlu2 %1310 }
 0x649   :  { %v4008_v19 = vpop.permute.xlu2 %1278 }
 0x651   :  { %v4010_v59 = vpop.permute.xlu2 %1226 }
 0x658   :  { %v4012_v0 = vpop.permute.xlu0 %1262  ;;  %v1295_v5 = vpop.permute.xlu1 %1294 }
 0x659   :  { %v1297_v58 = vpop.permute.xlu2 %1296 }
 0x65a   :  { %v1304_v57 = vsel %vm383_vm1, %v1295_v5, %v1297_v58 }
 0x65b   :  { %v1306_v9 = vmul.f32 %v1304_v57, %v3106_v52 }
 0x660   :  { %v4014_v30 = vpop.permute.xlu0 %1242  ;;  %v4016_v40 = vpop.permute.xlu1 %1194 }
 0x661   :  { %v4018_v33 = vpop.permute.xlu2 %1228 }
 0x668   :  { %v4020_v49 = vpop.permute.xlu0 %1210  ;;  %v1265_v35 = vpop.permute.xlu1 %1264 }
 0x669   :  { %v1301_v36 = vpop.permute.xlu2 %1300  ;;  %v1272_v22 = vsel %vm341_vm3, %v4012_v0, %v1265_v35 }
 0x66a   :  { %v1305_v25 = vsel %vm383_vm1, %v1301_v36, %v1295_v5  ;;  %v1258_v5 = vmul.f32 %v3935_v23, %v3212_v61 }
 0x66b   :  { %v1309_v52 = vmul.f32 %v1305_v25, %v3089_v43 }
 0x670   :  { %v1313_v10 = vpop.permute.xlu0 %1312  ;;  %v4022_v13 = vpop.permute.xlu1 %1244 }
 0x671   :  { %v1320_v12 = vsel %vm404_vm0, %v1311_v24, %v1313_v10  ;;  %v1283_v29 = vpop.permute.xlu2 %1282 }
 0x672   :  { %v1322_v18 = vmul.f32 %v3791_v28, %v1320_v12 }
 0x674   :  { %1341 = vmatpush.msra.mxu0 %v1322_v18 }
 0x676   :  { %1342 = vmatpush.msra.mxu0 %v1306_v9  ;;  %v1274_v9 = vmul.f32 %v1272_v22, %v3192_v47 }
 0x678   :  { %v1281_v60 = vpop.permute.xlu0 %1280  ;;  %v1317_v45 = vpop.permute.xlu1 %1316 }
 0x679   :  { %v1288_v46 = vsel %vm362_vm2, %v4008_v19, %v1281_v60  ;;  %v1321_v28 = vsel %vm404_vm0, %v1317_v45, %v1311_v24  ;;  %v1269_v12 = vpop.permute.xlu2 %1268 }
 0x67a   :  { %v1290_v57 = vmul.f32 %v1288_v46, %v3184_v38  ;;  %v1325_v18 = vmul.f32 %v3808_v6, %v1321_v28 }
 0x67c   :  { %1343 = vmatpush.msra.mxu0 %v1290_v57  ;;  %1401 = vmatpush.msra.mxu3 %v1325_v18  ;;  %v1287_v18 = vsel %vm362_vm2, %v1281_v60, %v1283_v29 }
 0x67e   :  { %1344 = vmatpush.msra.mxu0 %v1274_v9  ;;  %1402 = vmatpush.msra.mxu3 %v1309_v52 }
 0x680   :  { %v4046_v37 = vpop.permute.xlu0 %1212  ;;  %v1299_v15 = vpop.permute.xlu1 %1298  ;;  %1345 = vmatpush.msra.mxu0 %v1258_v5  ;;  %v1259_v5 = vmul.f32 %v3949_v44, %v3215_v20 }
 0x681   :  { %v1247_v24 = vpop.permute.xlu2 %1246  ;;  %v1302_v6 = vsel %vm383_vm1, %v1299_v15, %v1301_v36  ;;  %v1303_v25 = vsel %vm383_vm1, %v1297_v58, %v1299_v15  ;;  %v1252_v58 = vsel %vm312_vm4, %v4014_v30, %v4022_v13 }
 0x682   :  { %v1307_v36 = vmul.f32 %v1303_v25, %v3109_v53  ;;  %v1308_v9 = vmul.f32 %v1302_v6, %v3086_v42 }
 0x688   :  { %v1315_v14 = vpop.permute.xlu0 %1314  ;;  %v1267_v46 = vpop.permute.xlu1 %1266 }
 0x689   :  { %v1318_v22 = vsel %vm404_vm0, %v1315_v14, %v1317_v45  ;;  %v1319_v52 = vsel %vm404_vm0, %v1313_v10, %v1315_v14  ;;  %v4058_v57 = vpop.permute.xlu2 %1200  ;;  %v1271_v15 = vsel %vm341_vm3, %v1265_v35, %v1267_v46  ;;  %v1291_v14 = vmul.f32 %v1287_v18, %v3187_v39 }
 0x68a   :  { %v1323_v23 = vmul.f32 %v3840_v51, %v1319_v52  ;;  %v1324_v28 = vmul.f32 %v3844_v56, %v1318_v22  ;;  %v1275_v10 = vmul.f32 %v1271_v15, %v3195_v48  ;;  %v1273_v35 = vsel %vm341_vm3, %v1269_v12, %v4012_v0 }
 0x68b   :  { %v1270_v52 = vsel %vm341_vm3, %v1267_v46, %v1269_v12  ;;  %v1220_v12 = vsel %vm270_vm6, %v4020_v49, %v4046_v37  ;;  %v1251_v46 = vsel %vm312_vm4, %v4022_v13, %v1247_v24  ;;  %v1260_v13 = vmul.f32 %v3971_v26, %v3142_v7 }
 0x68c   :  { %1361 = vmatpush.msra.mxu1 %v1323_v23  ;;  %1381 = vmatpush.msra.mxu2 %v1324_v28  ;;  %v1277_v28 = vmul.f32 %v1273_v35, %v3137_v4  ;;  %v1276_v18 = vmul.f32 %v1270_v52, %v3134_v3 }
 0x68e   :  { %1362 = vmatpush.msra.mxu1 %v1307_v36  ;;  %1382 = vmatpush.msra.mxu2 %v1308_v9 }
 0x690   :  { %v1285_v60 = vpop.permute.xlu0 %1284  ;;  %v1249_v45 = vpop.permute.xlu1 %1248  ;;  %1363 = vmatpush.msra.mxu1 %v1291_v14  ;;  %v1261_v14 = vmul.f32 %v3963_v50, %v3145_v8 }
 0x691   :  { %v1286_v6 = vsel %vm362_vm2, %v1283_v29, %v1285_v60  ;;  %v1289_v25 = vsel %vm362_vm2, %v1285_v60, %v4008_v19  ;;  %v1253_v22 = vsel %vm312_vm4, %v1249_v45, %v4014_v30  ;;  %v1236_v29 = vsel %vm291_vm5, %v4010_v59, %v4018_v33  ;;  %v4096_v30 = vpop.permute.xlu2 %1196 }
 0x692   :  { %v1292_v44 = vmul.f32 %v1286_v6, %v3113_v54  ;;  %v1293_v23 = vmul.f32 %v1289_v25, %v3116_v55  ;;  %v1254_v0 = vmul.f32 %v1253_v22, %v3231_v11  ;;  %1364 = vmatpush.msra.mxu1 %v1275_v10  ;;  %v1255_v19 = vmul.f32 %v1252_v58, %v3234_v16  ;;  %v1192_v6 = vld [vmem:[%s5091_s3] sm:$0xff] }
 0x693   :  { %v1239_v36 = vmul.f32 %v1236_v29, %v3277_v31  ;;  %v1250_v9 = vsel %vm312_vm4, %v1247_v24, %v1249_v45  ;;  %v1204_v15 = vsel %vm249_vm7, %v4016_v40, %v4096_v30  ;;  %v1223_v58 = vmul.f32 %v1220_v12, %v3283_v2 }
 0x694   :  { %1346 = vmatpush.msra.mxu0 %v1254_v0  ;;  %1365 = vmatpush.msra.mxu1 %v1259_v5  ;;  %v1256_v10 = vmul.f32 %v1251_v46, %v3170_v27  ;;  %v1257_v45 = vmul.f32 %v1250_v9, %v3157_v17  ;;  %v1207_v50 = vmul.f32 %v1204_v15, %v3301_v1 }
 0x695   :  { %1383 = vmatpush.msra.mxu2 %v1292_v44  ;;  %1403 = vmatpush.msra.mxu3 %v1293_v23  ;;  %v1205_v25 = vsel %vm249_vm7, %v4058_v57, %v4016_v40  ;;  %v4141_v44 = vld [vmem:[#allocation2 + $0xe8] sm:$0xff] }
 0x696   :  { %1366 = vmatpush.msra.mxu1 %v1255_v19  ;;  %v1206_v52 = vmul.f32 %v1205_v25, %v3298_v32  ;;  %v4190_v25 = vld [vmem:[#allocation2 + $0x1f8] sm:$0xff] }
 0x697   :  { %1384 = vmatpush.msra.mxu2 %v1276_v18  ;;  %1404 = vmatpush.msra.mxu3 %v1277_v28  ;;  %v4158_v18 = vld [vmem:[#allocation2 + $0xe0] sm:$0xff]  ;;  %5101 = vst [vmem:[#allocation41_spill] sm:$0xff] %v4190_v25 }
 0x698   :  { %v1233_v24 = vpop.permute.xlu0 %1232  ;;  %v1217_v60 = vpop.permute.xlu1 %1216  ;;  %1367 = vmatpush.msra.mxu1 %v1239_v36  ;;  %v5092_v36 = vld [vmem:[#allocation25_spill] sm:$0xff] }
 0x699   :  { %v1237_v5 = vsel %vm291_vm5, %v1233_v24, %v4010_v59  ;;  %v1221_v26 = vsel %vm270_vm6, %v1217_v60, %v4020_v49  ;;  %1385 = vmatpush.msra.mxu2 %v1260_v13  ;;  %1405 = vmatpush.msra.mxu3 %v1261_v14  ;;  %v4133_v59 = vld [vmem:[#allocation2 + $0xf8] sm:$0xff]  ;;  %v4137_v49 = vld [vmem:[#allocation2 + $0xf0] sm:$0xff] }
 0x69a   :  { %v1238_v35 = vmul.f32 %v1237_v5, %v3274_v41  ;;  %1368 = vmatpush.msra.mxu1 %v1223_v58  ;;  %v1222_v22 = vmul.f32 %v1221_v26, %v3280_v62  ;;  %v4162_v13 = vld [vmem:[#allocation2 + $0xd8] sm:$0xff]  ;;  %v4168_v58 = vld [vmem:[#allocation2 + $0xc8] sm:$0xff]  ;;  %v5096_v5 = vld [vmem:[#allocation28_spill] sm:$0xff] }
 0x69b   :  { %1386 = vmatpush.msra.mxu2 %v1256_v10  ;;  %1406 = vmatpush.msra.mxu3 %v1257_v45  ;;  %5094 = vst [vmem:[#allocation36_spill] sm:$0xff] %v4168_v58 }
 0x69c   :  { %1347 = vmatpush.msra.mxu0 %v1238_v35  ;;  %1369 = vmatpush.msra.mxu1 %v1207_v50  ;;  %v4179_v50 = vld [vmem:[#allocation2 + $0x78] sm:$0xff]  ;;  %v4182_v35 = vld [vmem:[#allocation2 + $0xc0] sm:$0xff] }
 0x69d   :  { %2609 = vmatmul.msk.f32.vlgmr.msra.gmra.mxu1 %vm422_vm8, %v1192_v6  ;;  %5097 = vst [vmem:[#allocation37_spill] sm:$0xff] %v4179_v50 }
 0x69e   :  { %1348 = vmatpush.msra.mxu0 %v1222_v22  ;;  %1446 = vmatpush.msrb.mxu1 %v4133_v59  ;;  %5098 = vst [vmem:[#allocation38_spill] sm:$0xff] %v4182_v35  ;;  %v4194_v22 = vld [vmem:[#allocation2 + $0x68] sm:$0xff] }
 0x69f   :  { %5102 = vst [vmem:[#allocation42_spill] sm:$0xff] %v4194_v22 }
 0x6a0   :  { %v1231_v40 = vpop.permute.xlu0 %1230  ;;  %v1215_v23 = vpop.permute.xlu1 %1214  ;;  %1349 = vmatpush.msra.mxu0 %v1206_v52  ;;  %1447 = vmatpush.msrb.mxu1 %v4137_v49  ;;  %v4196_v52 = vld [vmem:[#allocation2 + $0xb0] sm:$0xff] }
 0x6a1   :  { %v1234_v0 = vsel %vm291_vm5, %v1231_v40, %v1233_v24  ;;  %v1235_v29 = vsel %vm291_vm5, %v4018_v33, %v1231_v40  ;;  %v1218_v19 = vsel %vm270_vm6, %v1215_v23, %v1217_v60  ;;  %v1219_v28 = vsel %vm270_vm6, %v4046_v37, %v1215_v23  ;;  %2608 = vmatmul.msk.f32.vlgmr.msra.gmra.mxu0 %vm422_vm8, %v1192_v6  ;;  %v5093_v33 = vld [vmem:[#allocation26_spill] sm:$0xff]  ;;  %v5095_v60 = vld [vmem:[#allocation27_spill] sm:$0xff]  ;;  %v4203_v40 = vld [vmem:[#allocation2 + $0xa8] sm:$0xff] }
 0x6a2   :  { %v1240_v12 = vmul.f32 %v1235_v29, %v3174_v34  ;;  %v1241_v46 = vmul.f32 %v1234_v0, %v3224_v63  ;;  %1448 = vmatpush.msrb.mxu1 %v4141_v44  ;;  %v1224_v9 = vmul.f32 %v1219_v28, %v5092_v36  ;;  %v1225_v15 = vmul.f32 %v1218_v19, %v5093_v33  ;;  %v4165_v37 = vld [vmem:[#allocation2 + $0xd0] sm:$0xff]  ;;  %v4207_v23 = vld [vmem:[#allocation2 + $0x58] sm:$0xff]  ;;  %v4209_v0 = vld [vmem:[#allocation2 + $0xa0] sm:$0xff] }
 0x6a3   :  { %5103 = vst [vmem:[#allocation43_spill] sm:$0xff] %v4196_v52  ;;  %v4213_v29 = vld [vmem:[#allocation2 + $0x50] sm:$0xff]  ;;  %v4217_v19 = vld [vmem:[#allocation2 + $0x48] sm:$0xff]  ;;  %v4220_v28 = vld [vmem:[#allocation2 + $0x40] sm:$0xff] }
 0x6a4   :  { %1387 = vmatpush.msra.mxu2 %v1240_v12  ;;  %1407 = vmatpush.msra.mxu3 %v1241_v46  ;;  %5105 = vst [vmem:[#allocation45_spill] sm:$0xff] %v4203_v40  ;;  %v4223_v12 = vld [vmem:[#allocation2 + $0x38] sm:$0xff]  ;;  %v4226_v46 = vld [vmem:[#allocation2 + $0x30] sm:$0xff]  ;;  %v5184_v21 = vld [vmem:[#allocation37_spill] sm:$0xff] }
 0x6a5   :  { %1449 = vmatpush.msrb.mxu1 %v4158_v18  ;;  %5106 = vst [vmem:[#allocation46_spill] sm:$0xff] %v4207_v23 }
 0x6a6   :  { %1388 = vmatpush.msra.mxu2 %v1224_v9  ;;  %1408 = vmatpush.msra.mxu3 %v1225_v15  ;;  %5107 = vst [vmem:[#allocation47_spill] sm:$0xff] %v4209_v0  ;;  %v4229_v9 = vld [vmem:[#allocation2 + $0x28] sm:$0xff]  ;;  %v4232_v15 = vld [vmem:[#allocation2 + $0x20] sm:$0xff] }
 0x6a7   :  { %1450 = vmatpush.msrb.mxu1 %v4162_v13  ;;  %5108 = vst [vmem:[#allocation48_spill] sm:$0xff] %v4213_v29 }
 0x6a8   :  { %v1199_v14 = vpop.permute.xlu0 %1198  ;;  %5109 = vst [vmem:[#allocation49_spill] sm:$0xff] %v4217_v19 }
 0x6a9   :  { %v1202_v10 = vsel %vm249_vm7, %v1199_v14, %v4058_v57  ;;  %v1203_v24 = vsel %vm249_vm7, %v4096_v30, %v1199_v14  ;;  %1451 = vmatpush.msrb.mxu1 %v4165_v37  ;;  %v4186_v57 = vld [vmem:[#allocation2 + $0x70] sm:$0xff]  ;;  %v4188_v30 = vld [vmem:[#allocation2 + $0xb8] sm:$0xff]  ;;  %5110 = vst [vmem:[#allocation50_spill] sm:$0xff] %v4220_v28 }
 0x6aa   :  { %v1208_v45 = vmul.f32 %v1203_v24, %v5095_v60  ;;  %v1209_v26 = vmul.f32 %v1202_v10, %v5096_v5  ;;  %5099 = vst [vmem:[#allocation39_spill] sm:$0xff] %v4186_v57  ;;  %v4235_v14 = vld [vmem:[#allocation2 + $0x18] sm:$0xff]  ;;  %v4238_v10 = vld [vmem:[#allocation2 + $0x10] sm:$0xff]  ;;  %v4241_v24 = vld [vmem:[#allocation2 + $0x8] sm:$0xff] }
 0x6ab   :  { %1452 = vmatpush.msrb.mxu1 %v4168_v58  ;;  %5100 = vst [vmem:[#allocation40_spill] sm:$0xff] %v4188_v30 }
 0x6ac   :  { %1389 = vmatpush.msra.mxu2 %v1208_v45  ;;  %1409 = vmatpush.msra.mxu3 %v1209_v26  ;;  %5111 = vst [vmem:[#allocation51_spill] sm:$0xff] %v4223_v12  ;;  %v4244_v45 = vld [vmem:[#allocation2] sm:$0xff]  ;;  %v4247_v26 = vld [vmem:[#allocation2 + $0x178] sm:$0xff] }
 0x6ad   :  { %2610 = vmatmul.msk.f32.vlgmr.msra.gmra.mxu2 %vm422_vm8, %v1192_v6  ;;  %2611 = vmatmul.msk.f32.vlgmr.msra.gmra.mxu3 %vm422_vm8, %v1192_v6  ;;  %v4201_v6 = vld [vmem:[#allocation2 + $0x60] sm:$0xff]  ;;  %5112 = vst [vmem:[#allocation52_spill] sm:$0xff] %v4226_v46 }
 0x6ae   :  { %1426 = vmatpush.msrb.mxu2 %v4179_v50  ;;  %1453 = vmatpush.msrb.mxu1 %v4182_v35  ;;  %5104 = vst [vmem:[#allocation44_spill] sm:$0xff] %v4201_v6 }
 0x6af   :  { %1486 = vmatpush.msrb.mxu3 %v4190_v25  ;;  %5113 = vst [vmem:[#allocation53_spill] sm:$0xff] %v4229_v9 }
 0x6b0   :  { %1427 = vmatpush.msrb.mxu2 %v4186_v57  ;;  %1454 = vmatpush.msrb.mxu1 %v4188_v30  ;;  %5114 = vst [vmem:[#allocation54_spill] sm:$0xff] %v4232_v15 }
 0x6b1   :  { %5115 = vst [vmem:[#allocation55_spill] sm:$0xff] %v4235_v14 }
 0x6b2   :  { %1428 = vmatpush.msrb.mxu2 %v4194_v22  ;;  %1455 = vmatpush.msrb.mxu1 %v4196_v52  ;;  %5116 = vst [vmem:[#allocation56_spill] sm:$0xff] %v4238_v10  ;;  %v4291_v22 = vld [vmem:[#allocation2 + $0x148] sm:$0xff] }
 0x6b3   :  { %5117 = vst [vmem:[#allocation57_spill] sm:$0xff] %v4241_v24 }
 0x6b4   :  { %1429 = vmatpush.msrb.mxu2 %v4201_v6  ;;  %1456 = vmatpush.msrb.mxu1 %v4203_v40  ;;  %5118 = vst [vmem:[#allocation58_spill] sm:$0xff] %v4244_v45  ;;  %v4287_v6 = vld [vmem:[#allocation2 + $0x150] sm:$0xff] }
 0x6b5   :  { %5119 = vst [vmem:[#allocation59_spill] sm:$0xff] %v4247_v26 }
 0x6b6   :  { %1430 = vmatpush.msrb.mxu2 %v4207_v23  ;;  %1457 = vmatpush.msrb.mxu1 %v4209_v0  ;;  %v4282_v23 = vld [vmem:[#allocation2 + $0x1d8] sm:$0xff]  ;;  %5132 = vst [vmem:[#allocation72_spill] sm:$0xff] %v4287_v6 }
 0x6b7   :  { %5131 = vst [vmem:[#allocation71_spill] sm:$0xff] %v4282_v23 }
 0x6b8   :  { %1431 = vmatpush.msrb.mxu2 %v4213_v29  ;;  %v4280_v29 = vld [vmem:[#allocation2 + $0x158] sm:$0xff]  ;;  %5134 = vst [vmem:[#allocation74_spill] sm:$0xff] %v4291_v22 }
 0x6b9   :  { %5130 = vst [vmem:[#allocation70_spill] sm:$0xff] %v4280_v29 }
 0x6ba   :  { %1432 = vmatpush.msrb.mxu2 %v4217_v19  ;;  %v4278_v19 = vld [vmem:[#allocation2 + $0x80] sm:$0xff] }
 0x6bb   :  { %5129 = vst [vmem:[#allocation69_spill] sm:$0xff] %v4278_v19 }
 0x6bc   :  { %1433 = vmatpush.msrb.mxu2 %v4220_v28  ;;  %v4273_v28 = vld [vmem:[#allocation2 + $0x1e0] sm:$0xff] }
 0x6bd   :  { %5128 = vst [vmem:[#allocation68_spill] sm:$0xff] %v4273_v28 }
 0x6be   :  { %1434 = vmatpush.msrb.mxu2 %v4223_v12  ;;  %v4271_v12 = vld [vmem:[#allocation2 + $0x160] sm:$0xff] }
 0x6bf   :  { %5127 = vst [vmem:[#allocation67_spill] sm:$0xff] %v4271_v12 }
 0x6c0   :  { %1435 = vmatpush.msrb.mxu2 %v4226_v46  ;;  %v4255_v46 = vld [vmem:[#allocation2 + $0x1f0] sm:$0xff] }
 0x6c1   :  { %5122 = vst [vmem:[#allocation62_spill] sm:$0xff] %v4255_v46  ;;  %1487 = vmatpush.msrb.mxu3 %v4255_v46  ;;  %v4298_v46 = vld [vmem:[#allocation2 + $0x140] sm:$0xff] }
 0x6c2   :  { %1436 = vmatpush.msrb.mxu2 %v4229_v9  ;;  %v4251_v9 = vld [vmem:[#allocation2 + $0x98] sm:$0xff]  ;;  %5136 = vst [vmem:[#allocation76_spill] sm:$0xff] %v4298_v46 }
 0x6c3   :  { %5120 = vst [vmem:[#allocation60_spill] sm:$0xff] %v4251_v9  ;;  %1458 = vmatpush.msrb.mxu1 %v4251_v9 }
 0x6c4   :  { %1437 = vmatpush.msrb.mxu2 %v4232_v15  ;;  %v4253_v15 = vld [vmem:[#allocation2 + $0x170] sm:$0xff] }
 0x6c5   :  { %5121 = vst [vmem:[#allocation61_spill] sm:$0xff] %v4253_v15 }
 0x6c6   :  { %1438 = vmatpush.msrb.mxu2 %v4235_v14  ;;  %v4264_v14 = vld [vmem:[#allocation2 + $0x1e8] sm:$0xff] }
 0x6c7   :  { %5125 = vst [vmem:[#allocation65_spill] sm:$0xff] %v4264_v14  ;;  %1488 = vmatpush.msrb.mxu3 %v4264_v14  ;;  %v4289_v14 = vld [vmem:[#allocation2 + $0x1d0] sm:$0xff] }
 0x6c8   :  { %1439 = vmatpush.msrb.mxu2 %v4238_v10  ;;  %v4260_v10 = vld [vmem:[#allocation2 + $0x90] sm:$0xff]  ;;  %5133 = vst [vmem:[#allocation73_spill] sm:$0xff] %v4289_v14 }
 0x6c9   :  { %5123 = vst [vmem:[#allocation63_spill] sm:$0xff] %v4260_v10  ;;  %1459 = vmatpush.msrb.mxu1 %v4260_v10  ;;  %1489 = vmatpush.msrb.mxu3 %v4273_v28  ;;  %v4294_v28 = vld [vmem:[#allocation2 + $0x1c8] sm:$0xff] }
 0x6ca   :  { %1440 = vmatpush.msrb.mxu2 %v4241_v24  ;;  %v4262_v24 = vld [vmem:[#allocation2 + $0x168] sm:$0xff]  ;;  %5135 = vst [vmem:[#allocation75_spill] sm:$0xff] %v4294_v28 }
 0x6cb   :  { %5124 = vst [vmem:[#allocation64_spill] sm:$0xff] %v4262_v24  ;;  %1490 = vmatpush.msrb.mxu3 %v4282_v23  ;;  %v4303_v23 = vld [vmem:[#allocation2 + $0x138] sm:$0xff] }
 0x6cc   :  { %1441 = vmatpush.msrb.mxu2 %v4244_v45  ;;  %v4269_v45 = vld [vmem:[#allocation2 + $0x88] sm:$0xff]  ;;  %5138 = vst [vmem:[#allocation78_spill] sm:$0xff] %v4303_v23 }
 0x6cd   :  { %5126 = vst [vmem:[#allocation66_spill] sm:$0xff] %v4269_v45  ;;  %1460 = vmatpush.msrb.mxu1 %v4269_v45  ;;  %1491 = vmatpush.msrb.mxu3 %v4289_v14  ;;  %v4312_v14 = vld [vmem:[#allocation2 + $0x1b0] sm:$0xff] }
 0x6ce   :  { %1466 = vmatpush.msra.mxu2 %v4247_v26  ;;  %5141 = vst [vmem:[#allocation81_spill] sm:$0xff] %v4312_v14 }
 0x6cf   :  { %1461 = vmatpush.msrb.mxu1 %v4278_v19  ;;  %v4300_v19 = vld [vmem:[#allocation2 + $0x1c0] sm:$0xff]  ;;  %1492 = vmatpush.msrb.mxu3 %v4294_v28  ;;  %v4318_v28 = vld [vmem:[#allocation2 + $0x1a8] sm:$0xff] }
 0x6d0   :  { %1467 = vmatpush.msra.mxu2 %v4253_v15  ;;  %5137 = vst [vmem:[#allocation77_spill] sm:$0xff] %v4300_v19 }
 0x6d1   :  { %1493 = vmatpush.msrb.mxu3 %v4300_v19  ;;  %5143 = vst [vmem:[#allocation83_spill] sm:$0xff] %v4318_v28  ;;  %v4324_v19 = vld [vmem:[#allocation2 + $0x1a0] sm:$0xff] }
 0x6d2   :  { %1468 = vmatpush.msra.mxu2 %v4262_v24  ;;  %5145 = vst [vmem:[#allocation85_spill] sm:$0xff] %v4324_v19 }
 0x6d4   :  { %1469 = vmatpush.msra.mxu2 %v4271_v12 }
 0x6d6   :  { %1470 = vmatpush.msra.mxu2 %v4280_v29  ;;  %v4306_v29 = vld [vmem:[#allocation2 + $0x1b8] sm:$0xff] }
 0x6d7   :  { %5139 = vst [vmem:[#allocation79_spill] sm:$0xff] %v4306_v29  ;;  %1494 = vmatpush.msrb.mxu3 %v4306_v29  ;;  %v4329_v29 = vld [vmem:[#allocation2 + $0x118] sm:$0xff] }
 0x6d8   :  { %1471 = vmatpush.msra.mxu2 %v4287_v6  ;;  %v4309_v6 = vld [vmem:[#allocation2 + $0x130] sm:$0xff]  ;;  %5146 = vst [vmem:[#allocation86_spill] sm:$0xff] %v4329_v29 }
 0x6d9   :  { %5140 = vst [vmem:[#allocation80_spill] sm:$0xff] %v4309_v6  ;;  %1495 = vmatpush.msrb.mxu3 %v4312_v14  ;;  %v4335_v14 = vld [vmem:[#allocation2 + $0x110] sm:$0xff] }
 0x6da   :  { %1472 = vmatpush.msra.mxu2 %v4291_v22  ;;  %v4315_v22 = vld [vmem:[#allocation2 + $0x128] sm:$0xff]  ;;  %5148 = vst [vmem:[#allocation88_spill] sm:$0xff] %v4335_v14 }
 0x6db   :  { %5142 = vst [vmem:[#allocation82_spill] sm:$0xff] %v4315_v22  ;;  %1496 = vmatpush.msrb.mxu3 %v4318_v28  ;;  %v4341_v28 = vld [vmem:[#allocation2 + $0x108] sm:$0xff] }
 0x6dc   :  { %1473 = vmatpush.msra.mxu2 %v4298_v46  ;;  %v4322_v46 = vld [vmem:[#allocation2 + $0x120] sm:$0xff]  ;;  %5150 = vst [vmem:[#allocation90_spill] sm:$0xff] %v4341_v28 }
 0x6dd   :  { %5144 = vst [vmem:[#allocation84_spill] sm:$0xff] %v4322_v46  ;;  %1497 = vmatpush.msrb.mxu3 %v4324_v19  ;;  %v4346_v19 = vld [vmem:[#allocation2 + $0x100] sm:$0xff] }
 0x6de   :  { %1474 = vmatpush.msra.mxu2 %v4303_v23  ;;  %v4331_v23 = vld [vmem:[#allocation2 + $0x198] sm:$0xff]  ;;  %5152 = vst [vmem:[#allocation92_spill] sm:$0xff] %v4346_v19 }
 0x6df   :  { %5147 = vst [vmem:[#allocation87_spill] sm:$0xff] %v4331_v23  ;;  %1498 = vmatpush.msrb.mxu3 %v4331_v23  ;;  %v1329_v23 = vpop.permute.xlu1 %1328 }
 0x6e0   :  { %1475 = vmatpush.msra.mxu2 %v4309_v6  ;;  %v4348_v6 = vld [vmem:[#allocation2 + $0x180] sm:$0xff] }
 0x6e1   :  { %5153 = vst [vmem:[#allocation93_spill] sm:$0xff] %v4348_v6 }
 0x6e2   :  { %1476 = vmatpush.msra.mxu2 %v4315_v22  ;;  %v4337_v22 = vld [vmem:[#allocation2 + $0x190] sm:$0xff] }
 0x6e3   :  { %5149 = vst [vmem:[#allocation89_spill] sm:$0xff] %v4337_v22  ;;  %1499 = vmatpush.msrb.mxu3 %v4337_v22  ;;  %v5154_v22 = vld [vmem:[#allocation34_spill] sm:$0xff] }
 0x6e4   :  { %1477 = vmatpush.msra.mxu2 %v4322_v46  ;;  %v4343_v46 = vld [vmem:[#allocation2 + $0x188] sm:$0xff] }
 0x6e5   :  { %5151 = vst [vmem:[#allocation91_spill] sm:$0xff] %v4343_v46  ;;  %1500 = vmatpush.msrb.mxu3 %v4343_v46 }
 0x6e6   :  { %1478 = vmatpush.msra.mxu2 %v4329_v29 }
 0x6e7   :  { %1501 = vmatpush.msrb.mxu3 %v4348_v6 }
 0x6e8   :  { %1479 = vmatpush.msra.mxu2 %v4335_v14 }
 0x6ea   :  { %1480 = vmatpush.msra.mxu2 %v4341_v28  ;;  %v5155_v28 = vld [vmem:[#allocation33_spill] sm:$0xff] }
 0x6ec   :  { %1481 = vmatpush.msra.mxu2 %v4346_v19 }
 0x71a   :  { %v1371_v14 = vpop.f32.mrf.mxu1 }
 0x71b   :  { %v1372_v29 = vadd.f32 %v1371_v14, %v1329_v23 }
 0x71d   :  { %v1415_v57 = vadd.f32 %v1372_v29, %v5154_v22  ;;  %v5156_v29 = vld [vmem:[#allocation32_spill] sm:$0xff] }
 0x71e   :  { %v1351_v12 = vpop.f32.mrf.mxu0 }
 0x71f   :  { %v4354_v45 = vmax.f32 %v1415_v57, 0.0  ;;  %v1352_v25 = vadd.f32 %v1351_v12, %v1329_v23  ;;  %v5157_v12 = vld [vmem:[#allocation35_spill] sm:$0xff] }
 0x721   :  { %v1414_v50 = vadd.f32 %v1352_v25, %v5155_v28  ;;  %1462 = vmatmul.f32.vlgmr.msrb.gmra.mxu1 %v4354_v45 }
 0x723   :  { %v4358_v10 = vmax.f32 %v1414_v50, 0.0 }
 0x725   :  { %1550 = vrot.lane.b32.xlu0 %v4358_v10, %s2799_s1  ;;  %1582 = vrot.lane.b32.xlu1 %v4358_v10, %s2797_s5 }
 0x726   :  { %1598 = vrot.lane.b32.xlu2 %v4358_v10, %s2796_s26  ;;  %1442 = vmatmul.f32.vlgmr.msrb.gmra.mxu2 %v4358_v10 }
 0x72d   :  { %1634 = vrot.lane.b32.xlu0 %v4358_v10, %s2794_s29  ;;  %1666 = vrot.lane.b32.xlu1 %v4358_v10, %s2792_s17 }
 0x72e   :  { %1566 = vrot.lane.b32.xlu2 %v4358_v10, %s2798_s28 }
 0x730   :  { %v1391_v50 = vpop.f32.mrf.mxu2  ;;  %v1411_v57 = vpop.f32.mrf.mxu3 }
 0x731   :  { %v1392_v25 = vadd.f32 %v1391_v50, %v1329_v23  ;;  %v1412_v22 = vadd.f32 %v1411_v57, %v1329_v23  ;;  %v1548_v23 = vld [vmem:[%s5158_s8] sm:$0xff] }
 0x733   :  { %v1416_v28 = vadd.f32 %v1392_v25, %v5156_v29  ;;  %v1417_v14 = vadd.f32 %v1412_v22, %v5157_v12 }
 0x735   :  { %v4375_v6 = vmax.f32 %v1416_v28, 0.0  ;;  %v4377_v46 = vmax.f32 %v1417_v14, 0.0  ;;  %1600 = vrot.lane.b32.xlu0 %v4354_v45, %s2796_s26  ;;  %1652 = vrot.lane.b32.xlu1 %v4354_v45, %s2793_s25 }
 0x736   :  { %1650 = vrot.lane.b32.xlu2 %v4358_v10, %s2793_s25 }
 0x737   :  { %1482 = vmatmul.f32.vlgmr.msra.gmra.mxu2 %v4375_v6  ;;  %1502 = vmatmul.f32.vlgmr.msrb.gmra.mxu3 %v4377_v46 }
 0x73d   :  { %1568 = vrot.lane.b32.xlu0 %v4354_v45, %s2798_s28  ;;  %1636 = vrot.lane.b32.xlu1 %v4354_v45, %s2794_s29 }
 0x73e   :  { %1668 = vrot.lane.b32.xlu2 %v4354_v45, %s2792_s17 }
 0x745   :  { %1670 = vrot.lane.b32.xlu0 %v4375_v6, %s2792_s17  ;;  %1620 = vrot.lane.b32.xlu1 %v4354_v45, %s2795_s23 }
 0x746   :  { %1584 = vrot.lane.b32.xlu2 %v4354_v45, %s2797_s5 }
 0x74d   :  { %1672 = vrot.lane.b32.xlu0 %v4377_v46, %s2792_s17  ;;  %1552 = vrot.lane.b32.xlu1 %v4354_v45, %s2799_s1  ;;  %s2743_s17 = sshra.s32 %s2551_s18, 4  ;;  %s2744_s17 = int_to_ptr.hbm [resolvable:$true] %s2743_s17 }
 0x74e   :  { %1654 = vrot.lane.b32.xlu2 %v4375_v6, %s2793_s25  ;;  %p2748_p6 = scmp.lt.s32.totalorder %s2744_s17, %s2959_s4 }
 0x755   :  { %1656 = vrot.lane.b32.xlu0 %v4377_v46, %s2793_s25  ;;  %1624 = vrot.lane.b32.xlu1 %v4377_v46, %s2795_s23  ;;  %s2745_s25 = scalar_lea.hbm %s2744_s17, 128 }
 0x756   :  { %1638 = vrot.lane.b32.xlu2 %v4375_v6, %s2794_s29  ;;  %p2746_p5 = scmp.ne.s32.totalorder %s2744_s17, %s2745_s25 }
 0x75d   :  { %1640 = vrot.lane.b32.xlu0 %v4377_v46, %s2794_s29  ;;  %1586 = vrot.lane.b32.xlu1 %v4375_v6, %s2797_s5  ;;  %s2747_s29 = scalar_lea.hbm %s2959_s4, 128 }
 0x75e   :  { %1622 = vrot.lane.b32.xlu2 %v4375_v6, %s2795_s23  ;;  %p2749_p7 = scmp.lt.s32.totalorder %s2747_s29, %s2745_s25 }
 0x760   :  { %p2750_p8 = por %p2749_p7, %p2748_p6 }
 0x762   :  { %p2751_p9 = pnand %p2750_p8, %p2746_p5 }
 0x765   :  { %1602 = vrot.lane.b32.xlu0 %v4375_v6, %s2796_s26  ;;  %1554 = vrot.lane.b32.xlu1 %v4375_v6, %s2799_s1 }
 0x766   :  { %1570 = vrot.lane.b32.xlu2 %v4375_v6, %s2798_s28 }
 0x76d   :  { %1604 = vrot.lane.b32.xlu0 %v4377_v46, %s2796_s26  ;;  %1588 = vrot.lane.b32.xlu1 %v4377_v46, %s2797_s5 }
 0x76e   :  { %1618 = vrot.lane.b32.xlu2 %v4358_v10, %s2795_s23 }
 0x775   :  { %1556 = vrot.lane.b32.xlu0 %v4377_v46, %s2799_s1  ;;  %1684 = vperm.xlu1 %2694, %v1548_v23  }
 0x776   :  { %1572 = vrot.lane.b32.xlu2 %v4377_v46, %s2798_s28 }
 0x780   :  { %v4434_v50 = vpop.permute.xlu2 %1598 }
 0x788   :  { %v4436_v57 = vpop.permute.xlu2 %1566 }
 0x790   :  { %v4438_v25 = vpop.permute.xlu2 %1650 }
 0x797   :  { %v4440_v22 = vpop.permute.xlu0 %1550  ;;  %v4442_v29 = vpop.permute.xlu1 %1582 }
 0x798   :  { %v1669_v28 = vpop.permute.xlu2 %1668 }
 0x79e   :  { %v1463_v26 = vpop.f32.mrf.mxu1 }
 0x79f   :  { %v4444_v12 = vpop.permute.xlu0 %1634  ;;  %v1667_v14 = vpop.permute.xlu1 %1666 }
 0x7a0   :  { %v4446_v19 = vpop.permute.xlu2 %1584  ;;  %v1676_v60 = vsel %vm404_vm0, %v1667_v14, %v1669_v28 }
 0x7a7   :  { %v4448_v23 = vpop.permute.xlu0 %1600  ;;  %v1653_v5 = vpop.permute.xlu1 %1652 }
 0x7a8   :  { %v4450_v32 = vpop.permute.xlu2 %1654 }
 0x7a9   :  { %v1443_v0 = vpop.f32.mrf.mxu2  ;;  %v1659_v40 = vsel %vm383_vm1, %v1653_v5, %v4450_v32 }
 0x7aa   :  { %v1464_v52 = vadd.f32 %v1463_v26, %v1443_v0  ;;  %v1663_v35 = vmul.f32 %v1659_v40, %v3109_v53 }
 0x7af   :  { %v4452_v24 = vpop.permute.xlu0 %1568  ;;  %v1637_v9 = vpop.permute.xlu1 %1636 }
 0x7b0   :  { %v4454_v15 = vpop.permute.xlu2 %1638  ;;  %v1644_v53 = vsel %vm362_vm2, %v4444_v12, %v1637_v9 }
 0x7b1   :  { %v1643_v11 = vsel %vm362_vm2, %v1637_v9, %v4454_v15  ;;  %v1615_v9 = vmul.f32 %v4354_v45, %v3215_v20 }
 0x7b7   :  { %v1671_v33 = vpop.permute.xlu0 %1670  ;;  %v4456_v62 = vpop.permute.xlu1 %1620 }
 0x7b8   :  { %v1675_v63 = vsel %vm404_vm0, %v1669_v28, %v1671_v33  ;;  %v4463_v41 = vpop.permute.xlu2 %1622  ;;  %v2705_v28 = vld [vmem:[%s2819_s9 + $0x20] ss:$0 sm:$0xff] }
 0x7b9   :  { %v1679_v17 = vmul.f32 %v3840_v51, %v1675_v63  ;;  %v1627_v58 = vsel %vm341_vm3, %v4456_v62, %v4463_v41  ;;  %v1660_v63 = vsel %vm383_vm1, %v4438_v25, %v1653_v5  ;;  %v1647_v51 = vmul.f32 %v1643_v11, %v3187_v39  ;;  %v5160_v11 = vld [vmem:[#allocation20_spill] sm:$0xff] }
 0x7ba   :  { %v1483_v30 = vpop.f32.mrf.mxu2  ;;  %v1503_v0 = vpop.f32.mrf.mxu3  ;;  %v1678_v34 = vmul.f32 %v2705_v28, %v1676_v60  ;;  %v1608_v39 = vsel %vm312_vm4, %v4434_v50, %v4448_v23 }
 0x7bb   :  { %v1484_v36 = vadd.f32 %v1483_v30, %v1464_v52  ;;  %1728 = vmatpush.msrb.mxu2 %v1679_v17  ;;  %v1631_v17 = vmul.f32 %v1627_v58, %v3195_v48 }
 0x7bd   :  { %v1504_v26 = vadd.f32 %v1503_v0, %v1484_v36  ;;  %1729 = vmatpush.msrb.mxu2 %v1663_v35  ;;  %v1662_v36 = vmul.f32 %v1660_v63, %v5160_v11  ;;  %v2706_v35 = vld [vmem:[%s2819_s9 + $0x38] ss:$0 sm:$0xff]  ;;  %v1592_v0 = vsel %vm291_vm5, %v4442_v29, %v4446_v19  ;;  %s5161_s9 = sld [smem:[#allocation13_spill]] }
 0x7be   :  { %v1595_v20 = vmul.f32 %v1592_v0, %v3277_v31  ;;  %v5168_v0 = vld [vmem:[#allocation24_spill] sm:$0xff] }
 0x7bf   :  { %v1673_v30 = vpop.permute.xlu0 %1672  ;;  %v4485_v52 = vpop.permute.xlu1 %1552  ;;  %1538 = vmatpush.msra.mxu1 %v1504_v26  ;;  %1730 = vmatpush.msrb.mxu2 %v1647_v51 }
 0x7c0   :  { %v1674_v60 = vsel %vm404_vm0, %v1671_v33, %v1673_v30  ;;  %v1677_v5 = vsel %vm404_vm0, %v1673_v30, %v1667_v14  ;;  %v4496_v48 = vpop.permute.xlu2 %1570  ;;  %v1646_v33 = vmul.f32 %v1644_v53, %v3184_v38  ;;  %v1422_v14 = vld [vmem:[%s5159_s14] sm:$0xff]  ;;  %v1560_v38 = vsel %vm249_vm7, %v4440_v22, %v4485_v52 }
 0x7c1   :  { %1705 = vmatpush.msrb.mxu1 %v1678_v34  ;;  %v1680_v58 = vmul.f32 %v3844_v56, %v1674_v60  ;;  %v1681_v40 = vmul.f32 %v2706_v35, %v1677_v5  ;;  %1731 = vmatpush.msrb.mxu2 %v1631_v17  ;;  %v1611_v34 = vmul.f32 %v1608_v39, %v3234_v16  ;;  %v5166_v60 = vld [vmem:[#allocation27_spill] sm:$0xff] }
 0x7c2   :  { %v1576_v56 = vsel %vm270_vm6, %v4436_v57, %v4452_v24  ;;  %2612 = vmatmul.msk.f32.vlgmr.msra.gmra.mxu1 %vm1516_vm9, %v1422_v14  ;;  %v1563_v28 = vmul.f32 %v1560_v38, %v3301_v1  ;;  %v1614_v1 = vmul.f32 %v4358_v10, %v3212_v61  ;;  %v5169_v14 = vld [vmem:[#allocation21_spill] sm:$0xff] }
 0x7c3   :  { %1706 = vmatpush.msrb.mxu1 %v1662_v36  ;;  %1732 = vmatpush.msrb.mxu2 %v1615_v9  ;;  %v1579_v16 = vmul.f32 %v1576_v56, %v3283_v2  ;;  %v4534_v39 = vld [vmem:[%s5161_s9] sm:$0xff]  ;;  %v4561_v36 = vld [vmem:[%s5161_s9 + $0x8] sm:$0xff] }
 0x7c4   :  { %1751 = vmatpush.msra.mxu3 %v1680_v58  ;;  %1774 = vmatpush.msrb.mxu0 %v1681_v40  ;;  %v5167_v9 = vld [vmem:[#allocation40_spill] sm:$0xff] }
 0x7c5   :  { %1707 = vmatpush.msrb.mxu1 %v1646_v33  ;;  %1733 = vmatpush.msrb.mxu2 %v1611_v34 }
 0x7c7   :  { %v1657_v45 = vpop.permute.xlu0 %1656  ;;  %v1625_v63 = vpop.permute.xlu1 %1624  ;;  %1734 = vmatpush.msrb.mxu2 %v1595_v20  ;;  %v5170_v20 = vld [vmem:[#allocation43_spill] sm:$0xff] }
 0x7c8   :  { %v1658_v51 = vsel %vm383_vm1, %v4450_v32, %v1657_v45  ;;  %v1661_v31 = vsel %vm383_vm1, %v1657_v45, %v4438_v25  ;;  %v1619_v26 = vpop.permute.xlu2 %1618  ;;  %v1423_v32 = vld [vmem:[%s5159_s14 + $0x8] sm:$0xff] }
 0x7c9   :  { %v1664_v53 = vmul.f32 %v1658_v51, %v3086_v42  ;;  %v1665_v17 = vmul.f32 %v1661_v31, %v3089_v43  ;;  %v1628_v2 = vsel %vm341_vm3, %v1619_v26, %v4456_v62  ;;  %1735 = vmatpush.msrb.mxu2 %v1579_v16  ;;  %v1629_v62 = vsel %vm341_vm3, %v1625_v63, %v1619_v26  ;;  %v5172_v16 = vld [vmem:[#allocation23_spill] sm:$0xff]  ;;  %v5176_v26 = vld [vmem:[#allocation26_spill] sm:$0xff] }
 0x7ca   :  { %v1630_v30 = vmul.f32 %v1628_v2, %v3192_v47  ;;  %2613 = vmatmul.msk.f32.gmra.mxu1 %vm1516_vm9, %v1423_v32  ;;  %v1626_v47 = vsel %vm341_vm3, %v4463_v41, %v1625_v63  ;;  %v1633_v11 = vmul.f32 %v1629_v62, %v3137_v4  ;;  %v5173_v63 = vld [vmem:[#allocation45_spill] sm:$0xff]  ;;  %v5174_v51 = vld [vmem:[#allocation59_spill] sm:$0xff]  ;;  %v5179_v32 = vld [vmem:[#allocation60_spill] sm:$0xff] }
 0x7cb   :  { %1736 = vmatpush.msrb.mxu2 %v1563_v28  ;;  %1752 = vmatpush.msra.mxu3 %v1664_v53  ;;  %v1632_v41 = vmul.f32 %v1626_v47, %v3134_v3  ;;  %v5178_v53 = vld [vmem:[#allocation61_spill] sm:$0xff]  ;;  %v5182_v47 = vld [vmem:[#allocation28_spill] sm:$0xff] }
 0x7cc   :  { %1708 = vmatpush.msrb.mxu1 %v1630_v30  ;;  %1775 = vmatpush.msrb.mxu0 %v1665_v17 }
 0x7cd   :  { %2616 = vmatmul.msk.f32.vlgmr.msrb.gmra.mxu2 %vm422_vm8, %v4534_v39 }
 0x7ce   :  { %1709 = vmatpush.msrb.mxu1 %v1614_v1  ;;  %1821 = vmatpush.msra.mxu2 %v4133_v59  ;;  %v5180_v1 = vld [vmem:[#allocation64_spill] sm:$0xff] }
 0x7cf   :  { %v1641_v42 = vpop.permute.xlu0 %1640  ;;  %v1587_v43 = vpop.permute.xlu1 %1586 }
 0x7d0   :  { %v1642_v61 = vsel %vm362_vm2, %v4454_v15, %v1641_v42  ;;  %v1645_v10 = vsel %vm362_vm2, %v1641_v42, %v4444_v12  ;;  %1822 = vmatpush.msra.mxu2 %v4137_v49  ;;  %v1549_v15 = vld [vmem:[%s5158_s8 + $0x8] sm:$0xff]  ;;  %v1591_v49 = vsel %vm291_vm5, %v4446_v19, %v1587_v43  ;;  %v5181_v42 = vld [vmem:[#allocation31_spill] sm:$0xff] }
 0x7d1   :  { %v1648_v59 = vmul.f32 %v1642_v61, %v3113_v54  ;;  %v1649_v25 = vmul.f32 %v1645_v10, %v3116_v55  ;;  %v1616_v54 = vmul.f32 %v4375_v6, %v3142_v7  ;;  %v1617_v55 = vmul.f32 %v4377_v46, %v3145_v8  ;;  %1689 = vperm.xlu2 %2695, %v1549_v15   ;;  %v5163_v46 = vld [vmem:[#allocation36_spill] sm:$0xff]  ;;  %v5164_v12 = vld [vmem:[#allocation25_spill] sm:$0xff]  ;;  %v5183_v61 = vld [vmem:[#allocation63_spill] sm:$0xff] }
 0x7d2   :  { %1823 = vmatpush.msra.mxu2 %v4141_v44  ;;  %v1575_v8 = vsel %vm270_vm6, %v4452_v24, %v4496_v48  ;;  %v5186_v10 = vld [vmem:[#allocation66_spill] sm:$0xff] }
 0x7d3   :  { %1753 = vmatpush.msra.mxu3 %v1648_v59  ;;  %1776 = vmatpush.msrb.mxu0 %v1649_v25  ;;  %v5187_v59 = vld [vmem:[#allocation67_spill] sm:$0xff]  ;;  %v5191_v15 = vld [vmem:[#allocation70_spill] sm:$0xff] }
 0x7d4   :  { %1824 = vmatpush.msra.mxu2 %v4158_v18  ;;  %v5162_v18 = vld [vmem:[#allocation22_spill] sm:$0xff]  ;;  %v5188_v25 = vld [vmem:[#allocation39_spill] sm:$0xff] }
 0x7d5   :  { %1754 = vmatpush.msra.mxu3 %v1632_v41  ;;  %1777 = vmatpush.msrb.mxu0 %v1633_v11  ;;  %v1596_v6 = vmul.f32 %v1591_v49, %v5162_v18  ;;  %v5189_v41 = vld [vmem:[#allocation62_spill] sm:$0xff]  ;;  %v5190_v11 = vld [vmem:[#allocation69_spill] sm:$0xff]  ;;  %v5201_v18 = vld [vmem:[#allocation76_spill] sm:$0xff] }
 0x7d6   :  { %2617 = vmatmul.msk.f32.gmra.mxu2 %vm422_vm8, %v4561_v36  ;;  %v5197_v49 = vld [vmem:[#allocation46_spill] sm:$0xff] }
 0x7d7   :  { %v1603_v3 = vpop.permute.xlu0 %1602  ;;  %v1555_v4 = vpop.permute.xlu1 %1554  ;;  %1755 = vmatpush.msra.mxu3 %v1616_v54  ;;  %1778 = vmatpush.msrb.mxu0 %v1617_v55  ;;  %v5192_v54 = vld [vmem:[#allocation42_spill] sm:$0xff]  ;;  %v5193_v55 = vld [vmem:[#allocation65_spill] sm:$0xff] }
 0x7d8   :  { %v1607_v44 = vsel %vm312_vm4, %v4448_v23, %v1603_v3  ;;  %1825 = vmatpush.msra.mxu2 %v4162_v13  ;;  %v1559_v19 = vsel %vm249_vm7, %v4485_v52, %v1555_v4  ;;  %v1580_v13 = vmul.f32 %v1575_v8, %v5164_v12  ;;  %v5165_v23 = vld [vmem:[#allocation38_spill] sm:$0xff]  ;;  %v5200_v8 = vld [vmem:[#allocation48_spill] sm:$0xff]  ;;  %v5205_v12 = vld [vmem:[#allocation75_spill] sm:$0xff] }
 0x7d9   :  { %v1612_v7 = vmul.f32 %v1607_v44, %v3170_v27  ;;  %v1573_v27 = vpop.permute.xlu2 %1572  ;;  %v1564_v5 = vmul.f32 %v1559_v19, %v5166_v60  ;;  %v5198_v44 = vld [vmem:[#allocation74_spill] sm:$0xff]  ;;  %v5203_v19 = vld [vmem:[#allocation49_spill] sm:$0xff] }
 0x7da   :  { %1826 = vmatpush.msra.mxu2 %v4165_v37  ;;  %v1574_v56 = vsel %vm270_vm6, %v4496_v48, %v1573_v27  ;;  %v5175_v48 = vld [vmem:[#allocation30_spill] sm:$0xff] }
 0x7db   :  { %1756 = vmatpush.msra.mxu3 %v1612_v7  ;;  %v1581_v28 = vmul.f32 %v1574_v56, %v5176_v26  ;;  %v5199_v7 = vld [vmem:[#allocation71_spill] sm:$0xff]  ;;  %v5210_v60 = vld [vmem:[#allocation82_spill] sm:$0xff] }
 0x7dc   :  { %1827 = vmatpush.msra.mxu2 %v5163_v46  ;;  %v5204_v46 = vld [vmem:[#allocation78_spill] sm:$0xff]  ;;  %v5223_v56 = vld [vmem:[#allocation87_spill] sm:$0xff] }
 0x7dd   :  { %1757 = vmatpush.msra.mxu3 %v1596_v6  ;;  %v5202_v6 = vld [vmem:[#allocation73_spill] sm:$0xff] }
 0x7de   :  { %1828 = vmatpush.msra.mxu2 %v5165_v23  ;;  %v5209_v23 = vld [vmem:[#allocation51_spill] sm:$0xff] }
 0x7df   :  { %v1605_v24 = vpop.permute.xlu0 %1604  ;;  %v1589_v58 = vpop.permute.xlu1 %1588  ;;  %1758 = vmatpush.msra.mxu3 %v1580_v13  ;;  %v5206_v13 = vld [vmem:[#allocation50_spill] sm:$0xff] }
 0x7e0   :  { %v1606_v37 = vsel %vm312_vm4, %v1603_v3, %v1605_v24  ;;  %v1609_v52 = vsel %vm312_vm4, %v1605_v24, %v4434_v50  ;;  %v1590_v35 = vsel %vm291_vm5, %v1587_v43, %v1589_v58  ;;  %v1593_v40 = vsel %vm291_vm5, %v1589_v58, %v4442_v29  ;;  %1829 = vmatpush.msra.mxu2 %v5167_v9  ;;  %v5171_v29 = vld [vmem:[#allocation29_spill] sm:$0xff]  ;;  %v5195_v3 = vld [vmem:[#allocation44_spill] sm:$0xff]  ;;  %v5218_v9 = vld [vmem:[#allocation54_spill] sm:$0xff] }
 0x7e1   :  { %v1610_v33 = vmul.f32 %v1609_v52, %v5168_v0  ;;  %v1613_v34 = vmul.f32 %v1606_v37, %v5169_v14  ;;  %1759 = vmatpush.msra.mxu3 %v1564_v5  ;;  %v1577_v50 = vsel %vm270_vm6, %v1573_v27, %v4436_v57  ;;  %v1594_v38 = vmul.f32 %v1593_v40, %v5171_v29  ;;  %v5177_v57 = vld [vmem:[#allocation47_spill] sm:$0xff]  ;;  %v5208_v27 = vld [vmem:[#allocation77_spill] sm:$0xff]  ;;  %v5212_v24 = vld [vmem:[#allocation52_spill] sm:$0xff] }
 0x7e2   :  { %2618 = vmatmul.msk.f32.vlgmr.msra.gmra.mxu3 %vm422_vm8, %v4534_v39  ;;  %1830 = vmatpush.msra.mxu2 %v5170_v20  ;;  %v1597_v45 = vmul.f32 %v1590_v35, %v5172_v16  ;;  %v1578_v31 = vmul.f32 %v1577_v50, %v5175_v48  ;;  %v5211_v5 = vld [vmem:[#allocation79_spill] sm:$0xff]  ;;  %v5213_v58 = vld [vmem:[#allocation84_spill] sm:$0xff]  ;;  %v5214_v37 = vld [vmem:[#allocation81_spill] sm:$0xff] }
 0x7e3   :  { %1710 = vmatpush.msrb.mxu1 %v1610_v33  ;;  %1779 = vmatpush.msrb.mxu0 %v1613_v34  ;;  %v5215_v52 = vld [vmem:[#allocation53_spill] sm:$0xff]  ;;  %v5216_v35 = vld [vmem:[#allocation86_spill] sm:$0xff]  ;;  %v5217_v40 = vld [vmem:[#allocation83_spill] sm:$0xff] }
 0x7e4   :  { %1831 = vmatpush.msra.mxu2 %v5173_v63  ;;  %1844 = vmatpush.msrb.mxu3 %v5174_v51  ;;  %v5219_v0 = vld [vmem:[#allocation88_spill] sm:$0xff]  ;;  %v5220_v33 = vld [vmem:[#allocation85_spill] sm:$0xff]  ;;  %v5221_v14 = vld [vmem:[#allocation55_spill] sm:$0xff] }
 0x7e5   :  { %1711 = vmatpush.msrb.mxu1 %v1594_v38  ;;  %1780 = vmatpush.msrb.mxu0 %v1597_v45  ;;  %v5222_v34 = vld [vmem:[#allocation90_spill] sm:$0xff]  ;;  %v5224_v50 = vld [vmem:[#allocation56_spill] sm:$0xff]  ;;  %v5226_v29 = vld [vmem:[#allocation89_spill] sm:$0xff] }
 0x7e6   :  { %1832 = vmatpush.msra.mxu2 %v5177_v57  ;;  %1845 = vmatpush.msrb.mxu3 %v5178_v53  ;;  %v5225_v20 = vld [vmem:[#allocation92_spill] sm:$0xff]  ;;  %v5227_v38 = vld [vmem:[#allocation57_spill] sm:$0xff]  ;;  %v5228_v16 = vld [vmem:[#allocation91_spill] sm:$0xff] }
 0x7e7   :  { %v1557_v17 = vpop.permute.xlu0 %1556  ;;  %1712 = vmatpush.msrb.mxu1 %v1578_v31  ;;  %1781 = vmatpush.msrb.mxu0 %v1581_v28  ;;  %v5229_v45 = vld [vmem:[#allocation58_spill] sm:$0xff]  ;;  %v5230_v63 = vld [vmem:[#allocation93_spill] sm:$0xff]  ;;  %v1685_v51 = vpop.permute.xlu1 %1684 }
 0x7e8   :  { %v1558_v2 = vsel %vm249_vm7, %v1555_v4, %v1557_v17  ;;  %v1561_v30 = vsel %vm249_vm7, %v1557_v17, %v4440_v22  ;;  %1833 = vmatpush.msra.mxu2 %v5179_v32  ;;  %1846 = vmatpush.msrb.mxu3 %v5180_v1  ;;  %v5185_v22 = vld [vmem:[#allocation41_spill] sm:$0xff]  ;;  %v5196_v4 = vld [vmem:[#allocation68_spill] sm:$0xff] }
 0x7e9   :  { %v1562_v43 = vmul.f32 %v1561_v30, %v5181_v42  ;;  %v1565_v62 = vmul.f32 %v1558_v2, %v5182_v47 }
 0x7ea   :  { %2619 = vmatmul.msk.f32.gmra.mxu3 %vm422_vm8, %v4561_v36  ;;  %1834 = vmatpush.msra.mxu2 %v5183_v61 }
 0x7eb   :  { %1713 = vmatpush.msrb.mxu1 %v1562_v43  ;;  %1782 = vmatpush.msrb.mxu0 %v1565_v62 }
 0x7ec   :  { %2614 = vmatmul.msk.f32.vlgmr.msrb.gmra.mxu1 %vm422_vm8, %v4534_v39  ;;  %2620 = vmatmul.msk.f32.vlgmr.msrb.gmra.mxu0 %vm422_vm8, %v4534_v39  ;;  %v5194_v39 = vld [vmem:[#allocation72_spill] sm:$0xff] }
 0x7ed   :  { %1798 = vmatpush.msra.mxu1 %v5184_v21  ;;  %1867 = vmatpush.msra.mxu0 %v5185_v22 }
 0x7ee   :  { %1835 = vmatpush.msra.mxu2 %v5186_v10  ;;  %1847 = vmatpush.msrb.mxu3 %v5187_v59 }
 0x7ef   :  { %1799 = vmatpush.msra.mxu1 %v5188_v25  ;;  %1868 = vmatpush.msra.mxu0 %v5189_v41 }
 0x7f0   :  { %1836 = vmatpush.msra.mxu2 %v5190_v11  ;;  %1848 = vmatpush.msrb.mxu3 %v5191_v15 }
 0x7f1   :  { %1800 = vmatpush.msra.mxu1 %v5192_v54  ;;  %1869 = vmatpush.msra.mxu0 %v5193_v55 }
 0x7f2   :  { %1849 = vmatpush.msrb.mxu3 %v5194_v39 }
 0x7f3   :  { %1801 = vmatpush.msra.mxu1 %v5195_v3  ;;  %1870 = vmatpush.msra.mxu0 %v5196_v4 }
 0x7f4   :  { %2615 = vmatmul.msk.f32.gmra.mxu1 %vm422_vm8, %v4561_v36  ;;  %2621 = vmatmul.msk.f32.gmra.mxu0 %vm422_vm8, %v4561_v36  ;;  %v5207_v36 = vld [vmem:[#allocation80_spill] sm:$0xff] }
 0x7f5   :  { %1802 = vmatpush.msra.mxu1 %v5197_v49  ;;  %1850 = vmatpush.msrb.mxu3 %v5198_v44 }
 0x7f6   :  { %1871 = vmatpush.msra.mxu0 %v5199_v7 }
 0x7f7   :  { %1803 = vmatpush.msra.mxu1 %v5200_v8  ;;  %1851 = vmatpush.msrb.mxu3 %v5201_v18 }
 0x7f8   :  { %1872 = vmatpush.msra.mxu0 %v5202_v6 }
 0x7f9   :  { %1804 = vmatpush.msra.mxu1 %v5203_v19  ;;  %1852 = vmatpush.msrb.mxu3 %v5204_v46 }
 0x7fa   :  { %1873 = vmatpush.msra.mxu0 %v5205_v12 }
 0x7fb   :  { %1805 = vmatpush.msra.mxu1 %v5206_v13  ;;  %1853 = vmatpush.msrb.mxu3 %v5207_v36 }
 0x7fc   :  { %1874 = vmatpush.msra.mxu0 %v5208_v27 }
 0x7fd   :  { %1806 = vmatpush.msra.mxu1 %v5209_v23  ;;  %1854 = vmatpush.msrb.mxu3 %v5210_v60  ;;  %v1425_v23 = vld [vmem:[%s5231_s30 + $0x8] sm:$0xff] }
 0x7fe   :  { %1875 = vmatpush.msra.mxu0 %v5211_v5  ;;  %v1895_v60 = vld [vmem:[%s5232_s6 + $0x8] sm:$0xff]  ;;  %v1894_v5 = vld [vmem:[%s5232_s6] sm:$0xff] }
 0x7ff   :  { %1807 = vmatpush.msra.mxu1 %v5212_v24  ;;  %1855 = vmatpush.msrb.mxu3 %v5213_v58  ;;  %v1424_v24 = vld [vmem:[%s5231_s30] sm:$0xff] }
 0x800   :  { %1876 = vmatpush.msra.mxu0 %v5214_v37 }
 0x801   :  { %1808 = vmatpush.msra.mxu1 %v5215_v52  ;;  %1856 = vmatpush.msrb.mxu3 %v5216_v35  ;;  %v4724_v35 = vld [vmem:[%s5233_s7 + $0x8] ss:$0 sm:$0xff] }
 0x802   :  { %1877 = vmatpush.msra.mxu0 %v5217_v40 }
 0x803   :  { %1809 = vmatpush.msra.mxu1 %v5218_v9  ;;  %1857 = vmatpush.msrb.mxu3 %v5219_v0 }
 0x804   :  { %1878 = vmatpush.msra.mxu0 %v5220_v33 }
 0x805   :  { %1810 = vmatpush.msra.mxu1 %v5221_v14  ;;  %1858 = vmatpush.msrb.mxu3 %v5222_v34  ;;  %v147_v14 = vld [vmem:[%s5233_s7] sm:$0xff] }
 0x806   :  { %1879 = vmatpush.msra.mxu0 %v5223_v56  ;;  %v4728_v34 = vperm.slane %v147_v14, 7 }
 0x807   :  { %1811 = vmatpush.msra.mxu1 %v5224_v50  ;;  %1859 = vmatpush.msrb.mxu3 %v5225_v20  ;;  %v4730_v50 = vperm.slane %v147_v14, 6 }
 0x808   :  { %1880 = vmatpush.msra.mxu0 %v5226_v29 }
 0x809   :  { %1812 = vmatpush.msra.mxu1 %v5227_v38 }
 0x80a   :  { %1881 = vmatpush.msra.mxu0 %v5228_v16 }
 0x80b   :  { %1813 = vmatpush.msra.mxu1 %v5229_v45  ;;  %v4735_v45 = vperm.slane %v147_v14, 5 }
 0x80c   :  { %1882 = vmatpush.msra.mxu0 %v5230_v63 }
 0x82b   :  { %v1690_v57 = vpop.permute.xlu2 %1689 }
 0x83f   :  { %v4689_v28 = vpop.f32.mrf.mxu1 }
 0x847   :  { %v4691_v30 = vpop.f32.mrf.mxu1 }
 0x850   :  { %v1738_v48 = vpop.f32.mrf.mxu2 }
 0x851   :  { %v1739_v31 = vadd.f32 %v1738_v48, %v1685_v51 }
 0x853   :  { %v1791_v26 = vmax.f32 %v1739_v31, 0.0 }
 0x855   :  { %1837 = vmatmul.f32.vlgmr.msra.gmra.mxu2 %v1791_v26 }
 0x859   :  { %v1741_v53 = vpop.f32.mrf.mxu2 }
 0x85a   :  { %v1742_v17 = vadd.f32 %v1741_v53, %v1690_v57 }
 0x85c   :  { %v1795_v2 = vmax.f32 %v1742_v17, 0.0  ;;  %v4743_v17 = vperm.slane %v147_v14, 3 }
 0x85e   :  { %1840 = vmatmul.f32.gmra.mxu2 %v1795_v2 }
 0x865   :  { %v1761_v32 = vpop.f32.mrf.mxu3 }
 0x866   :  { %v1762_v1 = vadd.f32 %v1761_v32, %v1685_v51 }
 0x868   :  { %v1792_v42 = vmax.f32 %v1762_v1, 0.0  ;;  %v4747_v1 = vperm.slane %v147_v14, 2 }
 0x869   :  { %v1715_v43 = vpop.f32.mrf.mxu1  ;;  %v1784_v47 = vpop.f32.mrf.mxu0 }
 0x86a   :  { %v1716_v62 = vadd.f32 %v1715_v43, %v1685_v51  ;;  %v1785_v61 = vadd.f32 %v1784_v47, %v1685_v51  ;;  %1860 = vmatmul.f32.vlgmr.msrb.gmra.mxu3 %v1792_v42 }
 0x86c   :  { %v1790_v21 = vmax.f32 %v1716_v62, 0.0  ;;  %v1793_v22 = vmax.f32 %v1785_v61, 0.0  ;;  %v4752_v61 = vperm.slane %v147_v14, 1 }
 0x86d   :  { %v1764_v10 = vpop.f32.mrf.mxu3 }
 0x86e   :  { %v1765_v59 = vadd.f32 %v1764_v10, %v1690_v57  ;;  %1814 = vmatmul.f32.vlgmr.msra.gmra.mxu1 %v1790_v21  ;;  %1883 = vmatmul.f32.vlgmr.msra.gmra.mxu0 %v1793_v22  ;;  %v4755_v10 = vperm.slane %v147_v14, 0 }
 0x870   :  { %v1796_v25 = vmax.f32 %v1765_v59, 0.0 }
 0x871   :  { %v1718_v41 = vpop.f32.mrf.mxu1  ;;  %v1787_v11 = vpop.f32.mrf.mxu0 }
 0x872   :  { %v1719_v15 = vadd.f32 %v1718_v41, %v1690_v57  ;;  %v1788_v54 = vadd.f32 %v1787_v11, %v1690_v57  ;;  %1863 = vmatmul.f32.gmra.mxu3 %v1796_v25  ;;  %v4740_v57 = vperm.slane %v147_v14, 4 }
 0x874   :  { %v1794_v55 = vmax.f32 %v1719_v15, 0.0  ;;  %v1797_v39 = vmax.f32 %v1788_v54, 0.0  ;;  %v1891_v15 = vld [vmem:[%s5234_s10 + $0x8] sm:$0xff] }
 0x876   :  { %1817 = vmatmul.f32.gmra.mxu1 %v1794_v55  ;;  %1886 = vmatmul.f32.gmra.mxu0 %v1797_v39 }
 0x8d8   :  { %v1838_v3 = vpop.f32.mrf.mxu2 }
 0x8e1   :  { %v1841_v6 = vpop.f32.mrf.mxu2 }
 0x8eb   :  { %v1815_v4 = vpop.f32.mrf.mxu1  ;;  %v1884_v44 = vpop.f32.mrf.mxu0 }
 0x8ec   :  { %v1839_v49 = vadd.f32 %v1838_v3, %v1815_v4  ;;  %v1890_v4 = vld [vmem:[%s5234_s10] sm:$0xff] }
 0x8ed   :  { %v1861_v7 = vpop.f32.mrf.mxu3 }
 0x8ee   :  { %v1862_v8 = vadd.f32 %v1861_v7, %v1839_v49  ;;  %v1893_v49 = vld [vmem:[%s5234_s10 + $0x18] sm:$0xff] }
 0x8f0   :  { %v4693_v18 = vadd.f32 %v1884_v44, %v1862_v8  ;;  %v1892_v44 = vld [vmem:[%s5234_s10 + $0x10] sm:$0xff] }
 0x8f2   :  { %1927 = vrot.lane.b32.xlu2 %v4693_v18, %s2795_s23  ;;  %1934 = vrot.lane.b32.xlu0 %v4693_v18, %s2800_s19  ;;  %v1925_v2 = vmul.f32 %v4740_v57, %v4693_v18 }
 0x8f3   :  { %1941 = vrot.lane.b32.xlu1 %v4693_v18, %s2801_s24  ;;  %v1818_v19 = vpop.f32.mrf.mxu1  ;;  %v1887_v36 = vpop.f32.mrf.mxu0 }
 0x8f4   :  { %v1842_v46 = vadd.f32 %v1841_v6, %v1818_v19 }
 0x8f5   :  { %v1864_v12 = vpop.f32.mrf.mxu3 }
 0x8f6   :  { %v1865_v13 = vadd.f32 %v1864_v12, %v1842_v46 }
 0x8f8   :  { %v1888_v27 = vadd.f32 %v1887_v36, %v1865_v13 }
 0x8fa   :  { %1936 = vrot.lane.b32.xlu2 %v1888_v27, %s2800_s19  ;;  %1943 = vrot.lane.b32.xlu0 %v1888_v27, %s2801_s24  ;;  %v1926_v53 = vmul.f32 %v4740_v57, %v1888_v27 }
 0x8fb   :  { %1929 = vrot.lane.b32.xlu1 %v1888_v27, %s2795_s23 }
 0x902   :  { %1912 = vrot.lane.b32.xlu2 %v1888_v27, %s2802_s12  ;;  %1910 = vrot.lane.b32.xlu0 %v4693_v18, %s2802_s12 }
 0x903   :  { %1917 = vrot.lane.b32.xlu1 %v4693_v18, %s2796_s26 }
 0x90a   :  { %1950 = vrot.lane.b32.xlu2 %v1888_v27, %s2803_s27  ;;  %1919 = vrot.lane.b32.xlu0 %v1888_v27, %s2796_s26 }
 0x90b   :  { %1905 = vrot.lane.b32.xlu1 %v1888_v27, %s2790_s22 }
 0x912   :  { %1898 = vrot.lane.b32.xlu2 %v1888_v27, %s2804_s2  ;;  %1903 = vrot.lane.b32.xlu0 %v4693_v18, %s2790_s22 }
 0x913   :  { %1948 = vrot.lane.b32.xlu1 %v4693_v18, %s2803_s27 }
 0x91a   :  { %1513 = vperm.xlu2 %2695, %v1425_v23   ;;  %1896 = vrot.lane.b32.xlu0 %v4693_v18, %s2804_s2 }
 0x91b   :  { %1962 = vperm.xlu1 %2694, %v1895_v60  }
 0x922   :  { %1957 = vperm.xlu0 %2693, %v1894_v5  }
 0x923   :  { %1508 = vperm.xlu1 %2694, %v1424_v24  }
 0x94c   :  { %v1928_v58 = vpop.permute.xlu2 %1927 }
 0x94d   :  { %v1932_v26 = vmul.f32 %v4735_v45, %v1928_v58 }
 0x954   :  { %v1937_v37 = vpop.permute.xlu2 %1936 }
 0x955   :  { %v1940_v16 = vmul.f32 %v4730_v50, %v1937_v37 }
 0x95c   :  { %v1913_v52 = vpop.permute.xlu2 %1912 }
 0x95d   :  { %v1916_v62 = vmul.f32 %v4747_v1, %v1913_v52 }
 0x964   :  { %v1935_v40 = vpop.permute.xlu0 %1934  ;;  %v1951_v9 = vpop.permute.xlu2 %1950 }
 0x965   :  { %v1942_v0 = vpop.permute.xlu1 %1941  ;;  %v1954_v33 = vmul.f32 %v4724_v35, %v1951_v9  ;;  %v1939_v63 = vmul.f32 %v4730_v50, %v1935_v40 }
 0x966   :  { %v1946_v38 = vmul.f32 %v4728_v34, %v1942_v0 }
 0x967   :  { %2009 = vmatpush.msrb.mxu2 %v1954_v33 }
 0x96c   :  { %v1944_v56 = vpop.permute.xlu0 %1943  ;;  %v1899_v41 = vpop.permute.xlu2 %1898 }
 0x96d   :  { %v1930_v20 = vpop.permute.xlu1 %1929  ;;  %v1947_v29 = vmul.f32 %v4728_v34, %v1944_v56  ;;  %v1902_v55 = vmul.f32 %v4755_v10, %v1899_v41 }
 0x96e   :  { %v1933_v48 = vmul.f32 %v4735_v45, %v1930_v20 }
 0x96f   :  { %1972 = vmatpush.msrb.mxu1 %v1947_v29 }
 0x971   :  { %1973 = vmatpush.msrb.mxu1 %v1946_v38 }
 0x973   :  { %1974 = vmatpush.msrb.mxu1 %v1940_v16 }
 0x974   :  { %v1911_v51 = vpop.permute.xlu0 %1910  ;;  %v1514_v27 = vpop.permute.xlu2 %1513 }
 0x975   :  { %v1918_v31 = vpop.permute.xlu1 %1917  ;;  %1975 = vmatpush.msrb.mxu1 %v1939_v63  ;;  %v1915_v21 = vmul.f32 %v4747_v1, %v1911_v51  ;;  %v1544_v58 = vadd.f32 %v4691_v30, %v1514_v27  ;;  %v2026_v30 = vld [vmem:[%s5235_s11] sm:$0xff] }
 0x976   :  { %v1922_v47 = vmul.f32 %v4743_v17, %v1918_v31 }
 0x977   :  { %1976 = vmatpush.msrb.mxu1 %v1933_v48 }
 0x979   :  { %1977 = vmatpush.msrb.mxu1 %v1932_v26 }
 0x97b   :  { %1978 = vmatpush.msrb.mxu1 %v1926_v53 }
 0x97c   :  { %v1920_v32 = vpop.permute.xlu0 %1919 }
 0x97d   :  { %v1906_v42 = vpop.permute.xlu1 %1905  ;;  %v1923_v43 = vmul.f32 %v4743_v17, %v1920_v32  ;;  %1979 = vmatpush.msrb.mxu1 %v1925_v2 }
 0x97e   :  { %v1909_v59 = vmul.f32 %v4752_v61, %v1906_v42 }
 0x97f   :  { %1980 = vmatpush.msrb.mxu1 %v1923_v43 }
 0x981   :  { %1981 = vmatpush.msrb.mxu1 %v1922_v47 }
 0x983   :  { %1982 = vmatpush.msrb.mxu1 %v1916_v62 }
 0x984   :  { %v1904_v22 = vpop.permute.xlu0 %1903 }
 0x985   :  { %v1949_v25 = vpop.permute.xlu1 %1948  ;;  %1983 = vmatpush.msrb.mxu1 %v1915_v21  ;;  %v1908_v54 = vmul.f32 %v4752_v61, %v1904_v22 }
 0x986   :  { %v1953_v11 = vmul.f32 %v4724_v35, %v1949_v25 }
 0x987   :  { %1984 = vmatpush.msrb.mxu1 %v1909_v59 }
 0x988   :  { %2010 = vmatpush.msrb.mxu2 %v1953_v11 }
 0x989   :  { %1985 = vmatpush.msrb.mxu1 %v1908_v54  ;;  %2622 = vmatmul.msk.f32.vlgmr.msrb.gmra.mxu2 %vm1965_vm10, %v1891_v15 }
 0x98b   :  { %1986 = vmatpush.msrb.mxu1 %v1902_v55 }
 0x98c   :  { %v1897_v39 = vpop.permute.xlu0 %1896 }
 0x98d   :  { %v1901_v3 = vmul.f32 %v4755_v10, %v1897_v39  ;;  %v1963_v7 = vpop.permute.xlu1 %1962  ;;  %v2022_v39 = vld [vmem:[%s5236_s15] sm:$0xff] }
 0x98f   :  { %1987 = vmatpush.msrb.mxu1 %v1901_v3 }
 0x990   :  { %1988 = vmatmul.f32.vlgmr.msrb.gmra.mxu1 %v1890_v4 }
 0x991   :  { %2623 = vmatmul.msk.f32.gmra.mxu2 %vm1965_vm10, %v1893_v49 }
 0x994   :  { %v1958_v8 = vpop.permute.xlu0 %1957 }
 0x995   :  { %v1509_v6 = vpop.permute.xlu1 %1508 }
 0x996   :  { %v1541_v12 = vadd.f32 %v4689_v28, %v1509_v6  ;;  %v2027_v28 = vld [vmem:[%s5235_s11 + $0x8] sm:$0xff] }
 0x998   :  { %1991 = vmatmul.f32.gmra.mxu1 %v1892_v44 }
 0xa0c   :  { %v2012_v18 = vpop.f32.mrf.mxu2 }
 0xa0d   :  { %v1989_v19 = vpop.f32.mrf.mxu1 }
 0xa0e   :  { %v1990_v46 = vadd.f32 %v1989_v19, %v1958_v8  ;;  %v2024_v8 = vld [vmem:[%s5236_s15 + $0x10] sm:$0xff] }
 0xa10   :  { %v2013_v13 = vadd.f32 %v2012_v18, %v1990_v46  ;;  %v2025_v18 = vld [vmem:[%s5236_s15 + $0x18] sm:$0xff] }
 0xa12   :  { %v2018_v36 = vadd.f32 %v2013_v13, %v1541_v12 }
 0xa14   :  { %v4769_v23 = vmax.f32 %v2018_v36, 0.0  ;;  %v2015_v5 = vpop.f32.mrf.mxu2 }
 0xa15   :  { %v1992_v60 = vpop.f32.mrf.mxu1 }
 0xa16   :  { %v1993_v24 = vadd.f32 %v1992_v60, %v1963_v7  ;;  %2066 = vrot.lane.b32.xlu0 %v4769_v23, %s2801_s24  ;;  %v2052_v32 = vmul.f32 %v4769_v23, %v4740_v57  ;;  %v2023_v7 = vld [vmem:[%s5236_s15 + $0x8] sm:$0xff] }
 0xa18   :  { %v2016_v37 = vadd.f32 %v2015_v5, %v1993_v24 }
 0xa1a   :  { %v2019_v52 = vadd.f32 %v2016_v37, %v1544_v58 }
 0xa1c   :  { %v4774_v40 = vmax.f32 %v2019_v52, 0.0  ;;  %v2146_v52 = vld [vmem:[%s2944_s21] sm:$0xff] }
 0xa1e   :  { %2062 = vrot.lane.b32.xlu1 %v4774_v40, %s2800_s19  ;;  %2068 = vrot.lane.b32.xlu2 %v4774_v40, %s2801_s24  ;;  %v2053_v53 = vmul.f32 %v4774_v40, %v4740_v57 }
 0xa1f   :  { %2056 = vrot.lane.b32.xlu0 %v4774_v40, %s2795_s23 }
 0xa26   :  { %2054 = vrot.lane.b32.xlu1 %v4769_v23, %s2795_s23  ;;  %2060 = vrot.lane.b32.xlu2 %v4769_v23, %s2800_s19 }
 0xa27   :  { %2046 = vrot.lane.b32.xlu0 %v4769_v23, %s2796_s26 }
 0xa2e   :  { %2042 = vrot.lane.b32.xlu1 %v4774_v40, %s2802_s12  ;;  %2048 = vrot.lane.b32.xlu2 %v4774_v40, %s2796_s26 }
 0xa2f   :  { %2036 = vrot.lane.b32.xlu0 %v4774_v40, %s2790_s22 }
 0xa36   :  { %2034 = vrot.lane.b32.xlu1 %v4769_v23, %s2790_s22  ;;  %2040 = vrot.lane.b32.xlu2 %v4769_v23, %s2802_s12 }
 0xa37   :  { %2028 = vrot.lane.b32.xlu0 %v4769_v23, %s2804_s2 }
 0xa3e   :  { %2074 = vrot.lane.b32.xlu1 %v4774_v40, %s2803_s27  ;;  %2030 = vrot.lane.b32.xlu2 %v4774_v40, %s2804_s2 }
 0xa3f   :  { %2085 = vperm.xlu0 %2693, %v2027_v28   ;;  %v2147_v28 = vld [vmem:[%s2944_s21 + $0x8] sm:$0xff]  ;;  %s5237_s21 = sld [smem:[#allocation19_spill]] }
 0xa46   :  { %2080 = vperm.xlu1 %2694, %v2026_v30   ;;  %2072 = vrot.lane.b32.xlu2 %v4769_v23, %s2803_s27  ;;  %v2320_v30 = vld [vmem:[%s2954_s20 + $0x8] sm:$0xff] }
 0xa78   :  { %v2069_v9 = vpop.permute.xlu2 %2068 }
 0xa79   :  { %v2071_v0 = vmul.f32 %v2069_v9, %v4728_v34  ;;  %v2321_v9 = vld [vmem:[%s2954_s20 + $0x10] sm:$0xff] }
 0xa7b   :  { %2094 = vmatpush.msra.mxu3 %v2071_v0  ;;  %v2319_v0 = vld [vmem:[%s2954_s20] sm:$0xff] }
 0xa80   :  { %v2061_v33 = vpop.permute.xlu2 %2060 }
 0xa81   :  { %v2064_v63 = vmul.f32 %v2061_v33, %v4730_v50  ;;  %v2323_v33 = vld [vmem:[%s2954_s20 + $0x20] sm:$0xff] }
 0xa88   :  { %v2067_v14 = vpop.permute.xlu0 %2066  ;;  %v2049_v16 = vpop.permute.xlu2 %2048 }
 0xa89   :  { %v2070_v56 = vmul.f32 %v2067_v14, %v4728_v34  ;;  %v2051_v42 = vmul.f32 %v2049_v16, %v4743_v17  ;;  %v2324_v14 = vld [vmem:[%s2954_s20 + $0x28] sm:$0xff]  ;;  %v2329_v16 = vld [vmem:[%s2954_s20 + $0x50] sm:$0xff] }
 0xa8b   :  { %2095 = vmatpush.msra.mxu3 %v2070_v56  ;;  %v2322_v56 = vld [vmem:[%s2954_s20 + $0x18] sm:$0xff] }
 0xa90   :  { %v2063_v20 = vpop.permute.xlu1 %2062  ;;  %v2041_v2 = vpop.permute.xlu2 %2040 }
 0xa91   :  { %v2065_v29 = vmul.f32 %v2063_v20, %v4730_v50  ;;  %v2057_v38 = vpop.permute.xlu0 %2056  ;;  %v2044_v22 = vmul.f32 %v2041_v2, %v4747_v1  ;;  %v2326_v20 = vld [vmem:[%s2954_s20 + $0x38] sm:$0xff] }
 0xa92   :  { %v2059_v51 = vmul.f32 %v2057_v38, %v4735_v45  ;;  %v2325_v38 = vld [vmem:[%s2954_s20 + $0x30] sm:$0xff] }
 0xa93   :  { %2096 = vmatpush.msra.mxu3 %v2065_v29  ;;  %v2327_v29 = vld [vmem:[%s2954_s20 + $0x40] sm:$0xff] }
 0xa95   :  { %2097 = vmatpush.msra.mxu3 %v2064_v63  ;;  %v2330_v63 = vld [vmem:[%s2954_s20 + $0x58] sm:$0xff] }
 0xa97   :  { %2098 = vmatpush.msra.mxu3 %v2059_v51  ;;  %v2328_v51 = vld [vmem:[%s2954_s20 + $0x48] sm:$0xff] }
 0xa98   :  { %v2055_v48 = vpop.permute.xlu1 %2054  ;;  %v2031_v59 = vpop.permute.xlu2 %2030 }
 0xa99   :  { %v2058_v31 = vmul.f32 %v2055_v48, %v4735_v45  ;;  %v2047_v26 = vpop.permute.xlu0 %2046  ;;  %v2033_v54 = vmul.f32 %v2031_v59, %v4755_v10  ;;  %v2332_v48 = vld [vmem:[%s2954_s20 + $0x68] sm:$0xff] }
 0xa9a   :  { %v2050_v47 = vmul.f32 %v2047_v26, %v4743_v17  ;;  %v2331_v26 = vld [vmem:[%s2954_s20 + $0x60] sm:$0xff] }
 0xa9b   :  { %2099 = vmatpush.msra.mxu3 %v2058_v31  ;;  %v2333_v31 = vld [vmem:[%s2954_s20 + $0x70] sm:$0xff] }
 0xa9d   :  { %2100 = vmatpush.msra.mxu3 %v2053_v53  ;;  %v2334_v53 = vld [vmem:[%s2954_s20 + $0x78] sm:$0xff]  ;;  %s5238_s20 = sld [smem:[#allocation9_spill]] }
 0xa9f   :  { %2101 = vmatpush.msra.mxu3 %v2052_v32 }
 0xaa0   :  { %v2043_v43 = vpop.permute.xlu1 %2042  ;;  %v2073_v3 = vpop.permute.xlu2 %2072 }
 0xaa1   :  { %v2037_v62 = vpop.permute.xlu0 %2036  ;;  %2102 = vmatpush.msra.mxu3 %v2051_v42  ;;  %v2045_v21 = vmul.f32 %v2043_v43, %v4747_v1  ;;  %v2076_v44 = vmul.f32 %v4724_v35, %v2073_v3 }
 0xaa2   :  { %v2039_v25 = vmul.f32 %v2037_v62, %v4752_v61 }
 0xaa3   :  { %2103 = vmatpush.msra.mxu3 %v2050_v47 }
 0xaa5   :  { %2104 = vmatpush.msra.mxu3 %v2045_v21 }
 0xaa7   :  { %2105 = vmatpush.msra.mxu3 %v2044_v22 }
 0xaa8   :  { %v2035_v41 = vpop.permute.xlu1 %2034 }
 0xaa9   :  { %v2038_v11 = vmul.f32 %v2035_v41, %v4752_v61  ;;  %2106 = vmatpush.msra.mxu3 %v2039_v25  ;;  %v2029_v15 = vpop.permute.xlu0 %2028 }
 0xaaa   :  { %v2032_v55 = vmul.f32 %v2029_v15, %v4755_v10 }
 0xaab   :  { %2107 = vmatpush.msra.mxu3 %v2038_v11 }
 0xaad   :  { %2108 = vmatpush.msra.mxu3 %v2033_v54 }
 0xaaf   :  { %2109 = vmatpush.msra.mxu3 %v2032_v55 }
 0xab0   :  { %v2075_v4 = vpop.permute.xlu1 %2074  ;;  %2110 = vmatmul.f32.vlgmr.msra.gmra.mxu3 %v2022_v39 }
 0xab1   :  { %v2077_v49 = vmul.f32 %v4724_v35, %v2075_v4  ;;  %v2086_v27 = vpop.permute.xlu0 %2085 }
 0xab3   :  { %2131 = vmatpush.msrb.mxu0 %v2077_v49 }
 0xab5   :  { %2132 = vmatpush.msrb.mxu0 %v2076_v44 }
 0xab6   :  { %2624 = vmatmul.msk.f32.vlgmr.msrb.gmra.mxu0 %vm1965_vm10, %v2023_v7 }
 0xab8   :  { %2113 = vmatmul.f32.gmra.mxu3 %v2024_v8  ;;  %v2081_v6 = vpop.permute.xlu1 %2080 }
 0xabe   :  { %2625 = vmatmul.msk.f32.gmra.mxu0 %vm1965_vm10, %v2025_v18 }
 0xb33   :  { %v2111_v19 = vpop.f32.mrf.mxu3  ;;  %v2134_v46 = vpop.f32.mrf.mxu0 }
 0xb34   :  { %v2112_v12 = vadd.f32 %v2111_v19, %v2081_v6 }
 0xb36   :  { %v2135_v13 = vadd.f32 %v2134_v46, %v2112_v12 }
 0xb38   :  { %v4834_v36 = vmax.f32 %v2135_v13, 0.0 }
 0xb3a   :  { %2186 = vrot.lane.b32.xlu0 %v4834_v36, %s2801_s24  ;;  %v2172_v39 = vmul.f32 %v4834_v36, %v4740_v57 }
 0xb3b   :  { %v2114_v60 = vpop.f32.mrf.mxu3  ;;  %v2137_v5 = vpop.f32.mrf.mxu0 }
 0xb3c   :  { %v2115_v24 = vadd.f32 %v2114_v60, %v2086_v27  ;;  %v2145_v27 = vld [vmem:[%s5237_s21 + $0x18] sm:$0xff] }
 0xb3d   :  { %v2279_v60 = vld [vmem:[%s5238_s20 + $0x78] sm:$0xff] }
 0xb3e   :  { %v2138_v58 = vadd.f32 %v2137_v5, %v2115_v24  ;;  %v2278_v5 = vld [vmem:[%s5238_s20 + $0x70] sm:$0xff]  ;;  %2280 = vmatpush.msra.mxu1 %v2279_v60  ;;  %v2276_v24 = vld [vmem:[%s5238_s20 + $0x60] sm:$0xff] }
 0xb40   :  { %v4838_v37 = vmax.f32 %v2138_v58, 0.0  ;;  %2281 = vmatpush.msra.mxu1 %v2278_v5  ;;  %v2275_v58 = vld [vmem:[%s5238_s20 + $0x58] sm:$0xff] }
 0xb42   :  { %2182 = vrot.lane.b32.xlu1 %v4838_v37, %s2800_s19  ;;  %2188 = vrot.lane.b32.xlu2 %v4838_v37, %s2801_s24 }
 0xb43   :  { %2176 = vrot.lane.b32.xlu0 %v4838_v37, %s2795_s23 }
 0xb4a   :  { %2174 = vrot.lane.b32.xlu1 %v4834_v36, %s2795_s23  ;;  %2180 = vrot.lane.b32.xlu2 %v4834_v36, %s2800_s19 }
 0xb4b   :  { %2166 = vrot.lane.b32.xlu0 %v4834_v36, %s2796_s26 }
 0xb52   :  { %2162 = vrot.lane.b32.xlu1 %v4838_v37, %s2802_s12  ;;  %2168 = vrot.lane.b32.xlu2 %v4838_v37, %s2796_s26 }
 0xb53   :  { %2156 = vrot.lane.b32.xlu0 %v4838_v37, %s2790_s22 }
 0xb5a   :  { %2154 = vrot.lane.b32.xlu1 %v4834_v36, %s2790_s22  ;;  %2160 = vrot.lane.b32.xlu2 %v4834_v36, %s2802_s12 }
 0xb5b   :  { %2148 = vrot.lane.b32.xlu0 %v4834_v36, %s2804_s2 }
 0xb62   :  { %2194 = vrot.lane.b32.xlu1 %v4838_v37, %s2803_s27  ;;  %2150 = vrot.lane.b32.xlu2 %v4838_v37, %s2804_s2 }
 0xb63   :  { %2200 = vperm.xlu0 %2693, %v2146_v52   ;;  %v2273_v52 = vld [vmem:[%s5238_s20 + $0x48] sm:$0xff] }
 0xb6a   :  { %2205 = vperm.xlu1 %2694, %v2147_v28   ;;  %2192 = vrot.lane.b32.xlu2 %v4834_v36, %s2803_s27  ;;  %v2143_v36 = vld [vmem:[%s5237_s21 + $0x8] sm:$0xff]  ;;  %v2272_v28 = vld [vmem:[%s5238_s20 + $0x40] sm:$0xff] }
 0xb6b   :  { %2342 = vperm.xlu0 %2693, %v2320_v30   ;;  %v2271_v30 = vld [vmem:[%s5238_s20 + $0x38] sm:$0xff] }
 0xb72   :  { %2347 = vperm.xlu1 %2694, %v2321_v9   ;;  %2337 = vperm.xlu2 %2695, %v2319_v0   ;;  %v2270_v9 = vld [vmem:[%s5238_s20 + $0x30] sm:$0xff]  ;;  %v2269_v0 = vld [vmem:[%s5238_s20 + $0x28] sm:$0xff] }
 0xb73   :  { %2357 = vperm.xlu0 %2693, %v2323_v33   ;;  %v2268_v33 = vld [vmem:[%s5238_s20 + $0x20] sm:$0xff] }
 0xb7a   :  { %2362 = vperm.xlu1 %2694, %v2324_v14   ;;  %2352 = vperm.xlu2 %2695, %v2322_v56   ;;  %v2267_v14 = vld [vmem:[%s5238_s20 + $0x18] sm:$0xff]  ;;  %v2266_v56 = vld [vmem:[%s5238_s20 + $0x10] sm:$0xff] }
 0xb7b   :  { %2372 = vperm.xlu0 %2693, %v2326_v20   ;;  %v2265_v20 = vld [vmem:[%s5238_s20 + $0x8] sm:$0xff] }
 0xb82   :  { %2377 = vperm.xlu1 %2694, %v2327_v29   ;;  %2367 = vperm.xlu2 %2695, %v2325_v38   ;;  %v2264_v29 = vld [vmem:[%s5238_s20] sm:$0xff] }
 0xb83   :  { %2387 = vperm.xlu0 %2693, %v2329_v16  }
 0xb8a   :  { %2392 = vperm.xlu1 %2694, %v2330_v63   ;;  %2382 = vperm.xlu2 %2695, %v2328_v51  }
 0xb8b   :  { %2402 = vperm.xlu0 %2693, %v2332_v48  }
 0xb92   :  { %2407 = vperm.xlu1 %2694, %v2333_v31   ;;  %2397 = vperm.xlu2 %2695, %v2331_v26  }
 0xb9a   :  { %2412 = vperm.xlu2 %2695, %v2334_v53  }
 0xb9c   :  { %v2189_v2 = vpop.permute.xlu2 %2188 }
 0xb9d   :  { %v2191_v32 = vmul.f32 %v2189_v2, %v4728_v34 }
 0xb9f   :  { %2214 = vmatpush.msra.mxu2 %v2191_v32 }
 0xba4   :  { %v2181_v42 = vpop.permute.xlu2 %2180 }
 0xba5   :  { %v2184_v25 = vmul.f32 %v2181_v42, %v4730_v50 }
 0xbac   :  { %v2187_v43 = vpop.permute.xlu0 %2186  ;;  %v2169_v59 = vpop.permute.xlu2 %2168 }
 0xbad   :  { %v2190_v47 = vmul.f32 %v2187_v43, %v4728_v34  ;;  %v2173_v34 = vmul.f32 %v4838_v37, %v4740_v57  ;;  %v2274_v37 = vld [vmem:[%s5238_s20 + $0x50] sm:$0xff] }
 0xbaf   :  { %2215 = vmatpush.msra.mxu2 %v2190_v47 }
 0xbb4   :  { %v2183_v62 = vpop.permute.xlu1 %2182  ;;  %v2161_v55 = vpop.permute.xlu2 %2160 }
 0xbb5   :  { %v2185_v21 = vmul.f32 %v2183_v62, %v4730_v50  ;;  %v2177_v22 = vpop.permute.xlu0 %2176  ;;  %v2171_v50 = vmul.f32 %v2169_v59, %v4743_v17  ;;  %v2164_v44 = vmul.f32 %v2161_v55, %v4747_v1  ;;  %v2313_v59 = vld [vmem:[%s2949_s13 + $0x50] sm:$0xff] }
 0xbb6   :  { %v2179_v41 = vmul.f32 %v2177_v22, %v4735_v45  ;;  %v2317_v55 = vld [vmem:[%s2949_s13 + $0x70] sm:$0xff] }
 0xbb7   :  { %2216 = vmatpush.msra.mxu2 %v2185_v21 }
 0xbb9   :  { %2217 = vmatpush.msra.mxu2 %v2184_v25  ;;  %v2314_v25 = vld [vmem:[%s2949_s13 + $0x58] sm:$0xff] }
 0xbbb   :  { %2218 = vmatpush.msra.mxu2 %v2179_v41  ;;  %v2305_v41 = vld [vmem:[%s2949_s13 + $0x10] sm:$0xff] }
 0xbbc   :  { %v2175_v11 = vpop.permute.xlu1 %2174  ;;  %v2151_v7 = vpop.permute.xlu2 %2150 }
 0xbbd   :  { %v2178_v15 = vmul.f32 %v2175_v11, %v4735_v45  ;;  %v2167_v54 = vpop.permute.xlu0 %2166  ;;  %v2153_v6 = vmul.f32 %v2151_v7, %v4755_v10  ;;  %v2315_v11 = vld [vmem:[%s2949_s13 + $0x60] sm:$0xff] }
 0xbbe   :  { %v2170_v4 = vmul.f32 %v2167_v54, %v4743_v17  ;;  %v2316_v54 = vld [vmem:[%s2949_s13 + $0x68] sm:$0xff] }
 0xbbf   :  { %2219 = vmatpush.msra.mxu2 %v2178_v15  ;;  %v2306_v15 = vld [vmem:[%s2949_s13 + $0x18] sm:$0xff] }
 0xbc1   :  { %2220 = vmatpush.msra.mxu2 %v2173_v34  ;;  %v2307_v34 = vld [vmem:[%s2949_s13 + $0x20] sm:$0xff] }
 0xbc3   :  { %2221 = vmatpush.msra.mxu2 %v2172_v39  ;;  %v2308_v39 = vld [vmem:[%s2949_s13 + $0x28] sm:$0xff] }
 0xbc4   :  { %v2163_v3 = vpop.permute.xlu1 %2162  ;;  %v2193_v46 = vpop.permute.xlu2 %2192 }
 0xbc5   :  { %v2157_v49 = vpop.permute.xlu0 %2156  ;;  %2222 = vmatpush.msra.mxu2 %v2171_v50  ;;  %v2165_v45 = vmul.f32 %v2163_v3, %v4747_v1  ;;  %v2142_v1 = vld [vmem:[%s5237_s21] sm:$0xff]  ;;  %v2196_v13 = vmul.f32 %v4724_v35, %v2193_v46  ;;  %v2318_v50 = vld [vmem:[%s2949_s13 + $0x78] sm:$0xff]  ;;  %v2309_v3 = vld [vmem:[%s2949_s13 + $0x30] sm:$0xff] }
 0xbc6   :  { %v2159_v8 = vmul.f32 %v2157_v49, %v4752_v61  ;;  %v2311_v49 = vld [vmem:[%s2949_s13 + $0x40] sm:$0xff] }
 0xbc7   :  { %2223 = vmatpush.msra.mxu2 %v2170_v4  ;;  %v2310_v4 = vld [vmem:[%s2949_s13 + $0x38] sm:$0xff] }
 0xbc9   :  { %2224 = vmatpush.msra.mxu2 %v2165_v45  ;;  %v2312_v45 = vld [vmem:[%s2949_s13 + $0x48] sm:$0xff] }
 0xbcb   :  { %2225 = vmatpush.msra.mxu2 %v2164_v44 }
 0xbcc   :  { %v2155_v57 = vpop.permute.xlu1 %2154  ;;  %v2338_v7 = vpop.permute.xlu2 %2337 }
 0xbcd   :  { %v2158_v18 = vmul.f32 %v2155_v57, %v4752_v61  ;;  %2226 = vmatpush.msra.mxu2 %v2159_v8  ;;  %v2149_v17 = vpop.permute.xlu0 %2148 }
 0xbce   :  { %v2152_v19 = vmul.f32 %v2149_v17, %v4755_v10  ;;  %v2144_v10 = vld [vmem:[%s5237_s21 + $0x10] sm:$0xff] }
 0xbcf   :  { %2227 = vmatpush.msra.mxu2 %v2158_v18 }
 0xbd1   :  { %2228 = vmatpush.msra.mxu2 %v2153_v6 }
 0xbd3   :  { %2229 = vmatpush.msra.mxu2 %v2152_v19 }
 0xbd4   :  { %v2195_v12 = vpop.permute.xlu1 %2194  ;;  %2230 = vmatmul.f32.vlgmr.msra.gmra.mxu2 %v2142_v1  ;;  %v2353_v18 = vpop.permute.xlu2 %2352 }
 0xbd5   :  { %v2197_v61 = vmul.f32 %v4724_v35, %v2195_v12  ;;  %v2277_v35 = vld [vmem:[%s5238_s20 + $0x68] sm:$0xff]  ;;  %v2201_v38 = vpop.permute.xlu0 %2200 }
 0xbd6   :  { %2282 = vmatpush.msra.mxu1 %v2277_v35 }
 0xbd7   :  { %2251 = vmatpush.msra.mxu0 %v2197_v61 }
 0xbd8   :  { %2283 = vmatpush.msra.mxu1 %v2276_v24 }
 0xbd9   :  { %2252 = vmatpush.msra.mxu0 %v2196_v13 }
 0xbda   :  { %2626 = vmatmul.msk.f32.vlgmr.msra.gmra.mxu0 %vm1965_vm10, %v2143_v36  ;;  %2284 = vmatpush.msra.mxu1 %v2275_v58 }
 0xbdc   :  { %2233 = vmatmul.f32.gmra.mxu2 %v2144_v10  ;;  %2285 = vmatpush.msra.mxu1 %v2274_v37  ;;  %v2206_v26 = vpop.permute.xlu1 %2205  ;;  %v2368_v46 = vpop.permute.xlu2 %2367 }
 0xbdd   :  { %v2343_v44 = vpop.permute.xlu0 %2342 }
 0xbde   :  { %2286 = vmatpush.msra.mxu1 %v2273_v52 }
 0xbe0   :  { %2287 = vmatpush.msra.mxu1 %v2272_v28 }
 0xbe2   :  { %2627 = vmatmul.msk.f32.gmra.mxu0 %vm1965_vm10, %v2145_v27  ;;  %2288 = vmatpush.msra.mxu1 %v2271_v30 }
 0xbe4   :  { %2289 = vmatpush.msra.mxu1 %v2270_v9  ;;  %v2348_v8 = vpop.permute.xlu1 %2347  ;;  %v2383_v60 = vpop.permute.xlu2 %2382 }
 0xbe5   :  { %v2358_v57 = vpop.permute.xlu0 %2357 }
 0xbe6   :  { %2290 = vmatpush.msra.mxu1 %v2269_v0 }
 0xbe8   :  { %2291 = vmatpush.msra.mxu1 %v2268_v33 }
 0xbea   :  { %2292 = vmatpush.msra.mxu1 %v2267_v14 }
 0xbec   :  { %2293 = vmatpush.msra.mxu1 %v2266_v56  ;;  %v2363_v17 = vpop.permute.xlu1 %2362  ;;  %v2398_v52 = vpop.permute.xlu2 %2397 }
 0xbed   :  { %v2373_v6 = vpop.permute.xlu0 %2372 }
 0xbee   :  { %2294 = vmatpush.msra.mxu1 %v2265_v20 }
 0xbf0   :  { %2295 = vmatpush.msra.mxu1 %v2264_v29 }
 0xbf4   :  { %v2378_v12 = vpop.permute.xlu1 %2377 }
 0xbf5   :  { %v2388_v61 = vpop.permute.xlu0 %2387 }
 0xbfc   :  { %v2393_v5 = vpop.permute.xlu1 %2392 }
 0xbfd   :  { %v2403_v33 = vpop.permute.xlu0 %2402 }
 0xc57   :  { %v2231_v16 = vpop.f32.mrf.mxu2  ;;  %v2254_v63 = vpop.f32.mrf.mxu0 }
 0xc58   :  { %v2232_v51 = vadd.f32 %v2231_v16, %v2201_v38  ;;  %v2408_v38 = vpop.permute.xlu1 %2407 }
 0xc5a   :  { %v2255_v48 = vadd.f32 %v2254_v63, %v2232_v51 }
 0xc5c   :  { %v2260_v31 = vadd.f32 %v2255_v48, %v4769_v23  ;;  %v2303_v23 = vld [vmem:[%s2949_s13] sm:$0xff] }
 0xc5e   :  { %v2262_v53 = vmax.f32 %v2260_v31, 0.0  ;;  %v2413_v31 = vpop.permute.xlu2 %2412 }
 0xc5f   :  { %v2234_v2 = vpop.f32.mrf.mxu2  ;;  %v2257_v32 = vpop.f32.mrf.mxu0 }
 0xc60   :  { %v2235_v42 = vadd.f32 %v2234_v2, %v2206_v26  ;;  %2296 = vmatmul.f32.vlgmr.msra.gmra.mxu1 %v2262_v53 }
 0xc62   :  { %v2258_v43 = vadd.f32 %v2257_v32, %v2235_v42 }
 0xc64   :  { %v2261_v47 = vadd.f32 %v2258_v43, %v4774_v40  ;;  %v2304_v40 = vld [vmem:[%s2949_s13 + $0x8] sm:$0xff]  ;;  %s2805_s13 = smov [#allocation5]  }
 0xc65   :  { %s2548_s16 = sshll.u32 %s2805_s13, 4  ;;  %s2549_s16 = int_to_ptr.vmem [resolvable:$true] %s2548_s16 }
 0xc66   :  { %v2263_v62 = vmax.f32 %v2261_v47, 0.0 }
 0xc68   :  { %2299 = vmatmul.f32.gmra.mxu1 %v2263_v62 }
 0xcdd   :  { %v2297_v21 = vpop.f32.mrf.mxu1 }
 0xce5   :  { %v2300_v22 = vpop.f32.mrf.mxu1 }
 0xce6   :  { %2477 = vmatpush.msrb.mxu0 %v2300_v22  ;;  %2644 = vmatpush.msrb.mxu3 %v2300_v22 }
 0xce8   :  { %2478 = vmatpush.msrb.mxu0 %v2297_v21  ;;  %2645 = vmatpush.msrb.mxu3 %v2297_v21 }
 0xce9   :  { %2628 = vmatmul.msk.f32.vlgmr.msrb.gmra.mxu0 %vm1965_vm10, %v2303_v23  ;;  %2638 = vmatmul.msk.f32.vlgmr.msrb.gmra.mxu3 %vm1965_vm10, %v2313_v59 }
 0xcf1   :  { %2629 = vmatmul.msk.f32.gmra.mxu0 %vm1965_vm10, %v2304_v40  ;;  %2639 = vmatmul.msk.f32.gmra.mxu3 %vm1965_vm10, %v2314_v25 }
 0xcf9   :  { %2630 = vmatmul.msk.f32.gmra.mxu0 %vm1965_vm10, %v2305_v41  ;;  %2640 = vmatmul.msk.f32.gmra.mxu3 %vm1965_vm10, %v2315_v11 }
 0xd01   :  { %2631 = vmatmul.msk.f32.gmra.mxu0 %vm1965_vm10, %v2306_v15  ;;  %2641 = vmatmul.msk.f32.gmra.mxu3 %vm1965_vm10, %v2316_v54 }
 0xd09   :  { %2632 = vmatmul.msk.f32.gmra.mxu0 %vm1965_vm10, %v2307_v34  ;;  %2642 = vmatmul.msk.f32.gmra.mxu3 %vm1965_vm10, %v2317_v55 }
 0xd11   :  { %2633 = vmatmul.msk.f32.gmra.mxu0 %vm1965_vm10, %v2308_v39  ;;  %2643 = vmatmul.msk.f32.gmra.mxu3 %vm1965_vm10, %v2318_v50 }
 0xd19   :  { %2634 = vmatmul.msk.f32.gmra.mxu0 %vm1965_vm10, %v2309_v3 }
 0xd21   :  { %2635 = vmatmul.msk.f32.gmra.mxu0 %vm1965_vm10, %v2310_v4 }
 0xd29   :  { %2636 = vmatmul.msk.f32.gmra.mxu0 %vm1965_vm10, %v2311_v49 }
 0xd31   :  { %2637 = vmatmul.msk.f32.gmra.mxu0 %vm1965_vm10, %v2312_v45 }
 0xd66   :  { %v2480_v19 = vpop.f32.mrf.mxu0 }
 0xd67   :  { %v2481_v1 = vadd.f32 %v2480_v19, %v2338_v7 }
 0xd69   :  { %2528 = vst [vmem:[#allocation5] sm:$0xff] %v2481_v1 }
 0xd6c   :  { %v2510_v13 = vpop.f32.mrf.mxu3 }
 0xd6d   :  { %v2511_v36 = vadd.f32 %v2510_v13, %v2388_v61 }
 0xd6e   :  { %v2483_v10 = vpop.f32.mrf.mxu0 }
 0xd6f   :  { %2538 = vst [vmem:[#allocation5 + $0x50] sm:$0xff] %v2511_v36  ;;  %v2484_v27 = vadd.f32 %v2483_v10, %v2343_v44 }
 0xd71   :  { %2529 = vst [vmem:[#allocation5 + $0x8] sm:$0xff] %v2484_v27 }
 0xd74   :  { %v2513_v35 = vpop.f32.mrf.mxu3 }
 0xd75   :  { %v2514_v24 = vadd.f32 %v2513_v35, %v2393_v5 }
 0xd76   :  { %v2486_v58 = vpop.f32.mrf.mxu0 }
 0xd77   :  { %2539 = vst [vmem:[#allocation5 + $0x58] sm:$0xff] %v2514_v24  ;;  %v2487_v37 = vadd.f32 %v2486_v58, %v2348_v8 }
 0xd79   :  { %2530 = vst [vmem:[#allocation5 + $0x10] sm:$0xff] %v2487_v37 }
 0xd7c   :  { %v2516_v28 = vpop.f32.mrf.mxu3 }
 0xd7d   :  { %v2517_v30 = vadd.f32 %v2516_v28, %v2398_v52 }
 0xd7e   :  { %v2489_v9 = vpop.f32.mrf.mxu0 }
 0xd7f   :  { %2540 = vst [vmem:[#allocation5 + $0x60] sm:$0xff] %v2517_v30  ;;  %v2490_v0 = vadd.f32 %v2489_v9, %v2353_v18 }
 0xd81   :  { %2531 = vst [vmem:[#allocation5 + $0x18] sm:$0xff] %v2490_v0 }
 0xd84   :  { %v2519_v14 = vpop.f32.mrf.mxu3 }
 0xd85   :  { %v2520_v56 = vadd.f32 %v2519_v14, %v2403_v33 }
 0xd86   :  { %v2492_v20 = vpop.f32.mrf.mxu0 }
 0xd87   :  { %2541 = vst [vmem:[#allocation5 + $0x68] sm:$0xff] %v2520_v56  ;;  %v2493_v29 = vadd.f32 %v2492_v20, %v2358_v57 }
 0xd89   :  { %2532 = vst [vmem:[#allocation5 + $0x20] sm:$0xff] %v2493_v29 }
 0xd8c   :  { %v2522_v16 = vpop.f32.mrf.mxu3 }
 0xd8d   :  { %v2523_v63 = vadd.f32 %v2522_v16, %v2408_v38 }
 0xd8e   :  { %v2495_v51 = vpop.f32.mrf.mxu0 }
 0xd8f   :  { %2542 = vst [vmem:[#allocation5 + $0x70] sm:$0xff] %v2523_v63  ;;  %v2496_v48 = vadd.f32 %v2495_v51, %v2363_v17 }
 0xd91   :  { %2533 = vst [vmem:[#allocation5 + $0x28] sm:$0xff] %v2496_v48 }
 0xd94   :  { %v2525_v26 = vpop.f32.mrf.mxu3 }
 0xd95   :  { %v2526_v53 = vadd.f32 %v2525_v26, %v2413_v31 }
 0xd96   :  { %v2498_v2 = vpop.f32.mrf.mxu0 }
 0xd97   :  { %2543 = vst [vmem:[#allocation5 + $0x78] sm:$0xff] %v2526_v53  ;;  %v2499_v32 = vadd.f32 %v2498_v2, %v2368_v46 }
 0xd99   :  { %2534 = vst [vmem:[#allocation5 + $0x30] sm:$0xff] %v2499_v32 }
 0xd9e   :  { %v2501_v42 = vpop.f32.mrf.mxu0 }
 0xd9f   :  { %v2502_v43 = vadd.f32 %v2501_v42, %v2373_v6 }
 0xda1   :  { %2535 = vst [vmem:[#allocation5 + $0x38] sm:$0xff] %v2502_v43 }
 0xda6   :  { %v2504_v47 = vpop.f32.mrf.mxu0 }
 0xda7   :  { %v2505_v62 = vadd.f32 %v2504_v47, %v2378_v12 }
 0xda9   :  { %2536 = vst [vmem:[#allocation5 + $0x40] sm:$0xff] %v2505_v62 }
 0xdae   :  { %v2507_v21 = vpop.f32.mrf.mxu0 }
 0xdaf   :  { %v2508_v22 = vadd.f32 %v2507_v21, %v2383_v60 }
 0xdb1   :  { %2537 = vst [vmem:[#allocation5 + $0x48] sm:$0xff] %v2508_v22 }
 0xdb2   :  { %2754 = shalt.err (!%p2751_p9)
}
 0xdb3   :  { %2556 = dma.vmem_to_hbm [thread:$0]  %s2549_s16, 2048, %s2551_s18, [#allocation4], %s2789_s0, %s2789_s0, %s2790_s22  }
 0xdb4   :  { %2757 = dma.done.wait [#allocation4], 2048  }
 0xdb5   :  { %2758 = vsyncadd [#allocation4], 4294965248 }
 0xdb6   :  { %2561 = vsyncpa [#allocation3], 1 }
 0xdb7   :  { %2562 = vsyncpa [#allocation4], 1 }

</bundles_post_ra>
